<compile_context>
chip_gen: v5e
topology: v5e:2x2
jax: 0.10.0
libtpu: 0.0.40
codegen_flags: <defaults>
</compile_context>

<pallas_src>
import jax
import jax.numpy as jnp
from jax import lax
from jax.experimental import pallas as pl
from jax.experimental.pallas import tpu as pltpu

LANES = 128
SUBLANES = 8
CHUNK_ROWS = 512                       # in-kernel compute chunk (256 KiB f32 temps)
TARGET_BLOCK_BYTES = 2 * 1024 * 1024   # per-input DMA block target (~2 MiB)
PALLAS_MIN_ELEMENTS = 64 * 1024        # below this, plain XLA beats a kernel launch
VMEM_LIMIT_BYTES = 32 * 1024 * 1024


def _cdiv(a, b):
    return (a + b - 1) // b


def _num_core_splits():
    """2-way TensorCore split only where it helps (v7x has 2 TCs per chip)."""
    try:
        kind = jax.devices()[0].device_kind.lower()
    except Exception:
        return 1
    return 2 if "v7" in kind else 1


def _make_kernel(tile_rows, chunk_rows, rows, blocks_per_split, need_row_mask):
    """Kernel over a (rows, 128) bulk array; grid = (num_splits, blocks_per_split)."""
    num_chunks = tile_rows // chunk_rows
    groups = chunk_rows // SUBLANES

    def _accumulate(pred_ref, tgt_ref, sum_ref, cnt_ref, row_start, masked):
        # Hoisted once per path (JAX does not CSE iota/broadcast inside loops).
        base_rows = (
            lax.broadcasted_iota(jnp.int32, (chunk_rows, LANES), 0) if masked else None
        )

        def chunk_body(ci, carry):
            off = pl.multiple_of(ci * chunk_rows, chunk_rows)
            t = tgt_ref[pl.ds(off, chunk_rows), :].astype(jnp.float32)
            p = pred_ref[pl.ds(off, chunk_rows), :].astype(jnp.float32)
            mask = t > 0.0
            if masked:
                row_ids = (row_start + off) + base_rows
                mask = jnp.logical_and(mask, row_ids < rows)
            d = jnp.where(mask, t - p, 0.0)
            dd = d * d
            m = mask.astype(jnp.float32)
            # (chunk,128) -> (chunk/8, 8, 128) preserves the (8,128) tiling, so
            # the axis-0 sum is pure VPU adds (no XLU, no masked partial stores).
            sum_ref[...] += jnp.sum(dd.reshape(groups, SUBLANES, LANES), axis=0)
            cnt_ref[...] += jnp.sum(m.reshape(groups, SUBLANES, LANES), axis=0)
            return carry

        lax.fori_loop(0, num_chunks, chunk_body, 0, unroll=True)

    def kernel(pred_ref, tgt_ref, sum_ref, cnt_ref):
        i = pl.program_id(1)

        # Output blocks are resident across the (sequential) inner axis: zero
        # them at the start of each split's chunk of work.
        @pl.when(i == 0)
        def _():
            sum_ref[...] = jnp.zeros_like(sum_ref)
            cnt_ref[...] = jnp.zeros_like(cnt_ref)

        if need_row_mask:
            c = pl.program_id(0)
            block_idx = c * blocks_per_split + i          # intended (unclamped) block
            row_start = block_idx * tile_rows
            is_full = row_start + tile_rows <= rows

            @pl.when(is_full)
            def _():
                _accumulate(pred_ref, tgt_ref, sum_ref, cnt_ref, row_start, masked=False)

            @pl.when(jnp.logical_not(is_full))
            def _():
                _accumulate(pred_ref, tgt_ref, sum_ref, cnt_ref, row_start, masked=True)
        else:
            _accumulate(pred_ref, tgt_ref, sum_ref, cnt_ref, 0, masked=False)

    return kernel


def _masked_sums_jax(pred_vec, tgt_vec):
    t = tgt_vec.astype(jnp.float32)
    p = pred_vec.astype(jnp.float32)
    mask = t > 0.0
    d = jnp.where(mask, t - p, 0.0)
    return jnp.sum(d * d), jnp.sum(mask.astype(jnp.float32))


def masked_mse_loss(pred, target):
    assert pred.ndim == target.ndim, "inconsistent dimensions"
    assert pred.shape == target.shape, "inconsistent shapes"

    pred_f = pred.reshape(-1)
    tgt_f = target.reshape(-1)
    n = pred_f.shape[0]

    # Tiny inputs: fixed pallas_call launch cost dwarfs data movement.
    if n < PALLAS_MIN_ELEMENTS:
        s, c = _masked_sums_jax(pred_f, tgt_f)
        return (s / c).astype(jnp.float32)

    # Bulk is a multiple of 8*128 elements so the 2-D view has rows % 8 == 0.
    bulk_quantum = SUBLANES * LANES
    n_bulk = (n // bulk_quantum) * bulk_quantum
    n_tail = n - n_bulk
    rows = n_bulk // LANES  # multiple of 8; >= CHUNK_ROWS by the size threshold

    # Byte-based DMA block sizing: ~TARGET_BLOCK_BYTES per input per grid step,
    # a multiple of CHUNK_ROWS, never larger than the (chunk-aligned) array.
    itemsize = max(jnp.dtype(pred.dtype).itemsize, jnp.dtype(target.dtype).itemsize)
    target_rows = max(
        CHUNK_ROWS,
        (TARGET_BLOCK_BYTES // (LANES * itemsize)) // CHUNK_ROWS * CHUNK_ROWS,
    )
    tile_rows = min(target_rows, (rows // CHUNK_ROWS) * CHUNK_ROWS)

    blocks_total = _cdiv(rows, tile_rows)

    # Split row-blocks across the two TensorCores on v7x only; on single-TC
    # chips the split would just add duplicate DMAs and masking work.
    num_splits = _num_core_splits()
    if blocks_total < 2:
        num_splits = 1
    blocks_per_split = _cdiv(blocks_total, num_splits)
    covered_blocks = num_splits * blocks_per_split
    need_row_mask = (covered_blocks != blocks_total) or (rows % tile_rows != 0)

    pred2d = pred_f[:n_bulk].reshape(rows, LANES)
    tgt2d = tgt_f[:n_bulk].reshape(rows, LANES)

    last_block = blocks_total - 1
    if covered_blocks != blocks_total:
        # Clamp so no DMA targets a block starting past the array; the kernel's
        # row mask zeroes the duplicated block's contribution.
        def in_index_map(c, i):
            return (jnp.minimum(c * blocks_per_split + i, last_block), 0)
    else:
        def in_index_map(c, i):
            return (c * blocks_per_split + i, 0)

    kernel = _make_kernel(tile_rows, CHUNK_ROWS, rows, blocks_per_split, need_row_mask)

    sum_out, cnt_out = pl.pallas_call(
        kernel,
        out_shape=(
            jax.ShapeDtypeStruct((num_splits * SUBLANES, LANES), jnp.float32),
            jax.ShapeDtypeStruct((num_splits * SUBLANES, LANES), jnp.float32),
        ),
        grid_spec=pltpu.PrefetchScalarGridSpec(
            num_scalar_prefetch=0,
            grid=(num_splits, blocks_per_split),
            in_specs=[
                pl.BlockSpec((tile_rows, LANES), in_index_map),
                pl.BlockSpec((tile_rows, LANES), in_index_map),
            ],
            out_specs=[
                pl.BlockSpec((SUBLANES, LANES), lambda c, i: (c, 0)),
                pl.BlockSpec((SUBLANES, LANES), lambda c, i: (c, 0)),
            ],
        ),
        compiler_params=pltpu.CompilerParams(
            dimension_semantics=("parallel", "arbitrary"),
            vmem_limit_bytes=VMEM_LIMIT_BYTES,
        ),
    )(pred2d, tgt2d)

    total_sum = jnp.sum(sum_out)
    total_cnt = jnp.sum(cnt_out)

    if n_tail > 0:
        # <1024-element tail: trivial plain-JAX reduction (avoids padding the
        # whole array just to round it up to a tile multiple).
        ts, tc = _masked_sums_jax(pred_f[n_bulk:], tgt_f[n_bulk:])
        total_sum = total_sum + ts
        total_cnt = total_cnt + tc

    # count == 0 -> 0/0 = nan, matching PyTorch's mean over an empty selection.
    return (total_sum / total_cnt).astype(jnp.float32)


def _reference(pred, target):
    t = target.astype(jnp.float32)
    p = pred.astype(jnp.float32)
    mask = t > 0
    diff = jnp.where(mask, t - p, 0.0)
    return jnp.sum(diff * diff) / jnp.sum(mask.astype(jnp.float32))


if __name__ == "__main__":
    key = jax.random.PRNGKey(0)
    ks = jax.random.split(key, 8)

    # 1) Small NCHW case (depth-map style usage) -> plain-JAX fast path.
    pred = jax.random.normal(ks[0], (2, 4, 16, 16), dtype=jnp.float32)
    target = jax.random.normal(ks[1], (2, 4, 16, 16), dtype=jnp.float32)
    loss = masked_mse_loss(pred, target)
    jax.block_until_ready(loss)
    ref = _reference(pred, target)
    assert jnp.allclose(loss, ref, rtol=1e-5, atol=1e-6), (loss, ref)

    # 2) Pallas bulk path: partial last block (masked) + plain-JAX tail.
    pred2 = jax.random.normal(ks[2], (1, 1, 1100, 128), dtype=jnp.float32)
    target2 = jax.random.normal(ks[3], (1, 1, 1100, 128), dtype=jnp.float32)
    loss2 = masked_mse_loss(pred2, target2)
    jax.block_until_ready(loss2)
    ref2 = _reference(pred2, target2)
    assert jnp.allclose(loss2, ref2, rtol=1e-4, atol=1e-6), (loss2, ref2)

    # 3) Multi-block case (two full 4096-row blocks, no tail, no masking).
    pred3 = jax.random.normal(ks[4], (2, 1, 4096, 128), dtype=jnp.float32)
    target3 = jax.random.normal(ks[5], (2, 1, 4096, 128), dtype=jnp.float32)
    loss3 = masked_mse_loss(pred3, target3)
    jax.block_until_ready(loss3)
    ref3 = _reference(pred3, target3)
    assert jnp.allclose(loss3, ref3, rtol=1e-4, atol=1e-6), (loss3, ref3)

    # 4) bf16 inputs exercise the byte-based tile sizing (in-kernel f32 accum).
    pred4 = jax.random.normal(ks[6], (1, 1, 1100, 128), dtype=jnp.bfloat16)
    target4 = jax.random.normal(ks[7], (1, 1, 1100, 128), dtype=jnp.bfloat16)
    loss4 = masked_mse_loss(pred4, target4)
    jax.block_until_ready(loss4)
    ref4 = _reference(pred4, target4)
    assert jnp.allclose(loss4, ref4, rtol=1e-3, atol=1e-5), (loss4, ref4)

    print("KERNEL_OK")
</pallas_src>

<mosaic_0001>
module attributes {stable_mosaic.version = 11 : i64} {
  func.func @kernel(%arg0: i32, %arg1: i32, %arg2: memref<1024x128xf32, #tpu.memory_space<vmem>>, %arg3: memref<1024x128xf32, #tpu.memory_space<vmem>>, %arg4: memref<8x128xf32, #tpu.memory_space<vmem>>, %arg5: memref<8x128xf32, #tpu.memory_space<vmem>>) attributes {dimension_semantics = [#tpu.dimension_semantics<parallel>, #tpu.dimension_semantics<arbitrary>], iteration_bounds = array<i64: 1, 2>, scalar_prefetch = 0 : i64, scratch_operands = 0 : i64, tpu.core_type = #tpu.core_type<tc>, window_params = [{transform_indices = @transform_0, window_bounds = array<i64: 1024, 128>}, {transform_indices = @transform_1, window_bounds = array<i64: 1024, 128>}, {transform_indices = @transform_2, window_bounds = array<i64: 8, 128>}, {transform_indices = @transform_3, window_bounds = array<i64: 8, 128>}]} {
    %c0_i32 = arith.constant 0 : i32
    %0 = arith.cmpi eq, %arg1, %c0_i32 : i32
    %1 = arith.extui %0 : i1 to i32
    %c0_i32_0 = arith.constant 0 : i32
    %2 = arith.cmpi ne, %1, %c0_i32_0 : i32
    scf.if %2 {
      %cst = arith.constant 0.000000e+00 : f32
      %13 = vector.broadcast %cst : f32 to vector<8x128xf32>
      %c0 = arith.constant 0 : index
      %c0_4 = arith.constant 0 : index
      %14 = vector.load %arg4[%c0, %c0_4] : memref<8x128xf32, #tpu.memory_space<vmem>>, vector<8x128xf32>
      tpu.vector_store %arg4[%c0, %c0_4], %13 {strides = array<i32>} : memref<8x128xf32, #tpu.memory_space<vmem>>, vector<8x128xf32>,
      %cst_5 = arith.constant 0.000000e+00 : f32
      %15 = vector.broadcast %cst_5 : f32 to vector<8x128xf32>
      %c0_6 = arith.constant 0 : index
      %c0_7 = arith.constant 0 : index
      %16 = vector.load %arg5[%c0_6, %c0_7] : memref<8x128xf32, #tpu.memory_space<vmem>>, vector<8x128xf32>
      tpu.vector_store %arg5[%c0_6, %c0_7], %15 {strides = array<i32>} : memref<8x128xf32, #tpu.memory_space<vmem>>, vector<8x128xf32>,
    } else {
    }
    %c2_i32 = arith.constant 2 : i32
    %3 = arith.muli %arg0, %c2_i32 : i32
    %4 = arith.addi %3, %arg1 : i32
    %c1024_i32 = arith.constant 1024 : i32
    %5 = arith.muli %4, %c1024_i32 : i32
    %c1024_i32_1 = arith.constant 1024 : i32
    %6 = arith.addi %5, %c1024_i32_1 : i32
    %c1096_i32 = arith.constant 1096 : i32
    %7 = arith.cmpi sle, %6, %c1096_i32 : i32
    %8 = arith.extui %7 : i1 to i32
    %c0_i32_2 = arith.constant 0 : i32
    %9 = arith.cmpi ne, %8, %c0_i32_2 : i32
    scf.if %9 {
      %c0_i32_4 = arith.constant 0 : i32
      %c512_i32 = arith.constant 512 : i32
      %13 = arith.muli %c0_i32_4, %c512_i32 : i32
      %14 = tpu.assume_multiple %13, 512 : i32
      %15 = arith.index_cast %14 : i32 to index
      %c0 = arith.constant 0 : index
      %16 = vector.load %arg3[%15, %c0] : memref<1024x128xf32, #tpu.memory_space<vmem>>, vector<512x128xf32>
      %17 = arith.index_cast %14 : i32 to index
      %c0_5 = arith.constant 0 : index
      %18 = vector.load %arg2[%17, %c0_5] : memref<1024x128xf32, #tpu.memory_space<vmem>>, vector<512x128xf32>
      %cst = arith.constant 0.000000e+00 : f32
      %19 = vector.broadcast %cst : f32 to vector<512x128xf32>
      %20 = arith.cmpf ogt, %16, %19 : vector<512x128xf32>
      %21 = arith.subf %16, %18 : vector<512x128xf32>
      %cst_6 = arith.constant 0.000000e+00 : f32
      %22 = vector.broadcast %cst_6 : f32 to vector<512x128xf32>
      %23 = arith.select %20, %21, %22 : vector<512x128xi1>, vector<512x128xf32>
      %24 = arith.mulf %23, %23 : vector<512x128xf32>
      %25 = arith.extui %20 : vector<512x128xi1> to vector<512x128xi32>
      %26 = arith.sitofp %25 : vector<512x128xi32> to vector<512x128xf32>
      %c0_7 = arith.constant 0 : index
      %c0_8 = arith.constant 0 : index
      %27 = vector.load %arg4[%c0_7, %c0_8] : memref<8x128xf32, #tpu.memory_space<vmem>>, vector<8x128xf32>
      %28 = vector.shape_cast %24 : vector<512x128xf32> to vector<64x8x128xf32>
      %cst_9 = arith.constant dense<0.000000e+00> : vector<8x128xf32>
      %29 = vector.multi_reduction <add>, %28, %cst_9 [0] : vector<64x8x128xf32> to vector<8x128xf32>
      %30 = arith.addf %27, %29 : vector<8x128xf32>
      %c0_10 = arith.constant 0 : index
      %c0_11 = arith.constant 0 : index
      %31 = vector.load %arg4[%c0_10, %c0_11] : memref<8x128xf32, #tpu.memory_space<vmem>>, vector<8x128xf32>
      tpu.vector_store %arg4[%c0_10, %c0_11], %30 {strides = array<i32>} : memref<8x128xf32, #tpu.memory_space<vmem>>, vector<8x128xf32>,
      %c0_12 = arith.constant 0 : index
      %c0_13 = arith.constant 0 : index
      %32 = vector.load %arg5[%c0_12, %c0_13] : memref<8x128xf32, #tpu.memory_space<vmem>>, vector<8x128xf32>
      %33 = vector.shape_cast %26 : vector<512x128xf32> to vector<64x8x128xf32>
      %cst_14 = arith.constant dense<0.000000e+00> : vector<8x128xf32>
      %34 = vector.multi_reduction <add>, %33, %cst_14 [0] : vector<64x8x128xf32> to vector<8x128xf32>
      %35 = arith.addf %32, %34 : vector<8x128xf32>
      %c0_15 = arith.constant 0 : index
      %c0_16 = arith.constant 0 : index
      %36 = vector.load %arg5[%c0_15, %c0_16] : memref<8x128xf32, #tpu.memory_space<vmem>>, vector<8x128xf32>
      tpu.vector_store %arg5[%c0_15, %c0_16], %35 {strides = array<i32>} : memref<8x128xf32, #tpu.memory_space<vmem>>, vector<8x128xf32>,
      %c1_i32 = arith.constant 1 : i32
      %c512_i32_17 = arith.constant 512 : i32
      %37 = arith.muli %c1_i32, %c512_i32_17 : i32
      %38 = tpu.assume_multiple %37, 512 : i32
      %39 = arith.index_cast %38 : i32 to index
      %c0_18 = arith.constant 0 : index
      %40 = vector.load %arg3[%39, %c0_18] : memref<1024x128xf32, #tpu.memory_space<vmem>>, vector<512x128xf32>
      %41 = arith.index_cast %38 : i32 to index
      %c0_19 = arith.constant 0 : index
      %42 = vector.load %arg2[%41, %c0_19] : memref<1024x128xf32, #tpu.memory_space<vmem>>, vector<512x128xf32>
      %cst_20 = arith.constant 0.000000e+00 : f32
      %43 = vector.broadcast %cst_20 : f32 to vector<512x128xf32>
      %44 = arith.cmpf ogt, %40, %43 : vector<512x128xf32>
      %45 = arith.subf %40, %42 : vector<512x128xf32>
      %cst_21 = arith.constant 0.000000e+00 : f32
      %46 = vector.broadcast %cst_21 : f32 to vector<512x128xf32>
      %47 = arith.select %44, %45, %46 : vector<512x128xi1>, vector<512x128xf32>
      %48 = arith.mulf %47, %47 : vector<512x128xf32>
      %49 = arith.extui %44 : vector<512x128xi1> to vector<512x128xi32>
      %50 = arith.sitofp %49 : vector<512x128xi32> to vector<512x128xf32>
      %c0_22 = arith.constant 0 : index
      %c0_23 = arith.constant 0 : index
      %51 = vector.load %arg4[%c0_22, %c0_23] : memref<8x128xf32, #tpu.memory_space<vmem>>, vector<8x128xf32>
      %52 = vector.shape_cast %48 : vector<512x128xf32> to vector<64x8x128xf32>
      %cst_24 = arith.constant dense<0.000000e+00> : vector<8x128xf32>
      %53 = vector.multi_reduction <add>, %52, %cst_24 [0] : vector<64x8x128xf32> to vector<8x128xf32>
      %54 = arith.addf %51, %53 : vector<8x128xf32>
      %c0_25 = arith.constant 0 : index
      %c0_26 = arith.constant 0 : index
      %55 = vector.load %arg4[%c0_25, %c0_26] : memref<8x128xf32, #tpu.memory_space<vmem>>, vector<8x128xf32>
      tpu.vector_store %arg4[%c0_25, %c0_26], %54 {strides = array<i32>} : memref<8x128xf32, #tpu.memory_space<vmem>>, vector<8x128xf32>,
      %c0_27 = arith.constant 0 : index
      %c0_28 = arith.constant 0 : index
      %56 = vector.load %arg5[%c0_27, %c0_28] : memref<8x128xf32, #tpu.memory_space<vmem>>, vector<8x128xf32>
      %57 = vector.shape_cast %50 : vector<512x128xf32> to vector<64x8x128xf32>
      %cst_29 = arith.constant dense<0.000000e+00> : vector<8x128xf32>
      %58 = vector.multi_reduction <add>, %57, %cst_29 [0] : vector<64x8x128xf32> to vector<8x128xf32>
      %59 = arith.addf %56, %58 : vector<8x128xf32>
      %c0_30 = arith.constant 0 : index
      %c0_31 = arith.constant 0 : index
      %60 = vector.load %arg5[%c0_30, %c0_31] : memref<8x128xf32, #tpu.memory_space<vmem>>, vector<8x128xf32>
      tpu.vector_store %arg5[%c0_30, %c0_31], %59 {strides = array<i32>} : memref<8x128xf32, #tpu.memory_space<vmem>>, vector<8x128xf32>,
      %c2_i32_32 = arith.constant 2 : i32
    } else {
    }
    %true = arith.constant true
    %10 = arith.xori %7, %true : i1
    %11 = arith.extui %10 : i1 to i32
    %c0_i32_3 = arith.constant 0 : i32
    %12 = arith.cmpi ne, %11, %c0_i32_3 : i32
    scf.if %12 {
      %13 = tpu.iota {dimensions = array<i32: 0>} : vector<512x128xi32>
      %c0_i32_4 = arith.constant 0 : i32
      %c512_i32 = arith.constant 512 : i32
      %14 = arith.muli %c0_i32_4, %c512_i32 : i32
      %15 = tpu.assume_multiple %14, 512 : i32
      %16 = arith.index_cast %15 : i32 to index
      %c0 = arith.constant 0 : index
      %17 = vector.load %arg3[%16, %c0] : memref<1024x128xf32, #tpu.memory_space<vmem>>, vector<512x128xf32>
      %18 = arith.index_cast %15 : i32 to index
      %c0_5 = arith.constant 0 : index
      %19 = vector.load %arg2[%18, %c0_5] : memref<1024x128xf32, #tpu.memory_space<vmem>>, vector<512x128xf32>
      %cst = arith.constant 0.000000e+00 : f32
      %20 = vector.broadcast %cst : f32 to vector<512x128xf32>
      %21 = arith.cmpf ogt, %17, %20 : vector<512x128xf32>
      %22 = arith.addi %5, %15 : i32
      %23 = vector.broadcast %22 : i32 to vector<512x128xi32>
      %24 = arith.addi %23, %13 : vector<512x128xi32>
      %c1096_i32_6 = arith.constant 1096 : i32
      %25 = vector.broadcast %c1096_i32_6 : i32 to vector<512x128xi32>
      %26 = arith.cmpi slt, %24, %25 : vector<512x128xi32>
      %27 = arith.andi %21, %26 : vector<512x128xi1>
      %28 = arith.subf %17, %19 : vector<512x128xf32>
      %cst_7 = arith.constant 0.000000e+00 : f32
      %29 = vector.broadcast %cst_7 : f32 to vector<512x128xf32>
      %30 = arith.select %27, %28, %29 : vector<512x128xi1>, vector<512x128xf32>
      %31 = arith.mulf %30, %30 : vector<512x128xf32>
      %32 = arith.extui %27 : vector<512x128xi1> to vector<512x128xi32>
      %33 = arith.sitofp %32 : vector<512x128xi32> to vector<512x128xf32>
      %c0_8 = arith.constant 0 : index
      %c0_9 = arith.constant 0 : index
      %34 = vector.load %arg4[%c0_8, %c0_9] : memref<8x128xf32, #tpu.memory_space<vmem>>, vector<8x128xf32>
      %35 = vector.shape_cast %31 : vector<512x128xf32> to vector<64x8x128xf32>
      %cst_10 = arith.constant dense<0.000000e+00> : vector<8x128xf32>
      %36 = vector.multi_reduction <add>, %35, %cst_10 [0] : vector<64x8x128xf32> to vector<8x128xf32>
      %37 = arith.addf %34, %36 : vector<8x128xf32>
      %c0_11 = arith.constant 0 : index
      %c0_12 = arith.constant 0 : index
      %38 = vector.load %arg4[%c0_11, %c0_12] : memref<8x128xf32, #tpu.memory_space<vmem>>, vector<8x128xf32>
      tpu.vector_store %arg4[%c0_11, %c0_12], %37 {strides = array<i32>} : memref<8x128xf32, #tpu.memory_space<vmem>>, vector<8x128xf32>,
      %c0_13 = arith.constant 0 : index
      %c0_14 = arith.constant 0 : index
      %39 = vector.load %arg5[%c0_13, %c0_14] : memref<8x128xf32, #tpu.memory_space<vmem>>, vector<8x128xf32>
      %40 = vector.shape_cast %33 : vector<512x128xf32> to vector<64x8x128xf32>
      %cst_15 = arith.constant dense<0.000000e+00> : vector<8x128xf32>
      %41 = vector.multi_reduction <add>, %40, %cst_15 [0] : vector<64x8x128xf32> to vector<8x128xf32>
      %42 = arith.addf %39, %41 : vector<8x128xf32>
      %c0_16 = arith.constant 0 : index
      %c0_17 = arith.constant 0 : index
      %43 = vector.load %arg5[%c0_16, %c0_17] : memref<8x128xf32, #tpu.memory_space<vmem>>, vector<8x128xf32>
      tpu.vector_store %arg5[%c0_16, %c0_17], %42 {strides = array<i32>} : memref<8x128xf32, #tpu.memory_space<vmem>>, vector<8x128xf32>,
      %c1_i32 = arith.constant 1 : i32
      %c512_i32_18 = arith.constant 512 : i32
      %44 = arith.muli %c1_i32, %c512_i32_18 : i32
      %45 = tpu.assume_multiple %44, 512 : i32
      %46 = arith.index_cast %45 : i32 to index
      %c0_19 = arith.constant 0 : index
      %47 = vector.load %arg3[%46, %c0_19] : memref<1024x128xf32, #tpu.memory_space<vmem>>, vector<512x128xf32>
      %48 = arith.index_cast %45 : i32 to index
      %c0_20 = arith.constant 0 : index
      %49 = vector.load %arg2[%48, %c0_20] : memref<1024x128xf32, #tpu.memory_space<vmem>>, vector<512x128xf32>
      %cst_21 = arith.constant 0.000000e+00 : f32
      %50 = vector.broadcast %cst_21 : f32 to vector<512x128xf32>
      %51 = arith.cmpf ogt, %47, %50 : vector<512x128xf32>
      %52 = arith.addi %5, %45 : i32
      %53 = vector.broadcast %52 : i32 to vector<512x128xi32>
      %54 = arith.addi %53, %13 : vector<512x128xi32>
      %c1096_i32_22 = arith.constant 1096 : i32
      %55 = vector.broadcast %c1096_i32_22 : i32 to vector<512x128xi32>
      %56 = arith.cmpi slt, %54, %55 : vector<512x128xi32>
      %57 = arith.andi %51, %56 : vector<512x128xi1>
      %58 = arith.subf %47, %49 : vector<512x128xf32>
      %cst_23 = arith.constant 0.000000e+00 : f32
      %59 = vector.broadcast %cst_23 : f32 to vector<512x128xf32>
      %60 = arith.select %57, %58, %59 : vector<512x128xi1>, vector<512x128xf32>
      %61 = arith.mulf %60, %60 : vector<512x128xf32>
      %62 = arith.extui %57 : vector<512x128xi1> to vector<512x128xi32>
      %63 = arith.sitofp %62 : vector<512x128xi32> to vector<512x128xf32>
      %c0_24 = arith.constant 0 : index
      %c0_25 = arith.constant 0 : index
      %64 = vector.load %arg4[%c0_24, %c0_25] : memref<8x128xf32, #tpu.memory_space<vmem>>, vector<8x128xf32>
      %65 = vector.shape_cast %61 : vector<512x128xf32> to vector<64x8x128xf32>
      %cst_26 = arith.constant dense<0.000000e+00> : vector<8x128xf32>
      %66 = vector.multi_reduction <add>, %65, %cst_26 [0] : vector<64x8x128xf32> to vector<8x128xf32>
      %67 = arith.addf %64, %66 : vector<8x128xf32>
      %c0_27 = arith.constant 0 : index
      %c0_28 = arith.constant 0 : index
      %68 = vector.load %arg4[%c0_27, %c0_28] : memref<8x128xf32, #tpu.memory_space<vmem>>, vector<8x128xf32>
      tpu.vector_store %arg4[%c0_27, %c0_28], %67 {strides = array<i32>} : memref<8x128xf32, #tpu.memory_space<vmem>>, vector<8x128xf32>,
      %c0_29 = arith.constant 0 : index
      %c0_30 = arith.constant 0 : index
      %69 = vector.load %arg5[%c0_29, %c0_30] : memref<8x128xf32, #tpu.memory_space<vmem>>, vector<8x128xf32>
      %70 = vector.shape_cast %63 : vector<512x128xf32> to vector<64x8x128xf32>
      %cst_31 = arith.constant dense<0.000000e+00> : vector<8x128xf32>
      %71 = vector.multi_reduction <add>, %70, %cst_31 [0] : vector<64x8x128xf32> to vector<8x128xf32>
      %72 = arith.addf %69, %71 : vector<8x128xf32>
      %c0_32 = arith.constant 0 : index
      %c0_33 = arith.constant 0 : index
      %73 = vector.load %arg5[%c0_32, %c0_33] : memref<8x128xf32, #tpu.memory_space<vmem>>, vector<8x128xf32>
      tpu.vector_store %arg5[%c0_32, %c0_33], %72 {strides = array<i32>} : memref<8x128xf32, #tpu.memory_space<vmem>>, vector<8x128xf32>,
      %c2_i32_34 = arith.constant 2 : i32
    } else {
    }
    return
  }
  func.func @transform_0(%arg0: i32, %arg1: i32) -> (i32, i32) {
    %c2_i32 = arith.constant 2 : i32
    %0 = arith.muli %arg0, %c2_i32 : i32
    %1 = arith.addi %0, %arg1 : i32
    %c0_i32 = arith.constant 0 : i32
    %c0_i32_0 = arith.constant 0 : i32
    return %1, %c0_i32 : i32, i32
  }
  func.func @transform_1(%arg0: i32, %arg1: i32) -> (i32, i32) {
    %c2_i32 = arith.constant 2 : i32
    %0 = arith.muli %arg0, %c2_i32 : i32
    %1 = arith.addi %0, %arg1 : i32
    %c0_i32 = arith.constant 0 : i32
    %c0_i32_0 = arith.constant 0 : i32
    return %1, %c0_i32 : i32, i32
  }
  func.func @transform_2(%arg0: i32, %arg1: i32) -> (i32, i32) {
    %c0_i32 = arith.constant 0 : i32
    %c0_i32_0 = arith.constant 0 : i32
    return %arg0, %c0_i32 : i32, i32
  }
  func.func @transform_3(%arg0: i32, %arg1: i32) -> (i32, i32) {
    %c0_i32 = arith.constant 0 : i32
    %c0_i32_0 = arith.constant 0 : i32
    return %arg0, %c0_i32 : i32, i32
  }
}

</mosaic_0001>

<bundles_post_ra>
// kernel: tpu_custom_call.1
= control target key start
LH: loop header
LB: loop body
LE: loop exit
PB: predicated region body
PF: predicated region fallthrough
CT: control target
= control target key end

     0   :  { %9 = vsyncpa [#allocation3], 0  ;;  %s9054_s0 = inlined_call_operand.hbm [shape: f32[1096,128], index: 0, kind: input, shape index: {}]   ;;  %s9055_s1 = inlined_call_operand.hbm [shape: f32[1096,128], index: 1, kind: input, shape index: {}]   ;;  %s9056_s2 = inlined_call_operand.hbm [shape: f32[8,128], index: 2, kind: output, shape index: {0}]   ;;  %s9057_s3 = inlined_call_operand.hbm [shape: f32[8,128], index: 3, kind: output, shape index: {1}]  }
   0x1   :  { %11 = vsyncpa [#allocation3 + $0x1], 0 }
   0x2   :  { %12 = vsyncpa [#allocation6], 0 }
   0x3   :  { %14 = vsyncpa [#allocation6 + $0x1], 0 }
   0x4   :  { %15 = vsyncpa [#allocation4], 0 }
   0x5   :  { %16 = vsyncpa [#allocation9], 0  ;;  %s4304_s12 = smov 0   ;;  %s4306_s13 = smov 0  }
   0x6   :  { %s4308_s14 = smov 0   ;;  %s4310_s15 = smov 0  }
   0x7   :  { %s4312_s16 = smov 0   ;;  %s4314_s17 = smov 0  }
   0x8 LB: > { %s3460_s18 = sadd.s32 4294967295, %s4271_s17   ;;  %s31_s19 = sadd.s32 1, %s4267_s16  ;;  %s4271_s17 = sphi %s4314_s17, %s22_s17   ;;  %s4267_s16 = sphi %s4312_s16, %s9719_s16   ;;  %s4263_s15 = sphi %s4310_s15, %s9718_s15   ;;  %s4259_s14 = sphi %s4308_s14, %s9717_s14   ;;  %s4255_s13 = sphi %s4306_s13, %s9716_s13   ;;  %s4251_s12 = sphi %s4304_s12, %s9715_s12  }
   0x9   : > { %p32_p0 = scmp.ge.s32.totalorder %s31_s19, 2  ;;  %s45_s20 = sadd.s32 1, %s4259_s14 }
   0xa   : > { %p52_p1 = scmp.ne.s32.totalorder %s4259_s14, %s4255_s13  ;;  %p53_p2 = scmp.eq.s32.totalorder %s4271_s17, 0 }
   0xb   : > { %s9721_s19 = smov (%p32_p0, %s31_s19), 0  ;;  %p58_p4 = scmp.ne.s32.totalorder %s4255_s13, %s4251_s12 }
   0xc   : > { %p4340_p3 = por %p53_p2, %p52_p1  ;;  %s42_s22 = ssub.s32 %s4267_s16, %s9721_s19 }
   0xd   : > { %p59_p5 = scmp.eq.s32.totalorder %s3460_s18, 0  ;;  %p43_p6 = scmp.eq.s32.totalorder %s42_s22, 0 }
   0xe   : > { %p3462_p8 = scmp.ge.s32.totalorder %s4271_s17, 2 }
   0xf   : > { %p4349_p7 = por %p59_p5, %p58_p4 }
  0x10   : > { %s4354_s24 = scalar_select %p43_p6, %s4259_s14, %s45_s20  }
  0x11   : > { %160 = sbr.rel (%p3462_p8) target bundleno = 94 (0x5e), region = 16 }
  0x16   : > { %163 = sbr.rel (!%p4340_p3) target bundleno = 58 (0x3a), region = 20  ;;  %s164_s25 = sand.u32 (%p4340_p3), 1, %s4259_s14  }
  0x17   : > { %s3464_s26 = sshll.u32 (%p4340_p3), %s4267_s16, 7  ;;  %s3463_s27 = sshll.u32 (%p4340_p3), %s164_s25, 10 }
  0x18   : > { %s172_s28 = ssub.s32 (%p4340_p3), 137, %s3464_s26  ;;  %s4364_s5 = scalar_lea.sflag (%p4340_p3), [#allocation3], %s164_s25 }
  0x19   : > { %p173_p9 = scmp.lt.s32.totalorder (%p4340_p3), %s172_s28, 128  ;;  %s168_s6 = scalar_lea.vmem (%p4340_p3), [#allocation2], %s3463_s27 }
  0x1b   : > { %s9723_s28 = smov (!%p173_p9, %s172_s28), 128 }
  0x1c   : > { %s3465_s29 = sshll.u32 %s9723_s28, 3 }
  0x1d   : > { %s176_s30 = ssub.s32 1024, %s3465_s29 }
  0x1e   : > { %s177_s4 = sshll.u32 %s176_s30, 4 }
  0x1f   : > { %178 = vsyncadd %s4364_s5, %s177_s4  ;;  %p4367_p10 = scmp.ne.s32.totalorder %s3465_s29, 0  ;;  %s4002_s8 = sshll.u32 %s4267_s16, 10 }
  0x20   : > { %s181_s11 = scalar_lea.hbm %s9054_s0, %s4002_s8  ;;  %s4375_s12 = sshll.u32 %s168_s6, 4  ;;  %s186_s12 = int_to_ptr.vmem [resolvable:$true] %s4375_s12 }
  0x21   : > { %s183_s20 = sshll.u32 %s181_s11, 4  ;;  %s3469_s22 = sshll.u32 %s9723_s28, 7  ;;  %s4378_s20 = int_to_ptr.hbm [resolvable:$true] %s183_s20 }
  0x22   : > { %s4075_s25 = sshra.s32 %s4378_s20, 4  ;;  %s4077_s26 = sshrl.u32 %s3469_s22, 4  ;;  %s4076_s25 = int_to_ptr.hbm [resolvable:$true] %s4075_s25 }
  0x23   : > { %s4082_s27 = scalar_lea.hbm %s4076_s25, %s4077_s26  ;;  %s4086_s4 = scalar_lea.hbm %s9054_s0, 1096 }
  0x24   : > { %p4083_p11 = scmp.ne.s32.totalorder %s4076_s25, %s4082_s27  ;;  %p4088_p0 = scmp.lt.s32.totalorder %s4086_s4, %s4082_s27 }
  0x26   : > { %p4084_p12 = pnand %p4083_p11, %p4367_p10 }
  0x28   : > { %p4085_p13 = pneg %p4084_p12 }
  0x2a   : > { %p4090_p1 = pnand %p4088_p0, %p4085_p13 }
  0x2c   : > { %4093 = shalt.err (!%p4090_p1)
}
  0x2d   : > { %s4094_s6 = sshra.s32 %s186_s12, 4  ;;  %s4273_s9 = smov [#allocation2]   ;;  %s4095_s6 = int_to_ptr.vmem [resolvable:$true] %s4094_s6 }
  0x2e   : > { %s4101_s8 = scalar_lea.vmem %s4095_s6, %s4077_s26  ;;  %s4105_s10 = scalar_lea.vmem %s4273_s9, 2048 }
  0x2f   : > { %p4102_p2 = scmp.ne.s32.totalorder %s4095_s6, %s4101_s8  ;;  %p4107_p6 = scmp.lt.s32.totalorder %s4105_s10, %s4101_s8 }
  0x31   : > { %p4103_p4 = pnand %p4102_p2, %p4367_p10 }
  0x33   : > { %p4104_p5 = pneg %p4103_p4 }
  0x35   : > { %p4109_p8 = pnand %p4107_p6, %p4104_p5 }
  0x37   : > { %4112 = shalt.err (!%p4109_p8)
}
  0x38   : > { %s4274_s11 = smov 128   ;;  %s4275_s25 = smov 8  }
  0x39   : > { %191 = dma.hbm_to_vmem [thread:$0]  (%p4367_p10), %s4378_s20, %s3469_s22, %s186_s12, %s4364_s5, %s4274_s11, %s4274_s11, %s4275_s25  }
  0x3a PF: > { %194 = sbr.rel (!%p4340_p3) target bundleno = 94 (0x5e), region = 24  ;;  %s195_s26 = sand.u32 (%p4340_p3), 1, %s4259_s14  }
  0x3b   : > { %s3471_s27 = sshll.u32 (%p4340_p3), %s4267_s16, 7  ;;  %s3470_s29 = sshll.u32 (%p4340_p3), %s195_s26, 10 }
  0x3c   : > { %s203_s30 = ssub.s32 (%p4340_p3), 137, %s3471_s27  ;;  %s4408_s8 = scalar_lea.sflag (%p4340_p3), [#allocation6], %s195_s26 }
  0x3d   : > { %p204_p9 = scmp.lt.s32.totalorder (%p4340_p3), %s203_s30, 128  ;;  %s199_s28 = scalar_lea.vmem (%p4340_p3), [#allocation5], %s3470_s29 }
  0x3f   : > { %s9725_s30 = smov (!%p204_p9, %s203_s30), 128 }
  0x40   : > { %s3472_s4 = sshll.u32 %s9725_s30, 3 }
  0x41   : > { %s207_s6 = ssub.s32 1024, %s3472_s4 }
  0x42   : > { %s208_s7 = sshll.u32 %s207_s6, 4 }
  0x43   : > { %209 = vsyncadd %s4408_s8, %s208_s7  ;;  %p4411_p3 = scmp.ne.s32.totalorder %s3472_s4, 0  ;;  %s4003_s5 = sshll.u32 %s4267_s16, 10 }
  0x44   : > { %s212_s22 = scalar_lea.hbm %s9055_s1, %s4003_s5  ;;  %s4419_s9 = sshll.u32 %s199_s28, 4  ;;  %s217_s9 = int_to_ptr.vmem [resolvable:$true] %s4419_s9 }
  0x45   : > { %s214_s10 = sshll.u32 %s212_s22, 4  ;;  %s3476_s11 = sshll.u32 %s9725_s30, 7  ;;  %s4422_s10 = int_to_ptr.hbm [resolvable:$true] %s214_s10 }
  0x46   : > { %s4114_s25 = sshra.s32 %s4422_s10, 4  ;;  %s4116_s26 = sshrl.u32 %s3476_s11, 4  ;;  %s4115_s25 = int_to_ptr.hbm [resolvable:$true] %s4114_s25 }
  0x47   : > { %s4121_s27 = scalar_lea.hbm %s4115_s25, %s4116_s26  ;;  %s4125_s6 = scalar_lea.hbm %s9055_s1, 1096 }
  0x48   : > { %p4122_p10 = scmp.ne.s32.totalorder %s4115_s25, %s4121_s27  ;;  %p4127_p13 = scmp.lt.s32.totalorder %s4125_s6, %s4121_s27 }
  0x4a   : > { %p4123_p11 = pnand %p4122_p10, %p4411_p3 }
  0x4c   : > { %p4124_p12 = pneg %p4123_p11 }
  0x4e   : > { %p4129_p0 = pnand %p4127_p13, %p4124_p12 }
  0x50   : > { %4132 = shalt.err (!%p4129_p0)
}
  0x51   : > { %s4133_s7 = sshra.s32 %s217_s9, 4  ;;  %s4276_s5 = smov [#allocation5]   ;;  %s4134_s7 = int_to_ptr.vmem [resolvable:$true] %s4133_s7 }
  0x52   : > { %s4140_s28 = scalar_lea.vmem %s4134_s7, %s4116_s26  ;;  %s4144_s12 = scalar_lea.vmem %s4276_s5, 2048 }
  0x53   : > { %p4141_p1 = scmp.ne.s32.totalorder %s4134_s7, %s4140_s28  ;;  %p4146_p5 = scmp.lt.s32.totalorder %s4144_s12, %s4140_s28 }
  0x55   : > { %p4142_p2 = pnand %p4141_p1, %p4411_p3 }
  0x57   : > { %p4143_p4 = pneg %p4142_p2 }
  0x59   : > { %p4148_p6 = pnand %p4146_p5, %p4143_p4 }
  0x5b   : > { %4151 = shalt.err (!%p4148_p6)
}
  0x5c   : > { %s4277_s20 = smov 128   ;;  %s4278_s22 = smov 8  }
  0x5d   : > { %222 = dma.hbm_to_vmem [thread:$0]  (%p4411_p3), %s4422_s10, %s3476_s11, %s217_s9, %s4408_s8, %s4277_s20, %s4277_s20, %s4278_s22  }
  0x5e PF: > { %p3477_p8 = scmp.ge.s32.totalorder %s4271_s17, 1  ;;  %p224_p9 = scmp.lt.s32.totalorder %s4271_s17, 3 }
  0x60   : > { %p225_p10 = pnand %p3477_p8, %p224_p9 }
  0x61   : > { %s230_s25 = sand.u32 (!%p225_p10), 1, %s4255_s13  }
  0x62   : > { %228 = sbr.rel (%p225_p10) target bundleno = 746 (0x2ea), region = 28  ;;  %s3478_s26 = sshll.u32 (!%p225_p10), %s230_s25, 10 }
  0x63   : > { %s231_s27 = scalar_lea.sflag (!%p225_p10), [#allocation3], %s230_s25  ;;  %s4448_s29 = scalar_lea.vmem (!%p225_p10), [#allocation2], %s3478_s26 }
  0x67   : > { %4234 = dma.done.wait (%p4349_p7), %s231_s27, 16384  }
  0x68   : > { %4236 = vsyncadd (%p4349_p7), %s231_s27, 4294950912  ;;  %s241_s30 = scalar_lea.sflag [#allocation6], %s230_s25  ;;  %s4454_s8 = scalar_lea.vmem [#allocation5], %s3478_s26 }
  0x69   : > { %4238 = dma.done.wait (%p4349_p7), %s241_s30, 16384  }
  0x6a   : > { %4240 = vsyncadd (%p4349_p7), %s241_s30, 4294950912  ;;  %p3480_p3 = scmp.ne.s32.totalorder %s4263_s15, 0 }
  0x6c   : > { %285 = sbr.rel (%p3480_p3) target bundleno = 116 (0x74), region = 40 }
  0x71   : > { %v4279_v0 = vmov 0.0  }
  0x72   : > { %286 = vst [vmem:[#allocation7] sm:$0xff] %v4279_v0 }
  0x73   : > { %287 = vst [vmem:[#allocation8] sm:$0xff] %v4279_v0 }
  0x74 PF: > { %s4462_s21 = sshll.u32 %s4263_s15, 10 }
  0x75   : > { %s291_s9 = sadd.s32 1024, %s4462_s21 }
  0x76   : > { %p3482_p11 = scmp.gt.s32.totalorder %s291_s9, 1096 }
  0x78   : > { %295 = sbr.rel (%p3482_p11) target bundleno = 400 (0x190), region = 44 }
  0x7d   : > { %v296_v1 = vld [vmem:[%s4454_s8] sm:$0xff]  ;;  %v297_v2 = vld [vmem:[%s4454_s8 + $0x8] sm:$0xff]  ;;  %v298_v7 = vld [vmem:[%s4454_s8 + $0x10] sm:$0xff]  ;;  %v9058_v33 = vmov 0.0  }
  0x7e   : > { %v360_v3 = vld [vmem:[%s4448_s29] sm:$0xff]  ;;  %v361_v4 = vld [vmem:[%s4448_s29 + $0x8] sm:$0xff]  ;;  %v362_v8 = vld [vmem:[%s4448_s29 + $0x10] sm:$0xff]  ;;  %vm424_vm0 = vcmp.gt.f32.partialorder %v296_v1, 0.0  ;;  %vm425_vm1 = vcmp.gt.f32.partialorder %v297_v2, 0.0  ;;  %vm426_vm2 = vcmp.gt.f32.partialorder %v298_v7, 0.0 }
  0x7f   : > { %v488_v5 = vsub.f32 %v296_v1, %v360_v3  ;;  %v489_v6 = vsub.f32 %v297_v2, %v361_v4  ;;  %v299_v9 = vld [vmem:[%s4454_s8 + $0x18] sm:$0xff]  ;;  %v490_v11 = vsub.f32 %v298_v7, %v362_v8  ;;  %v300_v14 = vld [vmem:[%s4454_s8 + $0x20] sm:$0xff]  ;;  %v301_v17 = vld [vmem:[%s4454_s8 + $0x28] sm:$0xff]  ;;  %v3483_v34 = vsel %vm424_vm0, 1.0, %v9058_v33 }
  0x80   : > { %v363_v10 = vld [vmem:[%s4448_s29 + $0x18] sm:$0xff]  ;;  %v364_v15 = vld [vmem:[%s4448_s29 + $0x20] sm:$0xff]  ;;  %v365_v18 = vld [vmem:[%s4448_s29 + $0x28] sm:$0xff]  ;;  %vm427_vm3 = vcmp.gt.f32.partialorder %v299_v9, 0.0  ;;  %vm428_vm4 = vcmp.gt.f32.partialorder %v300_v14, 0.0  ;;  %vm429_vm5 = vcmp.gt.f32.partialorder %v301_v17, 0.0 }
  0x81   : > { %v552_v12 = vsel %vm424_vm0, %v488_v5, 0.0  ;;  %v553_v13 = vsel %vm425_vm1, %v489_v6, 0.0  ;;  %v491_v16 = vsub.f32 %v299_v9, %v363_v10  ;;  %v492_v21 = vsub.f32 %v300_v14, %v364_v15  ;;  %v4483_v23 = vld [vmem:[%s4454_s8 + $0x30] sm:$0xff]  ;;  %v4488_v27 = vld [vmem:[%s4454_s8 + $0x38] sm:$0xff]  ;;  %v4498_v36 = vld [vmem:[%s4454_s8 + $0x40] sm:$0xff] }
  0x82   : > { %v616_v19 = vmul.f32 %v552_v12, %v552_v12  ;;  %v617_v20 = vmul.f32 %v553_v13, %v553_v13  ;;  %v554_v22 = vsel %vm426_vm2, %v490_v11, 0.0  ;;  %v366_v24 = vld [vmem:[%s4448_s29 + $0x30] sm:$0xff]  ;;  %v493_v25 = vsub.f32 %v301_v17, %v365_v18  ;;  %v367_v28 = vld [vmem:[%s4448_s29 + $0x38] sm:$0xff]  ;;  %v368_v37 = vld [vmem:[%s4448_s29 + $0x40] sm:$0xff] }
  0x83   : > { %v555_v26 = vsel %vm427_vm3, %v491_v16, 0.0  ;;  %v618_v29 = vmul.f32 %v554_v22, %v554_v22  ;;  %v494_v31 = vsub.f32 %v4483_v23, %v366_v24  ;;  %v556_v32 = vsel %vm428_vm4, %v492_v21, 0.0  ;;  %v4507_v42 = vld [vmem:[%s4454_s8 + $0x48] sm:$0xff]  ;;  %v4517_v50 = vld [vmem:[%s4454_s8 + $0x50] sm:$0xff]  ;;  %v4522_v55 = vld [vmem:[%s4454_s8 + $0x58] sm:$0xff] }
  0x84   : > { %v809_v30 = vadd.f32 %v617_v20, %v616_v19  ;;  %v3484_v35 = vsel %vm425_vm1, 1.0, %v9058_v33  ;;  %vm430_vm6 = vcmp.gt.f32.partialorder %v4483_v23, 0.0  ;;  %v619_v38 = vmul.f32 %v555_v26, %v555_v26  ;;  %v369_v43 = vld [vmem:[%s4448_s29 + $0x48] sm:$0xff]  ;;  %v370_v51 = vld [vmem:[%s4448_s29 + $0x50] sm:$0xff]  ;;  %v4530_v59 = vld [vmem:[%s4454_s8 + $0x60] sm:$0xff] }
  0x85   : > { %v495_v39 = vsub.f32 %v4488_v27, %v367_v28  ;;  %v557_v40 = vsel %vm429_vm5, %v493_v25, 0.0  ;;  %v3485_v41 = vsel %vm426_vm2, 1.0, %v9058_v33  ;;  %vm431_vm7 = vcmp.gt.f32.partialorder %v4488_v27, 0.0  ;;  %v371_v60 = vld [vmem:[%s4448_s29 + $0x58] sm:$0xff]  ;;  %v4535_v0 = vld [vmem:[%s4454_s8 + $0x68] sm:$0xff]  ;;  %v4544_v4 = vld [vmem:[%s4454_s8 + $0x70] sm:$0xff] }
  0x86   : > { %v620_v44 = vmul.f32 %v556_v32, %v556_v32  ;;  %v810_v45 = vadd.f32 %v809_v30, %v618_v29  ;;  %v875_v46 = vadd.f32 %v3484_v35, %v3483_v34  ;;  %v496_v47 = vsub.f32 %v4498_v36, %v368_v37  ;;  %v372_v5 = vld [vmem:[%s4448_s29 + $0x60] sm:$0xff]  ;;  %v4549_v9 = vld [vmem:[%s4454_s8 + $0x78] sm:$0xff]  ;;  %v373_v14 = vld [vmem:[%s4448_s29 + $0x68] sm:$0xff] }
  0x87   : > { %v558_v48 = vsel %vm430_vm6, %v494_v31, 0.0  ;;  %v3486_v49 = vsel %vm427_vm3, 1.0, %v9058_v33  ;;  %vm432_vm8 = vcmp.gt.f32.partialorder %v4498_v36, 0.0  ;;  %v621_v52 = vmul.f32 %v557_v40, %v557_v40  ;;  %v4559_v13 = vld [vmem:[%s4454_s8 + $0x80] sm:$0xff]  ;;  %v4564_v18 = vld [vmem:[%s4454_s8 + $0x88] sm:$0xff]  ;;  %v374_v22 = vld [vmem:[%s4448_s29 + $0x70] sm:$0xff] }
  0x88   : > { %v811_v53 = vadd.f32 %v810_v45, %v619_v38  ;;  %v876_v54 = vadd.f32 %v3485_v41, %v875_v46  ;;  %v497_v56 = vsub.f32 %v4507_v42, %v369_v43  ;;  %v559_v57 = vsel %vm431_vm7, %v495_v39, 0.0  ;;  %v4575_v23 = vld [vmem:[%s4448_s29 + $0x78] sm:$0xff]  ;;  %v4579_v28 = vld [vmem:[%s4454_s8 + $0x90] sm:$0xff]  ;;  %v4582_v29 = vld [vmem:[%s4448_s29 + $0x80] sm:$0xff] }
  0x89   : > { %v3487_v58 = vsel %vm428_vm4, 1.0, %v9058_v33  ;;  %vm433_vm9 = vcmp.gt.f32.partialorder %v4507_v42, 0.0  ;;  %v622_v61 = vmul.f32 %v558_v48, %v558_v48  ;;  %vm434_vm10 = vcmp.gt.f32.partialorder %v4517_v50, 0.0  ;;  %v4592_v32 = vld [vmem:[%s4448_s29 + $0x88] sm:$0xff]  ;;  %v4595_v34 = vld [vmem:[%s4448_s29 + $0x90] sm:$0xff]  ;;  %v4599_v39 = vld [vmem:[%s4454_s8 + $0x98] sm:$0xff] }
  0x8a   : > { %v812_v62 = vadd.f32 %v811_v53, %v620_v44  ;;  %v877_v63 = vadd.f32 %v3486_v49, %v876_v54  ;;  %v498_v1 = vsub.f32 %v4517_v50, %v370_v51  ;;  %v560_v2 = vsel %vm432_vm8, %v496_v47, 0.0  ;;  %v4602_v40 = vld [vmem:[%s4454_s8 + $0xa0] sm:$0xff]  ;;  %v4605_v36 = vld [vmem:[%s4448_s29 + $0x98] sm:$0xff]  ;;  %v4616_v46 = vld [vmem:[%s4454_s8 + $0xa8] sm:$0xff] }
  0x8b   : > { %v3488_v3 = vsel %vm429_vm5, 1.0, %v9058_v33  ;;  %vm435_vm11 = vcmp.gt.f32.partialorder %v4522_v55, 0.0  ;;  %v623_v6 = vmul.f32 %v559_v57, %v559_v57  ;;  %vm436_vm12 = vcmp.gt.f32.partialorder %v4530_v59, 0.0  ;;  %v4619_v47 = vld [vmem:[%s4448_s29 + $0xa0] sm:$0xff]  ;;  %v4622_v48 = vld [vmem:[%s4448_s29 + $0xa8] sm:$0xff]  ;;  %v4628_v42 = vld [vmem:[%s4454_s8 + $0xb0] sm:$0xff] }
  0x8c   : > { %v813_v7 = vadd.f32 %v812_v62, %v621_v52  ;;  %v878_v8 = vadd.f32 %v3487_v58, %v877_v63  ;;  %v499_v10 = vsub.f32 %v4522_v55, %v371_v60  ;;  %v561_v11 = vsel %vm433_vm9, %v497_v56, 0.0  ;;  %v4631_v54 = vld [vmem:[%s4454_s8 + $0xb8] sm:$0xff]  ;;  %v4634_v56 = vld [vmem:[%s4448_s29 + $0xb0] sm:$0xff]  ;;  %v4646_v62 = vld [vmem:[%s4454_s8 + $0xc0] sm:$0xff] }
  0x8d   : > { %v3489_v12 = vsel %vm430_vm6, 1.0, %v9058_v33  ;;  %vm437_vm13 = vcmp.gt.f32.partialorder %v4535_v0, 0.0  ;;  %v624_v15 = vmul.f32 %v560_v2, %v560_v2  ;;  %vm438_vm14 = vcmp.gt.f32.partialorder %v4544_v4, 0.0  ;;  %v4649_v63 = vld [vmem:[%s4448_s29 + $0xb8] sm:$0xff]  ;;  %v4658_v50 = vld [vmem:[%s4454_s8 + $0xc8] sm:$0xff]  ;;  %v4688_v55 = vld [vmem:[%s4454_s8 + $0xe0] sm:$0xff] }
  0x8e   : > { %v814_v16 = vadd.f32 %v813_v7, %v622_v61  ;;  %v879_v17 = vadd.f32 %v3488_v3, %v878_v8  ;;  %v500_v19 = vsub.f32 %v4530_v59, %v372_v5  ;;  %v562_v20 = vsel %vm434_vm10, %v498_v1, 0.0  ;;  %v4652_v1 = vld [vmem:[%s4448_s29 + $0xc0] sm:$0xff]  ;;  %v4661_v7 = vld [vmem:[%s4454_s8 + $0xd0] sm:$0xff]  ;;  %v4664_v8 = vld [vmem:[%s4448_s29 + $0xc8] sm:$0xff] }
  0x8f   : > { %v3490_v21 = vsel %vm431_vm7, 1.0, %v9058_v33  ;;  %vm439_vm15 = vcmp.gt.f32.partialorder %v4549_v9, 0.0  ;;  %v625_v24 = vmul.f32 %v561_v11, %v561_v11  ;;  %vm440_vm0 = vcmp.gt.f32.partialorder %v4559_v13, 0.0  ;;  %v4718_v59 = vld [vmem:[%s4454_s8 + $0xf8] sm:$0xff] }
  0x90   : > { %v815_v25 = vadd.f32 %v814_v16, %v623_v6  ;;  %v880_v26 = vadd.f32 %v3489_v12, %v879_v17  ;;  %v501_v27 = vsub.f32 %v4535_v0, %v373_v14  ;;  %v563_v30 = vsel %vm435_vm11, %v499_v10, 0.0  ;;  %v4679_v16 = vld [vmem:[%s4448_s29 + $0xd0] sm:$0xff]  ;;  %v4682_v17 = vld [vmem:[%s4448_s29 + $0xd8] sm:$0xff] }
  0x91   : > { %v3491_v31 = vsel %vm432_vm8, 1.0, %v9058_v33  ;;  %vm441_vm1 = vcmp.gt.f32.partialorder %v4564_v18, 0.0  ;;  %v626_v35 = vmul.f32 %v562_v20, %v562_v20  ;;  %v502_v41 = vsub.f32 %v4544_v4, %v374_v22  ;;  %v4748_v0 = vld [vmem:[%s4454_s8 + $0x110] sm:$0xff]  ;;  %v4778_v4 = vld [vmem:[%s4454_s8 + $0x128] sm:$0xff] }
  0x92   : > { %v816_v37 = vadd.f32 %v815_v25, %v624_v15  ;;  %v881_v38 = vadd.f32 %v3490_v21, %v880_v26  ;;  %v503_v43 = vsub.f32 %v4549_v9, %v4575_v23  ;;  %v564_v44 = vsel %vm436_vm12, %v500_v19, 0.0  ;;  %v4676_v15 = vld [vmem:[%s4454_s8 + $0xd8] sm:$0xff]  ;;  %v4691_v23 = vld [vmem:[%s4454_s8 + $0xe8] sm:$0xff]  ;;  %9169 = vst [vmem:[#allocation17_spill] sm:$0xff] %v4748_v0  ;;  %v4811_v9 = vld [vmem:[%s4454_s8 + $0x140] sm:$0xff] }
  0x93   : > { %v3492_v45 = vsel %vm433_vm9, 1.0, %v9058_v33  ;;  %vm442_vm2 = vcmp.gt.f32.partialorder %v4579_v28, 0.0  ;;  %v504_v49 = vsub.f32 %v4559_v13, %v4582_v29  ;;  %v627_v51 = vmul.f32 %v563_v30, %v563_v30  ;;  %v4706_v30 = vld [vmem:[%s4454_s8 + $0xf0] sm:$0xff]  ;;  %9175 = vst [vmem:[#allocation23_spill] sm:$0xff] %v4778_v4  ;;  %v4817_v19 = vld [vmem:[%s4448_s29 + $0x140] sm:$0xff]  ;;  %v4844_v13 = vld [vmem:[%s4454_s8 + $0x158] sm:$0xff] }
  0x94   : > { %v817_v52 = vadd.f32 %v816_v37, %v625_v24  ;;  %v882_v53 = vadd.f32 %v3491_v31, %v881_v38  ;;  %v505_v57 = vsub.f32 %v4564_v18, %v4592_v32  ;;  %v506_v58 = vsub.f32 %v4579_v28, %v4595_v34  ;;  %v4694_v24 = vld [vmem:[%s4448_s29 + $0xe0] sm:$0xff]  ;;  %v4709_v31 = vld [vmem:[%s4448_s29 + $0xe8] sm:$0xff]  ;;  %v4712_v32 = vld [vmem:[%s4448_s29 + $0xf0] sm:$0xff]  ;;  %9180 = vst [vmem:[#allocation28_spill] sm:$0xff] %v4811_v9 }
  0x95   : > { %v565_v60 = vsel %vm437_vm13, %v501_v27, 0.0  ;;  %v3493_v61 = vsel %vm434_vm10, 1.0, %v9058_v33  ;;  %vm443_vm3 = vcmp.gt.f32.partialorder %v4599_v39, 0.0  ;;  %v507_v2 = vsub.f32 %v4599_v39, %v4605_v36  ;;  %9181 = vst [vmem:[#allocation29_spill] sm:$0xff] %v4817_v19  ;;  %v4847_v34 = vld [vmem:[%s4454_s8 + $0x160] sm:$0xff]  ;;  %v4877_v18 = vld [vmem:[%s4454_s8 + $0x170] sm:$0xff] }
  0x96   : > { %v628_v3 = vmul.f32 %v564_v44, %v564_v44  ;;  %v818_v5 = vadd.f32 %v817_v52, %v626_v35  ;;  %v883_v6 = vadd.f32 %v3492_v45, %v882_v53  ;;  %v566_v12 = vsel %vm438_vm14, %v502_v41, 0.0  ;;  %v4724_v44 = vld [vmem:[%s4448_s29 + $0xf8] sm:$0xff]  ;;  %v4781_v45 = vld [vmem:[%s4454_s8 + $0x130] sm:$0xff]  ;;  %v4784_v35 = vld [vmem:[%s4448_s29 + $0x128] sm:$0xff]  ;;  %9184 = vst [vmem:[#allocation32_spill] sm:$0xff] %v4847_v34 }
  0x97   : > { %v3494_v14 = vsel %vm435_vm11, 1.0, %v9058_v33  ;;  %vm444_vm4 = vcmp.gt.f32.partialorder %v4602_v40, 0.0  ;;  %v629_v20 = vmul.f32 %v565_v60, %v565_v60  ;;  %v567_v29 = vsel %vm439_vm15, %v503_v43, 0.0  ;;  %v4721_v43 = vld [vmem:[%s4454_s8 + $0x100] sm:$0xff]  ;;  %9166 = vst [vmem:[#allocation14_spill] sm:$0xff] %v4724_v44  ;;  %v4736_v60 = vld [vmem:[%s4454_s8 + $0x108] sm:$0xff] }
  0x98   : > { %v819_v21 = vadd.f32 %v818_v5, %v627_v51  ;;  %v884_v22 = vadd.f32 %v3493_v61, %v883_v6  ;;  %v3495_v27 = vsel %vm436_vm12, 1.0, %v9058_v33  ;;  %vm445_vm5 = vcmp.gt.f32.partialorder %v4616_v46, 0.0  ;;  %v4739_v61 = vld [vmem:[%s4448_s29 + $0x100] sm:$0xff]  ;;  %9176 = vst [vmem:[#allocation24_spill] sm:$0xff] %v4784_v35  ;;  %v4814_v51 = vld [vmem:[%s4454_s8 + $0x148] sm:$0xff]  ;;  %v4883_v35 = vld [vmem:[%s4448_s29 + $0x170] sm:$0xff] }
  0x99   : > { %v630_v37 = vmul.f32 %v566_v12, %v566_v12  ;;  %v568_v52 = vsel %vm440_vm0, %v504_v49, 0.0  ;;  %v3496_v53 = vsel %vm437_vm13, 1.0, %v9058_v33  ;;  %9167 = vst [vmem:[#allocation15_spill] sm:$0xff] %v4739_v61  ;;  %vm446_vm6 = vcmp.gt.f32.partialorder %v4628_v42, 0.0  ;;  %v4868_v36 = vld [vmem:[%s4448_s29 + $0x160] sm:$0xff]  ;;  %v4910_v28 = vld [vmem:[%s4454_s8 + $0x188] sm:$0xff] }
  0x9a   : > { %v820_v38 = vadd.f32 %v819_v21, %v628_v3  ;;  %v885_v41 = vadd.f32 %v3494_v14, %v884_v22  ;;  %v4742_v3 = vld [vmem:[%s4448_s29 + $0x108] sm:$0xff]  ;;  %v631_v6 = vmul.f32 %v567_v29, %v567_v29  ;;  %v4751_v14 = vld [vmem:[%s4454_s8 + $0x118] sm:$0xff]  ;;  %v4754_v21 = vld [vmem:[%s4448_s29 + $0x110] sm:$0xff]  ;;  %v569_v29 = vsel %vm441_vm1, %v505_v57, 0.0  ;;  %9189 = vst [vmem:[#allocation35_spill] sm:$0xff] %v4868_v36 }
  0x9b   : > { %9168 = vst [vmem:[#allocation16_spill] sm:$0xff] %v4742_v3  ;;  %vm447_vm7 = vcmp.gt.f32.partialorder %v4631_v54, 0.0  ;;  %v632_v22 = vmul.f32 %v568_v52, %v568_v52  ;;  %v3498_v52 = vsel %vm439_vm15, 1.0, %v9058_v33  ;;  %vm448_vm8 = vcmp.gt.f32.partialorder %v4646_v62, 0.0  ;;  %v4937_v19 = vld [vmem:[%s4448_s29 + $0x198] sm:$0xff]  ;;  %v4946_v39 = vld [vmem:[%s4454_s8 + $0x1a8] sm:$0xff] }
  0x9c   : > { %v821_v49 = vadd.f32 %v820_v38, %v629_v20  ;;  %v886_v12 = vadd.f32 %v3495_v27, %v885_v41  ;;  %9170 = vst [vmem:[#allocation18_spill] sm:$0xff] %v4751_v14  ;;  %v3497_v20 = vsel %vm438_vm14, 1.0, %v9058_v33  ;;  %v4766_v27 = vld [vmem:[%s4454_s8 + $0x120] sm:$0xff]  ;;  %v4769_v38 = vld [vmem:[%s4448_s29 + $0x118] sm:$0xff]  ;;  %v633_v25 = vmul.f32 %v569_v29, %v569_v29  ;;  %v4832_v29 = vld [vmem:[%s4454_s8 + $0x150] sm:$0xff] }
  0x9d   : > { %9171 = vst [vmem:[#allocation19_spill] sm:$0xff] %v4754_v21  ;;  %v4772_v41 = vld [vmem:[%s4448_s29 + $0x120] sm:$0xff]  ;;  %vm449_vm9 = vcmp.gt.f32.partialorder %v4658_v50, 0.0  ;;  %vm450_vm10 = vcmp.gt.f32.partialorder %v4661_v7, 0.0  ;;  %vm451_vm11 = vcmp.gt.f32.partialorder %v4676_v15, 0.0  ;;  %vm452_vm12 = vcmp.gt.f32.partialorder %v4688_v55, 0.0 }
  0x9e   : > { %9172 = vst [vmem:[#allocation20_spill] sm:$0xff] %v4766_v27  ;;  %v822_v57 = vadd.f32 %v821_v49, %v630_v37  ;;  %v887_v5 = vadd.f32 %v3496_v53, %v886_v12  ;;  %v570_v37 = vsel %vm442_vm2, %v506_v58, 0.0  ;;  %v4799_v53 = vld [vmem:[%s4454_s8 + $0x138] sm:$0xff]  ;;  %v4802_v49 = vld [vmem:[%s4448_s29 + $0x130] sm:$0xff]  ;;  %v4904_v21 = vld [vmem:[%s4448_s29 + $0x180] sm:$0xff]  ;;  %vm453_vm13 = vcmp.gt.f32.partialorder %v4691_v23, 0.0 }
  0x9f   : > { %9173 = vst [vmem:[#allocation21_spill] sm:$0xff] %v4769_v38  ;;  %v4805_v12 = vld [vmem:[%s4448_s29 + $0x138] sm:$0xff]  ;;  %v634_v10 = vmul.f32 %v570_v37, %v570_v37  ;;  %v9186_v37 = vsub.f32 %v4602_v40, %v4619_v47  ;;  %v4949_v36 = vld [vmem:[%s4448_s29 + $0x1a0] sm:$0xff]  ;;  %vm454_vm14 = vcmp.gt.f32.partialorder %v4706_v30, 0.0  ;;  %vm455_vm15 = vcmp.gt.f32.partialorder %v4718_v59, 0.0  ;;  %v5015_v44 = vld [vmem:[%s4454_s8 + $0x1d0] sm:$0xff] }
  0xa0   : > { %9174 = vst [vmem:[#allocation22_spill] sm:$0xff] %v4772_v41  ;;  %v823_v58 = vadd.f32 %v822_v57, %v631_v6  ;;  %v888_v26 = vadd.f32 %v3497_v20, %v887_v5  ;;  %v571_v5 = vsel %vm443_vm3, %v507_v2, 0.0  ;;  %v3499_v6 = vsel %vm440_vm0, 1.0, %v9058_v33  ;;  %v4835_v20 = vld [vmem:[%s4448_s29 + $0x148] sm:$0xff]  ;;  %v4838_v57 = vld [vmem:[%s4448_s29 + $0x150] sm:$0xff]  ;;  %v4850_v33 = vld [vmem:[%s4448_s29 + $0x158] sm:$0xff] }
  0xa1   : > { %9177 = vst [vmem:[#allocation25_spill] sm:$0xff] %v4799_v53  ;;  %v4871_v41 = vld [vmem:[%s4448_s29 + $0x168] sm:$0xff]  ;;  %v635_v38 = vmul.f32 %v571_v5, %v571_v5  ;;  %v9192_v5 = vsub.f32 %v4616_v46, %v4622_v48  ;;  %vm9093_vm0 = vcmp.gt.f32.partialorder %v4721_v43, 0.0 }
  0xa2   : > { %9178 = vst [vmem:[#allocation26_spill] sm:$0xff] %v4802_v49  ;;  %v824_v2 = vadd.f32 %v823_v58, %v632_v22  ;;  %v889_v11 = vadd.f32 %v3498_v52, %v888_v26  ;;  %v572_v26 = vsel %vm444_vm4, %v9186_v37, 0.0  ;;  %v9187_v22 = vmov 0.0   ;;  %v4865_v58 = vld [vmem:[%s4454_s8 + $0x168] sm:$0xff]  ;;  %v4880_v49 = vld [vmem:[%s4454_s8 + $0x178] sm:$0xff] }
  0xa3   : > { %9179 = vst [vmem:[#allocation27_spill] sm:$0xff] %v4805_v12  ;;  %v3500_v52 = vsel %vm441_vm1, 1.0, %v9187_v22  ;;  %v636_v3 = vmul.f32 %v572_v26, %v572_v26  ;;  %v9198_v26 = vsub.f32 %v4628_v42, %v4634_v56  ;;  %vm9095_vm1 = vcmp.gt.f32.partialorder %v4736_v60, 0.0  ;;  %v5051_v14 = vld [vmem:[%s4454_s8 + $0x1e8] sm:$0xff] }
  0xa4   : > { %9182 = vst [vmem:[#allocation30_spill] sm:$0xff] %v4835_v20  ;;  %v825_v37 = vadd.f32 %v824_v2, %v633_v25  ;;  %v890_v12 = vadd.f32 %v3499_v6, %v889_v11  ;;  %v573_v11 = vsel %vm445_vm5, %v9192_v5, 0.0  ;;  %v3501_v25 = vsel %vm442_vm2, 1.0, %v9187_v22  ;;  %v4898_v6 = vld [vmem:[%s4454_s8 + $0x180] sm:$0xff]  ;;  %v4901_v2 = vld [vmem:[%s4448_s29 + $0x178] sm:$0xff]  ;;  %v4916_v20 = vld [vmem:[%s4448_s29 + $0x188] sm:$0xff] }
  0xa5   : > { %9183 = vst [vmem:[#allocation31_spill] sm:$0xff] %v4838_v57  ;;  %v4913_v57 = vld [vmem:[%s4454_s8 + $0x190] sm:$0xff]  ;;  %v637_v61 = vmul.f32 %v573_v11, %v573_v11  ;;  %v3503_v11 = vsel %vm444_vm4, 1.0, %v9187_v22  ;;  %vm9096_vm2 = vcmp.gt.f32.partialorder %v4748_v0, 0.0  ;;  %vm470_vm4 = vcmp.gt.f32.partialorder %v4877_v18, 0.0 }
  0xa6   : > { %9185 = vst [vmem:[#allocation33_spill] sm:$0xff] %v4850_v33  ;;  %v826_v5 = vadd.f32 %v825_v37, %v634_v10  ;;  %v891_v47 = vadd.f32 %v3500_v52, %v890_v12  ;;  %v574_v10 = vsel %vm446_vm6, %v9198_v26, 0.0  ;;  %v3502_v12 = vsel %vm443_vm3, 1.0, %v9187_v22  ;;  %v4931_v52 = vld [vmem:[%s4454_s8 + $0x198] sm:$0xff]  ;;  %v4934_v37 = vld [vmem:[%s4448_s29 + $0x190] sm:$0xff] }
  0xa7   : > { %9188 = vst [vmem:[#allocation34_spill] sm:$0xff] %v4865_v58  ;;  %v638_v40 = vmul.f32 %v574_v10, %v574_v10  ;;  %v4979_v33 = vld [vmem:[%s4454_s8 + $0x1b8] sm:$0xff]  ;;  %v3504_v10 = vsel %vm445_vm5, 1.0, %v9187_v22  ;;  %vm9101_vm5 = vcmp.gt.f32.partialorder %v4781_v45, 0.0  ;;  %vm9255_vm3 = vcmp.gt.f32.partialorder %v4814_v51, 0.0 }
  0xa8   : > { %9190 = vst [vmem:[#allocation36_spill] sm:$0xff] %v4871_v41  ;;  %v827_v26 = vadd.f32 %v826_v5, %v635_v38  ;;  %v892_v48 = vadd.f32 %v3501_v25, %v891_v47  ;;  %v4943_v41 = vld [vmem:[%s4454_s8 + $0x1a0] sm:$0xff]  ;;  %v9203_v38 = vsub.f32 %v4631_v54, %v4649_v63  ;;  %v4965_v25 = vld [vmem:[%s4454_s8 + $0x1b0] sm:$0xff]  ;;  %v4968_v5 = vld [vmem:[%s4448_s29 + $0x1a8] sm:$0xff] }
  0xa9   : > { %9191 = vst [vmem:[#allocation37_spill] sm:$0xff] %v4883_v35  ;;  %v4971_v35 = vld [vmem:[%s4448_s29 + $0x1b0] sm:$0xff]  ;;  %v9234_v54 = vld [vmem:[#allocation21_spill] sm:$0xff] }
  0xaa   : > { %9193 = vst [vmem:[#allocation38_spill] sm:$0xff] %v4898_v6  ;;  %v575_v47 = vsel %vm447_vm7, %v9203_v38, 0.0  ;;  %v828_v38 = vadd.f32 %v827_v26, %v636_v3  ;;  %v893_v56 = vadd.f32 %v3502_v12, %v892_v48  ;;  %v9208_v3 = vsub.f32 %v4646_v62, %v4652_v1  ;;  %v5001_v12 = vld [vmem:[%s4454_s8 + $0x1c8] sm:$0xff]  ;;  %v5004_v26 = vld [vmem:[%s4448_s29 + $0x1c0] sm:$0xff]  ;;  %v9225_v62 = vld [vmem:[#allocation14_spill] sm:$0xff] }
  0xab   : > { %9194 = vst [vmem:[#allocation39_spill] sm:$0xff] %v4901_v2  ;;  %v4985_v2 = vld [vmem:[%s4448_s29 + $0x1b8] sm:$0xff]  ;;  %v639_v46 = vmul.f32 %v575_v47, %v575_v47  ;;  %v3505_v47 = vsel %vm446_vm6, 1.0, %v9187_v22  ;;  %vm475_vm6 = vcmp.gt.f32.partialorder %v4931_v52, 0.0 }
  0xac   : > { %9195 = vst [vmem:[#allocation40_spill] sm:$0xff] %v4904_v21  ;;  %v4982_v21 = vld [vmem:[%s4454_s8 + $0x1c0] sm:$0xff]  ;;  %v576_v48 = vsel %vm448_vm8, %v9208_v3, 0.0  ;;  %v829_v3 = vadd.f32 %v828_v38, %v637_v61  ;;  %v894_v63 = vadd.f32 %v3503_v11, %v893_v56  ;;  %v9214_v61 = vsub.f32 %v4658_v50, %v4664_v8  ;;  %v5040_v38 = vld [vmem:[%s4448_s29 + $0x1d8] sm:$0xff] }
  0xad   : > { %9196 = vst [vmem:[#allocation41_spill] sm:$0xff] %v4910_v28  ;;  %v5037_v11 = vld [vmem:[%s4454_s8 + $0x1e0] sm:$0xff]  ;;  %v640_v42 = vmul.f32 %v576_v48, %v576_v48  ;;  %v9218_v8 = vsub.f32 %v4661_v7, %v4679_v16  ;;  %v5073_v48 = vld [vmem:[%s4454_s8 + $0x1f8] sm:$0xff]  ;;  %v9224_v50 = vsub.f32 %v4706_v30, %v4712_v32 }
  0xae   : > { %9197 = vst [vmem:[#allocation42_spill] sm:$0xff] %v4916_v20  ;;  %v5007_v20 = vld [vmem:[%s4448_s29 + $0x1c8] sm:$0xff]  ;;  %v577_v56 = vsel %vm449_vm9, %v9214_v61, 0.0  ;;  %v830_v61 = vadd.f32 %v829_v3, %v638_v40  ;;  %v895_v1 = vadd.f32 %v3504_v10, %v894_v63  ;;  %v3506_v40 = vsel %vm447_vm7, 1.0, %v9187_v22  ;;  %v5076_v10 = vld [vmem:[%s4448_s29 + $0x1f0] sm:$0xff]  ;;  %v5079_v3 = vld [vmem:[%s4448_s29 + $0x1f8] sm:$0xff] }
  0xaf   : > { %9199 = vst [vmem:[#allocation43_spill] sm:$0xff] %v4934_v37  ;;  %v5021_v37 = vld [vmem:[%s4448_s29 + $0x1d0] sm:$0xff]  ;;  %v578_v63 = vsel %vm450_vm10, %v9218_v8, 0.0  ;;  %v641_v8 = vmul.f32 %v577_v56, %v577_v56  ;;  %v3507_v56 = vsel %vm448_vm8, 1.0, %v9187_v22  ;;  %vm474_vm8 = vcmp.gt.f32.partialorder %v4913_v57, 0.0  ;;  %v9229_v32 = vld [vmem:[#allocation16_spill] sm:$0xff] }
  0xb0   : > { %9200 = vst [vmem:[#allocation44_spill] sm:$0xff] %v4937_v19  ;;  %v5018_v19 = vld [vmem:[%s4454_s8 + $0x1d8] sm:$0xff]  ;;  %v831_v9 = vadd.f32 %v830_v61, %v639_v46  ;;  %v896_v53 = vadd.f32 %v3505_v47, %v895_v1  ;;  %v642_v46 = vmul.f32 %v578_v63, %v578_v63  ;;  %v3508_v63 = vsel %vm449_vm9, 1.0, %v9187_v22 }
  0xb1   : > { %9201 = vst [vmem:[#allocation45_spill] sm:$0xff] %v4943_v41  ;;  %v9227_v1 = vld [vmem:[#allocation15_spill] sm:$0xff]  ;;  %vm478_vm9 = vcmp.gt.f32.partialorder %v4965_v25, 0.0  ;;  %vm479_vm7 = vcmp.gt.f32.partialorder %v4979_v33, 0.0 }
  0xb2   : > { %9202 = vst [vmem:[#allocation46_spill] sm:$0xff] %v4949_v36  ;;  %v5043_v36 = vld [vmem:[%s4448_s29 + $0x1e0] sm:$0xff]  ;;  %v832_v47 = vadd.f32 %v831_v9, %v640_v42  ;;  %v897_v61 = vadd.f32 %v3506_v40, %v896_v53  ;;  %v9223_v53 = vsub.f32 %v4691_v23, %v4709_v31  ;;  %v9231_v7 = vld [vmem:[#allocation19_spill] sm:$0xff] }
  0xb3   : > { %9204 = vst [vmem:[#allocation47_spill] sm:$0xff] %v4968_v5  ;;  %v5057_v5 = vld [vmem:[%s4448_s29 + $0x1e8] sm:$0xff]  ;;  %v9270_v23 = vld [vmem:[#allocation39_spill] sm:$0xff] }
  0xb4   : > { %9205 = vst [vmem:[#allocation48_spill] sm:$0xff] %v4971_v35  ;;  %v5054_v35 = vld [vmem:[%s4454_s8 + $0x1f0] sm:$0xff]  ;;  %v581_v9 = vsel %vm453_vm13, %v9223_v53, 0.0  ;;  %v833_v42 = vadd.f32 %v832_v47, %v641_v8  ;;  %v898_v40 = vadd.f32 %v3507_v56, %v897_v61  ;;  %v9228_v53 = vsub.f32 %v4721_v43, %v9227_v1 }
  0xb5   : > { %9206 = vst [vmem:[#allocation49_spill] sm:$0xff] %v4982_v21  ;;  %v3509_v8 = vsel %vm450_vm10, 1.0, %v9187_v22  ;;  %v9230_v56 = vsub.f32 %v4736_v60, %v9229_v32 }
  0xb6   : > { %9207 = vst [vmem:[#allocation50_spill] sm:$0xff] %v4985_v2  ;;  %v834_v61 = vadd.f32 %v833_v42, %v642_v46  ;;  %v3510_v46 = vsel %vm451_vm11, 1.0, %v9187_v22 }
  0xb7   : > { %9209 = vst [vmem:[#allocation51_spill] sm:$0xff] %v5001_v12  ;;  %v585_v47 = vsel %vm9095_vm1, %v9230_v56, 0.0  ;;  %vm9239_vm1 = vcmp.gt.f32.partialorder %v4766_v27, 0.0  ;;  %v9281_v30 = vld [vmem:[#allocation44_spill] sm:$0xff] }
  0xb8   : > { %9210 = vst [vmem:[#allocation52_spill] sm:$0xff] %v5004_v26  ;;  %v9221_v26 = vsub.f32 %v4676_v15, %v4682_v17  ;;  %v9226_v17 = vsub.f32 %v4718_v59, %v9225_v62  ;;  %v9232_v62 = vsub.f32 %v4748_v0, %v9231_v7  ;;  %v9243_v15 = vld [vmem:[#allocation26_spill] sm:$0xff]  ;;  %v9249_v0 = vld [vmem:[#allocation28_spill] sm:$0xff] }
  0xb9   : > { %9211 = vst [vmem:[#allocation53_spill] sm:$0xff] %v5007_v20  ;;  %v9244_v7 = vsub.f32 %v4781_v45, %v9243_v15  ;;  %v9256_v15 = vld [vmem:[#allocation31_spill] sm:$0xff] }
  0xba   : > { %9212 = vst [vmem:[#allocation54_spill] sm:$0xff] %v5015_v44  ;;  %v579_v2 = vsel %vm451_vm11, %v9221_v26, 0.0  ;;  %v9222_v26 = vsub.f32 %v4688_v55, %v4694_v24  ;;  %v583_v31 = vsel %vm455_vm15, %v9226_v17, 0.0  ;;  %v899_v17 = vadd.f32 %v3508_v63, %v898_v40 }
  0xbb   : > { %9213 = vst [vmem:[#allocation55_spill] sm:$0xff] %v5018_v19  ;;  %v643_v24 = vmul.f32 %v579_v2, %v579_v2  ;;  %v584_v2 = vsel %vm9093_vm0, %v9228_v53, 0.0  ;;  %v9233_v53 = vld [vmem:[#allocation18_spill] sm:$0xff]  ;;  %vm482_vm0 = vcmp.gt.f32.partialorder %v5015_v44, 0.0  ;;  %v645_v63 = vmul.f32 %v581_v9, %v581_v9 }
  0xbc   : > { %9215 = vst [vmem:[#allocation56_spill] sm:$0xff] %v5037_v11  ;;  %v580_v20 = vsel %vm452_vm12, %v9222_v26, 0.0  ;;  %v582_v26 = vsel %vm454_vm14, %v9224_v50, 0.0  ;;  %v586_v50 = vsel %vm9096_vm2, %v9232_v62, 0.0  ;;  %v9235_v16 = vsub.f32 %v9233_v53, %v9234_v54  ;;  %v9240_v54 = vld [vmem:[#allocation24_spill] sm:$0xff] }
  0xbd   : > { %9216 = vst [vmem:[#allocation57_spill] sm:$0xff] %v5051_v14  ;;  %v644_v1 = vmul.f32 %v580_v20, %v580_v20  ;;  %vm9236_vm10 = vcmp.gt.f32.partialorder %v9233_v53, 0.0  ;;  %vm483_vm2 = vcmp.gt.f32.partialorder %v5018_v19, 0.0  ;;  %v835_v42 = vadd.f32 %v834_v61, %v643_v24  ;;  %v9291_v59 = vld [vmem:[#allocation50_spill] sm:$0xff] }
  0xbe   : > { %9217 = vst [vmem:[#allocation58_spill] sm:$0xff] %v5054_v35  ;;  %v587_v32 = vsel %vm9236_vm10, %v9235_v16, 0.0  ;;  %v9241_v16 = vsub.f32 %v4778_v4, %v9240_v54  ;;  %vm9242_vm10 = vcmp.gt.f32.partialorder %v4778_v4, 0.0  ;;  %v900_v40 = vadd.f32 %v3509_v8, %v899_v17  ;;  %v9250_v4 = vld [vmem:[#allocation29_spill] sm:$0xff]  ;;  %v9253_v8 = vld [vmem:[#allocation30_spill] sm:$0xff] }
  0xbf   : > { %9219 = vst [vmem:[#allocation59_spill] sm:$0xff] %v5073_v48  ;;  %v590_v62 = vsel %vm9101_vm5, %v9244_v7, 0.0  ;;  %v3511_v24 = vsel %vm452_vm12, 1.0, %v9187_v22  ;;  %vm487_vm5 = vcmp.gt.f32.partialorder %v5073_v48, 0.0  ;;  %v646_v17 = vmul.f32 %v582_v26, %v582_v26 }
  0xc0   : > { %9220 = vst [vmem:[#allocation60_spill] sm:$0xff] %v5079_v3  ;;  %v9237_v3 = vld [vmem:[#allocation22_spill] sm:$0xff]  ;;  %v9257_v7 = vsub.f32 %v4832_v29, %v9256_v15  ;;  %vm9261_vm12 = vcmp.gt.f32.partialorder %v4844_v13, 0.0 }
  0xc1   : > { %v9238_v56 = vsub.f32 %v4766_v27, %v9237_v3  ;;  %v589_v3 = vsel %vm9242_vm10, %v9241_v16, 0.0  ;;  %v9246_v27 = vld [vmem:[#allocation27_spill] sm:$0xff]  ;;  %v9251_v16 = vsub.f32 %v9249_v0, %v9250_v4  ;;  %vm9252_vm10 = vcmp.gt.f32.partialorder %v9249_v0, 0.0 }
  0xc2   : > { %v901_v4 = vadd.f32 %v3510_v46, %v900_v40  ;;  %v9265_v46 = vld [vmem:[#allocation36_spill] sm:$0xff] }
  0xc3   : > { %v5168_v20 = vsel %vm9239_vm1, %v9238_v56, 0.0  ;;  %v9245_v56 = vld [vmem:[#allocation25_spill] sm:$0xff]  ;;  %v592_v9 = vsel %vm9252_vm10, %v9251_v16, 0.0  ;;  %vm486_vm1 = vcmp.gt.f32.partialorder %v5054_v35, 0.0  ;;  %vm9267_vm10 = vcmp.gt.f32.partialorder %v4865_v58, 0.0 }
  0xc4   : > { %v9247_v53 = vsub.f32 %v9245_v56, %v9246_v27  ;;  %vm9248_vm11 = vcmp.gt.f32.partialorder %v9245_v56, 0.0  ;;  %v9254_v27 = vsub.f32 %v4814_v51, %v9253_v8  ;;  %v9259_v16 = vld [vmem:[#allocation33_spill] sm:$0xff]  ;;  %v9262_v8 = vld [vmem:[#allocation35_spill] sm:$0xff] }
  0xc5   : > { %v9260_v0 = vsub.f32 %v4844_v13, %v9259_v16  ;;  %v9268_v16 = vld [vmem:[#allocation37_spill] sm:$0xff] }
  0xc6   : > { %v591_v54 = vsel %vm9248_vm11, %v9247_v53, 0.0  ;;  %v593_v61 = vsel %vm9255_vm3, %v9254_v27, 0.0  ;;  %v836_v53 = vadd.f32 %v835_v42, %v644_v1  ;;  %vm9258_vm11 = vcmp.gt.f32.partialorder %v4832_v29, 0.0 }
  0xc7   : > { %v5212_v55 = vsel %vm9258_vm11, %v9257_v7, 0.0  ;;  %v5219_v56 = vsel %vm9261_vm12, %v9260_v0, 0.0  ;;  %v9263_v27 = vsub.f32 %v4847_v34, %v9262_v8  ;;  %vm9264_vm3 = vcmp.gt.f32.partialorder %v4847_v34, 0.0 }
  0xc8   : > { %v3512_v1 = vsel %vm453_vm13, 1.0, %v9187_v22  ;;  %v9266_v42 = vsub.f32 %v4865_v58, %v9265_v46  ;;  %v647_v0 = vmul.f32 %v583_v31, %v583_v31  ;;  %v837_v15 = vadd.f32 %v836_v53, %v645_v63 }
  0xc9   : > { %v5226_v26 = vsel %vm9264_vm3, %v9263_v27, 0.0  ;;  %v902_v7 = vadd.f32 %v3511_v24, %v901_v4  ;;  %v9269_v8 = vsub.f32 %v4877_v18, %v9268_v16  ;;  %v9271_v34 = vsub.f32 %v4880_v49, %v9270_v23  ;;  %v9276_v24 = vld [vmem:[#allocation42_spill] sm:$0xff]  ;;  %v9279_v23 = vld [vmem:[#allocation43_spill] sm:$0xff] }
  0xca   : > { %v5236_v40 = vsel %vm9267_vm10, %v9266_v42, 0.0  ;;  %vm9272_vm13 = vcmp.gt.f32.partialorder %v4880_v49, 0.0  ;;  %v9273_v42 = vld [vmem:[#allocation40_spill] sm:$0xff]  ;;  %vm9275_vm11 = vcmp.gt.f32.partialorder %v4898_v6, 0.0  ;;  %v3513_v63 = vsel %vm454_vm14, 1.0, %v9187_v22 }
  0xcb   : > { %v5243_v27 = vsel %vm470_vm4, %v9269_v8, 0.0  ;;  %v5250_v46 = vsel %vm9272_vm13, %v9271_v34, 0.0  ;;  %v9274_v58 = vsub.f32 %v4898_v6, %v9273_v42  ;;  %v9277_v53 = vsub.f32 %v4910_v28, %v9276_v24 }
  0xcc   : > { %vm9278_vm12 = vcmp.gt.f32.partialorder %v4910_v28, 0.0  ;;  %v648_v34 = vmul.f32 %v584_v2, %v584_v2  ;;  %v838_v16 = vadd.f32 %v837_v15, %v646_v17  ;;  %v903_v8 = vadd.f32 %v3512_v1, %v902_v7  ;;  %v9286_v1 = vld [vmem:[#allocation47_spill] sm:$0xff] }
  0xcd   : > { %v5257_v31 = vsel %vm9275_vm11, %v9274_v58, 0.0  ;;  %v5267_v4 = vsel %vm9278_vm12, %v9277_v53, 0.0  ;;  %v9280_v42 = vsub.f32 %v4913_v57, %v9279_v23  ;;  %v9282_v6 = vsub.f32 %v4931_v52, %v9281_v30  ;;  %v9283_v53 = vld [vmem:[#allocation46_spill] sm:$0xff]  ;;  %v9289_v30 = vld [vmem:[#allocation48_spill] sm:$0xff] }
  0xce   : > { %v9284_v28 = vsub.f32 %v4943_v41, %v9283_v53  ;;  %vm9285_vm14 = vcmp.gt.f32.partialorder %v4943_v41, 0.0  ;;  %v3514_v17 = vsel %vm455_vm15, 1.0, %v9187_v22  ;;  %v9287_v15 = vsub.f32 %v4946_v39, %v9286_v1 }
  0xcf   : > { %v5274_v58 = vsel %vm474_vm8, %v9280_v42, 0.0  ;;  %v5281_v24 = vsel %vm475_vm6, %v9282_v6, 0.0  ;;  %vm9288_vm3 = vcmp.gt.f32.partialorder %v4946_v39, 0.0  ;;  %v649_v6 = vmul.f32 %v585_v47, %v585_v47 }
  0xd0   : > { %v5288_v2 = vsel %vm9285_vm14, %v9284_v28, 0.0  ;;  %v5298_v7 = vsel %vm9288_vm3, %v9287_v15, 0.0  ;;  %v839_v23 = vadd.f32 %v838_v16, %v647_v0  ;;  %v904_v42 = vadd.f32 %v3513_v63, %v903_v8  ;;  %v9293_v15 = vld [vmem:[#allocation52_spill] sm:$0xff]  ;;  %v9297_v16 = vld [vmem:[#allocation53_spill] sm:$0xff] }
  0xd1   : > { %v9290_v53 = vsub.f32 %v4965_v25, %v9289_v30  ;;  %v9292_v41 = vsub.f32 %v4979_v33, %v9291_v59  ;;  %v9294_v47 = vsub.f32 %v4982_v21, %v9293_v15  ;;  %vm9295_vm15 = vcmp.gt.f32.partialorder %v4982_v21, 0.0  ;;  %v5397_v21 = vld [vmem:[%s4454_s8 + $0x218] sm:$0xff] }
  0xd2   : > { %vm9296_vm10 = vcmp.gt.f32.partialorder %v4721_v43, 0.0  ;;  %v9298_v8 = vsub.f32 %v5001_v12, %v9297_v16  ;;  %vm9299_vm13 = vcmp.gt.f32.partialorder %v5001_v12, 0.0  ;;  %v905_v59 = vadd.f32 %v3514_v17, %v904_v42  ;;  %v9340_v25 = vld [vmem:[#allocation51_spill] sm:$0xff] }
  0xd3   : > { %v5305_v28 = vsel %vm478_vm9, %v9290_v53, 0.0  ;;  %v5312_v1 = vsel %vm479_vm7, %v9292_v41, 0.0  ;;  %v5319_v0 = vsel %vm9295_vm15, %v9294_v47, 0.0  ;;  %v3515_v63 = vsel %vm9296_vm10, 1.0, %v9187_v22 }
  0xd4   : > { %v5329_v30 = vsel %vm9299_vm13, %v9298_v8, 0.0  ;;  %v650_v41 = vmul.f32 %v586_v50, %v586_v50  ;;  %v840_v53 = vadd.f32 %v839_v23, %v648_v34  ;;  %v9300_v15 = vsub.f32 %v5015_v44, %v5021_v37 }
  0xd5   : > { %v9301_v47 = vsub.f32 %v5018_v19, %v5040_v38  ;;  %v9302_v50 = vsub.f32 %v5037_v11, %v5043_v36  ;;  %vm9303_vm11 = vcmp.gt.f32.partialorder %v5037_v11, 0.0  ;;  %vm9304_vm12 = vcmp.gt.f32.partialorder %v4736_v60, 0.0  ;;  %v9312_v11 = vld [vmem:[#allocation18_spill] sm:$0xff] }
  0xd6   : > { %v5336_v43 = vsel %vm482_vm0, %v9300_v15, 0.0  ;;  %v3516_v37 = vsel %vm9304_vm12, 1.0, %v9187_v22  ;;  %v9305_v17 = vsub.f32 %v5051_v14, %v5057_v5  ;;  %vm9306_vm14 = vcmp.gt.f32.partialorder %v5051_v14, 0.0  ;;  %v5363_v15 = vld [vmem:[%s4454_s8 + $0x200] sm:$0xff]  ;;  %v5393_v19 = vld [vmem:[%s4454_s8 + $0x210] sm:$0xff] }
  0xd7   : > { %v5343_v16 = vsel %vm483_vm2, %v9301_v47, 0.0  ;;  %v5350_v34 = vsel %vm9303_vm11, %v9302_v50, 0.0  ;;  %v651_v23 = vmul.f32 %v587_v32, %v587_v32  ;;  %v841_v42 = vadd.f32 %v840_v53, %v649_v6  ;;  %v9308_v47 = vld [vmem:[#allocation60_spill] sm:$0xff]  ;;  %v9310_v6 = vld [vmem:[#allocation17_spill] sm:$0xff] }
  0xd8   : > { %v5360_v38 = vsel %vm9306_vm14, %v9305_v17, 0.0  ;;  %v906_v8 = vadd.f32 %v3515_v63, %v905_v59  ;;  %v9307_v36 = vsub.f32 %v5054_v35, %v5076_v10  ;;  %v9309_v5 = vsub.f32 %v5073_v48, %v9308_v47  ;;  %v5385_v63 = vld [vmem:[%s4454_s8 + $0x208] sm:$0xff]  ;;  %v3611_v53 = vld [vmem:[%s4448_s29 + $0x200] sm:$0xff] }
  0xd9   : > { %v652_v32 = vmul.f32 %v5168_v20, %v5168_v20  ;;  %vm9311_vm3 = vcmp.gt.f32.partialorder %v9310_v6, 0.0  ;;  %v3612_v59 = vld [vmem:[%s4448_s29 + $0x208] sm:$0xff]  ;;  %v653_v17 = vmul.f32 %v589_v3, %v589_v3  ;;  %v842_v47 = vadd.f32 %v841_v42, %v650_v41  ;;  %v3613_v6 = vld [vmem:[%s4448_s29 + $0x210] sm:$0xff]  ;;  %v3614_v3 = vld [vmem:[%s4448_s29 + $0x218] sm:$0xff] }
  0xda   : > { %v5370_v60 = vsel %vm486_vm1, %v9307_v36, 0.0  ;;  %v5377_v50 = vsel %vm487_vm5, %v9309_v5, 0.0  ;;  %v3517_v10 = vsel %vm9311_vm3, 1.0, %v9187_v22  ;;  %v654_v36 = vmul.f32 %v590_v62, %v590_v62  ;;  %v9316_v42 = vld [vmem:[#allocation23_spill] sm:$0xff] }
  0xdb   : > { %v907_v48 = vadd.f32 %v3516_v37, %v906_v8  ;;  %v655_v35 = vmul.f32 %v591_v54, %v591_v54  ;;  %v656_v5 = vmul.f32 %v592_v9, %v592_v9  ;;  %v657_v14 = vmul.f32 %v593_v61, %v593_v61 }
  0xdc   : > { %vm9313_vm15 = vcmp.gt.f32.partialorder %v9312_v11, 0.0  ;;  %v843_v44 = vadd.f32 %v842_v47, %v651_v23  ;;  %v1134_v62 = vsub.f32 %v5363_v15, %v3611_v53  ;;  %v1135_v54 = vsub.f32 %v5385_v63, %v3612_v59  ;;  %v9314_v11 = vld [vmem:[#allocation20_spill] sm:$0xff] }
  0xdd   : > { %v3518_v20 = vsel %vm9313_vm15, 1.0, %v9187_v22  ;;  %v908_v12 = vadd.f32 %v3517_v10, %v907_v48  ;;  %v658_v9 = vmul.f32 %v5212_v55, %v5212_v55  ;;  %vm9315_vm10 = vcmp.gt.f32.partialorder %v9314_v11, 0.0  ;;  %v5422_v10 = vld [vmem:[%s4454_s8 + $0x220] sm:$0xff] }
  0xde   : > { %v3519_v61 = vsel %vm9315_vm10, 1.0, %v9187_v22  ;;  %vm1070_vm13 = vcmp.gt.f32.partialorder %v5363_v15, 0.0  ;;  %vm1071_vm11 = vcmp.gt.f32.partialorder %v5385_v63, 0.0  ;;  %v5411_v48 = vmul.f32 %v5219_v56, %v5219_v56  ;;  %v3615_v53 = vld [vmem:[%s4448_s29 + $0x220] sm:$0xff] }
  0xdf   : > { %v844_v41 = vadd.f32 %v843_v44, %v652_v32  ;;  %v909_v37 = vadd.f32 %v3518_v20, %v908_v12  ;;  %v1136_v23 = vsub.f32 %v5393_v19, %v3613_v6  ;;  %v5416_v55 = vmul.f32 %v5226_v26, %v5226_v26  ;;  %v3616_v6 = vld [vmem:[%s4448_s29 + $0x228] sm:$0xff] }
  0xe0   : > { %vm9317_vm12 = vcmp.gt.f32.partialorder %v9316_v42, 0.0  ;;  %vm1072_vm14 = vcmp.gt.f32.partialorder %v5393_v19, 0.0  ;;  %v1137_v44 = vsub.f32 %v5397_v21, %v3614_v3  ;;  %v1198_v32 = vsel %vm1070_vm13, %v1134_v62, 0.0 }
  0xe1   : > { %v3520_v8 = vsel %vm9317_vm12, 1.0, %v9187_v22  ;;  %v845_v56 = vadd.f32 %v844_v41, %v653_v17  ;;  %v910_v12 = vadd.f32 %v3519_v61, %v909_v37  ;;  %v1199_v26 = vsel %vm1071_vm11, %v1135_v54, 0.0  ;;  %v5443_v17 = vld [vmem:[%s4454_s8 + $0x228] sm:$0xff] }
  0xe2   : > { %v5433_v59 = vmul.f32 %v5236_v40, %v5236_v40  ;;  %v5437_v47 = vmul.f32 %v5243_v27, %v5243_v27  ;;  %vm9318_vm3 = vcmp.gt.f32.partialorder %v4781_v45, 0.0  ;;  %vm9118_vm15 = vcmp.gt.f32.partialorder %v5397_v21, 0.0  ;;  %v9319_v27 = vld [vmem:[#allocation25_spill] sm:$0xff] }
  0xe3   : > { %v3521_v20 = vsel %vm9318_vm3, 1.0, %v9187_v22  ;;  %v846_v3 = vadd.f32 %v845_v56, %v654_v36  ;;  %v911_v62 = vadd.f32 %v3520_v8, %v910_v12  ;;  %v1138_v40 = vsub.f32 %v5422_v10, %v3615_v53  ;;  %v5465_v56 = vld [vmem:[%s4454_s8 + $0x230] sm:$0xff] }
  0xe4   : > { %v1200_v54 = vsel %vm1072_vm14, %v1136_v23, 0.0  ;;  %vm9320_vm10 = vcmp.gt.f32.partialorder %v9319_v27, 0.0  ;;  %vm9117_vm12 = vcmp.gt.f32.partialorder %v5422_v10, 0.0  ;;  %v1262_v45 = vmul.f32 %v1198_v32, %v1198_v32  ;;  %v9321_v23 = vld [vmem:[#allocation28_spill] sm:$0xff]  ;;  %v3617_v12 = vld [vmem:[%s4448_s29 + $0x230] sm:$0xff] }
  0xe5   : > { %v3522_v11 = vsel %vm9320_vm10, 1.0, %v9187_v22  ;;  %v1263_v61 = vmul.f32 %v1199_v26, %v1199_v26  ;;  %v847_v41 = vadd.f32 %v846_v3, %v655_v35  ;;  %v912_v37 = vadd.f32 %v3521_v20, %v911_v62 }
  0xe6   : > { %v1139_v42 = vsub.f32 %v5443_v17, %v3616_v6  ;;  %v1201_v36 = vsel %vm9118_vm15, %v1137_v44, 0.0  ;;  %v5459_v8 = vmul.f32 %v5250_v46, %v5250_v46  ;;  %vm9322_vm3 = vcmp.gt.f32.partialorder %v9321_v23, 0.0 }
  0xe7   : > { %v3523_v53 = vsel %vm9322_vm3, 1.0, %v9187_v22  ;;  %vm1075_vm10 = vcmp.gt.f32.partialorder %v5443_v17, 0.0  ;;  %v1264_v35 = vmul.f32 %v1200_v54, %v1200_v54  ;;  %v5471_v32 = vmul.f32 %v5257_v31, %v5257_v31 }
  0xe8   : > { %v848_v44 = vadd.f32 %v847_v41, %v656_v5  ;;  %v913_v26 = vadd.f32 %v3522_v11, %v912_v37  ;;  %v1202_v46 = vsel %vm9117_vm12, %v1138_v40, 0.0  ;;  %v5477_v20 = vmul.f32 %v5267_v4, %v5267_v4  ;;  %v5489_v11 = vld [vmem:[%s4454_s8 + $0x238] sm:$0xff] }
  0xe9   : > { %vm9323_vm3 = vcmp.gt.f32.partialorder %v4814_v51, 0.0  ;;  %v1265_v3 = vmul.f32 %v1201_v36, %v1201_v36  ;;  %v1455_v62 = vadd.f32 %v1263_v61, %v1262_v45  ;;  %v1140_v31 = vsub.f32 %v5465_v56, %v3617_v12  ;;  %v3618_v4 = vld [vmem:[%s4448_s29 + $0x238] sm:$0xff] }
  0xea   : > { %v3524_v6 = vsel %vm9323_vm3, 1.0, %v9187_v22  ;;  %v849_v54 = vadd.f32 %v848_v44, %v657_v14  ;;  %v914_v27 = vadd.f32 %v3523_v53, %v913_v26  ;;  %v1203_v5 = vsel %vm1075_vm10, %v1139_v42, 0.0  ;;  %v3619_v44 = vld [vmem:[%s4448_s29 + $0x240] sm:$0xff] }
  0xeb   : > { %vm9324_vm12 = vcmp.gt.f32.partialorder %v4832_v29, 0.0  ;;  %vm1076_vm15 = vcmp.gt.f32.partialorder %v5465_v56, 0.0  ;;  %v1266_v51 = vmul.f32 %v1202_v46, %v1202_v46  ;;  %v1456_v41 = vadd.f32 %v1455_v62, %v1264_v35  ;;  %v9328_v62 = vld [vmem:[#allocation34_spill] sm:$0xff] }
  0xec   : > { %v3525_v40 = vsel %vm9324_vm12, 1.0, %v9187_v22  ;;  %v5495_v14 = vmul.f32 %v5274_v58, %v5274_v58  ;;  %v5499_v45 = vmul.f32 %v5281_v24, %v5281_v24  ;;  %v850_v61 = vadd.f32 %v849_v54, %v658_v9 }
  0xed   : > { %v915_v29 = vadd.f32 %v3524_v6, %v914_v27  ;;  %v5503_v37 = vmul.f32 %v5288_v2, %v5288_v2  ;;  %vm9325_vm12 = vcmp.gt.f32.partialorder %v4844_v13, 0.0  ;;  %v1267_v36 = vmul.f32 %v1203_v5, %v1203_v5  ;;  %v9326_v2 = vld [vmem:[#allocation32_spill] sm:$0xff] }
  0xee   : > { %v3526_v42 = vsel %vm9325_vm12, 1.0, %v9187_v22  ;;  %v1457_v23 = vadd.f32 %v1456_v41, %v1265_v3  ;;  %v851_v53 = vadd.f32 %v850_v61, %v5411_v48  ;;  %v1141_v12 = vsub.f32 %v5489_v11, %v3618_v4  ;;  %v5520_v13 = vld [vmem:[%s4454_s8 + $0x240] sm:$0xff] }
  0xef   : > { %v916_v58 = vadd.f32 %v3525_v40, %v915_v29  ;;  %v1204_v24 = vsel %vm1076_vm15, %v1140_v31, 0.0  ;;  %v5514_v9 = vmul.f32 %v5298_v7, %v5298_v7  ;;  %vm9327_vm3 = vcmp.gt.f32.partialorder %v9326_v2, 0.0 }
  0xf0   : > { %v3527_v35 = vsel %vm9327_vm3, 1.0, %v9187_v22  ;;  %vm9119_vm12 = vcmp.gt.f32.partialorder %v5489_v11, 0.0  ;;  %v1458_v48 = vadd.f32 %v1457_v23, %v1266_v51  ;;  %v5526_v26 = vmul.f32 %v5305_v28, %v5305_v28  ;;  %v5556_v51 = vld [vmem:[%s4454_s8 + $0x248] sm:$0xff] }
  0xf1   : > { %v5530_v7 = vmul.f32 %v5312_v1, %v5312_v1  ;;  %v852_v46 = vadd.f32 %v851_v53, %v5416_v55  ;;  %v917_v6 = vadd.f32 %v3526_v42, %v916_v58  ;;  %v5535_v3 = vmul.f32 %v5319_v0, %v5319_v0 }
  0xf2   : > { %vm9329_vm3 = vcmp.gt.f32.partialorder %v9328_v62, 0.0  ;;  %v1268_v27 = vmul.f32 %v1204_v24, %v1204_v24  ;;  %v1459_v31 = vadd.f32 %v1458_v48, %v1267_v36  ;;  %v1142_v40 = vsub.f32 %v5520_v13, %v3619_v44  ;;  %v9333_v24 = vld [vmem:[#allocation41_spill] sm:$0xff] }
  0xf3   : > { %v3528_v54 = vsel %vm9329_vm3, 1.0, %v9187_v22  ;;  %v853_v28 = vadd.f32 %v852_v46, %v5433_v59  ;;  %v918_v5 = vadd.f32 %v3527_v35, %v917_v6  ;;  %v1205_v1 = vsel %vm9119_vm12, %v1141_v12, 0.0  ;;  %v3620_v59 = vld [vmem:[%s4448_s29 + $0x248] sm:$0xff]  ;;  %v5592_v12 = vld [vmem:[%s4454_s8 + $0x250] sm:$0xff] }
  0xf4   : > { %v5546_v55 = vmul.f32 %v5329_v30, %v5329_v30  ;;  %v5550_v0 = vmul.f32 %v5336_v43, %v5336_v43  ;;  %v3529_v4 = vsel %vm470_vm4, 1.0, %v9187_v22  ;;  %vm9120_vm3 = vcmp.gt.f32.partialorder %v5520_v13, 0.0  ;;  %v9335_v48 = vld [vmem:[#allocation45_spill] sm:$0xff] }
  0xf5   : > { %v5562_v41 = vmul.f32 %v5343_v16, %v5343_v16  ;;  %v5566_v30 = vmul.f32 %v5350_v34, %v5350_v34  ;;  %v854_v43 = vadd.f32 %v853_v28, %v5437_v47  ;;  %v919_v61 = vadd.f32 %v3528_v54, %v918_v5  ;;  %v5627_v28 = vld [vmem:[%s4454_s8 + $0x258] sm:$0xff] }
  0xf6   : > { %v5571_v18 = vmul.f32 %v5360_v38, %v5360_v38  ;;  %vm9330_vm4 = vcmp.gt.f32.partialorder %v4880_v49, 0.0  ;;  %v1269_v42 = vmul.f32 %v1205_v1, %v1205_v1  ;;  %v1460_v36 = vadd.f32 %v1459_v31, %v1268_v27  ;;  %v9331_v49 = vld [vmem:[#allocation38_spill] sm:$0xff]  ;;  %v3622_v5 = vld [vmem:[%s4448_s29 + $0x258] sm:$0xff] }
  0xf7   : > { %v3530_v29 = vsel %vm9330_vm4, 1.0, %v9187_v22  ;;  %v855_v16 = vadd.f32 %v854_v43, %v5459_v8  ;;  %v920_v23 = vadd.f32 %v3529_v4, %v919_v61  ;;  %v1143_v53 = vsub.f32 %v5556_v51, %v3620_v59  ;;  %v3621_v8 = vld [vmem:[%s4448_s29 + $0x250] sm:$0xff]  ;;  %v3626_v61 = vld [vmem:[%s4448_s29 + $0x278] sm:$0xff] }
  0xf8   : > { %v1206_v34 = vsel %vm9120_vm3, %v1142_v40, 0.0  ;;  %v5582_v47 = vmul.f32 %v5370_v60, %v5370_v60  ;;  %v5586_v38 = vmul.f32 %v5377_v50, %v5377_v50  ;;  %vm9332_vm4 = vcmp.gt.f32.partialorder %v9331_v49, 0.0  ;;  %v9338_v40 = vld [vmem:[#allocation49_spill] sm:$0xff]  ;;  %v5704_v59 = vld [vmem:[%s4454_s8 + $0x290] sm:$0xff] }
  0xf9   : > { %v3531_v58 = vsel %vm9332_vm4, 1.0, %v9187_v22  ;;  %vm1079_vm12 = vcmp.gt.f32.partialorder %v5556_v51, 0.0  ;;  %vm9334_vm3 = vcmp.gt.f32.partialorder %v9333_v24, 0.0  ;;  %v3533_v60 = vsel %vm474_vm8, 1.0, %v9187_v22 }
  0xfa   : > { %v3532_v2 = vsel %vm9334_vm3, 1.0, %v9187_v22  ;;  %v856_v50 = vadd.f32 %v855_v16, %v5471_v32  ;;  %v921_v35 = vadd.f32 %v3530_v29, %v920_v23  ;;  %v3534_v44 = vsel %vm475_vm6, 1.0, %v9187_v22 }
  0xfb   : > { %vm9336_vm4 = vcmp.gt.f32.partialorder %v9335_v48, 0.0  ;;  %v1270_v6 = vmul.f32 %v1206_v34, %v1206_v34  ;;  %v1461_v62 = vadd.f32 %v1460_v36, %v1269_v42  ;;  %v1144_v57 = vsub.f32 %v5592_v12, %v3621_v8  ;;  %v5653_v42 = vld [vmem:[%s4454_s8 + $0x260] sm:$0xff]  ;;  %v5658_v34 = vld [vmem:[%s4454_s8 + $0x268] sm:$0xff] }
  0xfc   : > { %v3535_v46 = vsel %vm9336_vm4, 1.0, %v9187_v22  ;;  %v857_v54 = vadd.f32 %v856_v50, %v5477_v20  ;;  %v922_v27 = vadd.f32 %v3531_v58, %v921_v35  ;;  %v1207_v32 = vsel %vm1079_vm12, %v1143_v53, 0.0  ;;  %v3623_v36 = vld [vmem:[%s4448_s29 + $0x260] sm:$0xff]  ;;  %v5679_v35 = vld [vmem:[%s4454_s8 + $0x270] sm:$0xff]  ;;  %v3624_v48 = vld [vmem:[%s4448_s29 + $0x268] sm:$0xff] }
  0xfd   : > { %vm9337_vm8 = vcmp.gt.f32.partialorder %v4946_v39, 0.0  ;;  %v5619_v31 = vsel %vm478_vm9, 1.0, %v9187_v22  ;;  %v5624_v20 = vsel %vm479_vm7, 1.0, %v9187_v22  ;;  %vm1080_vm6 = vcmp.gt.f32.partialorder %v5592_v12, 0.0  ;;  %v9344_v8 = vld [vmem:[#allocation56_spill] sm:$0xff] }
  0xfe   : > { %v3536_v52 = vsel %vm9337_vm8, 1.0, %v9187_v22  ;;  %vm9339_vm3 = vcmp.gt.f32.partialorder %v9338_v40, 0.0  ;;  %vm9341_vm9 = vcmp.gt.f32.partialorder %v9340_v25, 0.0  ;;  %v858_v33 = vadd.f32 %v857_v54, %v5495_v14  ;;  %v3625_v25 = vld [vmem:[%s4448_s29 + $0x270] sm:$0xff] }
  0xff   : > { %v5634_v39 = vsel %vm9339_vm3, 1.0, %v9187_v22  ;;  %v5639_v1 = vsel %vm9341_vm9, 1.0, %v9187_v22  ;;  %v923_v4 = vadd.f32 %v3532_v2, %v922_v27  ;;  %v5645_v43 = vsel %vm482_vm0, 1.0, %v9187_v22  ;;  %v9346_v2 = vld [vmem:[#allocation57_spill] sm:$0xff] }
 0x100   : > { %v5650_v29 = vsel %vm483_vm2, 1.0, %v9187_v22  ;;  %v1271_v16 = vmul.f32 %v1207_v32, %v1207_v32  ;;  %v1462_v23 = vadd.f32 %v1461_v62, %v1270_v6  ;;  %v859_v14 = vadd.f32 %v858_v33, %v5499_v45  ;;  %v5693_v32 = vld [vmem:[%s4454_s8 + $0x280] sm:$0xff] }
 0x101   : > { %v924_v53 = vadd.f32 %v3533_v60, %v923_v4  ;;  %v1145_v49 = vsub.f32 %v5627_v28, %v3622_v5  ;;  %v1208_v58 = vsel %vm1080_vm6, %v1144_v57, 0.0  ;;  %vm9345_vm0 = vcmp.gt.f32.partialorder %v9344_v8, 0.0  ;;  %v5690_v57 = vld [vmem:[%s4454_s8 + $0x278] sm:$0xff]  ;;  %v5696_v5 = vld [vmem:[%s4454_s8 + $0x288] sm:$0xff] }
 0x102   : > { %v5666_v24 = vsel %vm9345_vm0, 1.0, %v9187_v22  ;;  %vm9347_vm2 = vcmp.gt.f32.partialorder %v9346_v2, 0.0  ;;  %v5676_v60 = vsel %vm486_vm1, 1.0, %v9187_v22  ;;  %vm1081_vm7 = vcmp.gt.f32.partialorder %v5627_v28, 0.0  ;;  %v3628_v8 = vld [vmem:[%s4448_s29 + $0x288] sm:$0xff]  ;;  %v5725_v2 = vld [vmem:[%s4448_s29 + $0x298] sm:$0xff] }
 0x103   : > { %v5671_v50 = vsel %vm9347_vm2, 1.0, %v9187_v22  ;;  %v5686_v62 = vsel %vm487_vm5, 1.0, %v9187_v22  ;;  %v860_v54 = vadd.f32 %v859_v14, %v5503_v37  ;;  %v925_v27 = vadd.f32 %v3534_v44, %v924_v53  ;;  %v3627_v14 = vld [vmem:[%s4448_s29 + $0x280] sm:$0xff] }
 0x104   : > { %v1146_v40 = vsub.f32 %v5653_v42, %v3623_v36  ;;  %vm1082_vm1 = vcmp.gt.f32.partialorder %v5653_v42, 0.0  ;;  %vm1083_vm4 = vcmp.gt.f32.partialorder %v5658_v34, 0.0  ;;  %v1272_v33 = vmul.f32 %v1208_v58, %v1208_v58 }
 0x105   : > { %v1463_v4 = vadd.f32 %v1462_v23, %v1271_v16  ;;  %v861_v37 = vadd.f32 %v860_v54, %v5514_v9  ;;  %v926_v44 = vadd.f32 %v3535_v46, %v925_v27  ;;  %v1147_v53 = vsub.f32 %v5658_v34, %v3624_v48  ;;  %v5718_v16 = vld [vmem:[%s4454_s8 + $0x298] sm:$0xff]  ;;  %v3629_v23 = vld [vmem:[%s4448_s29 + $0x290] sm:$0xff]  ;;  %v5733_v27 = vld [vmem:[%s4454_s8 + $0x2a0] sm:$0xff] }
 0x106   : > { %v1209_v36 = vsel %vm1081_vm7, %v1145_v49, 0.0  ;;  %vm1084_vm5 = vcmp.gt.f32.partialorder %v5679_v35, 0.0  ;;  %vm1085_vm8 = vcmp.gt.f32.partialorder %v5690_v57, 0.0  ;;  %vm1086_vm3 = vcmp.gt.f32.partialorder %v5693_v32, 0.0 }
 0x107   : > { %vm1087_vm9 = vcmp.gt.f32.partialorder %v5696_v5, 0.0  ;;  %v862_v9 = vadd.f32 %v861_v37, %v5526_v26  ;;  %v927_v46 = vadd.f32 %v3536_v52, %v926_v44  ;;  %v1148_v58 = vsub.f32 %v5679_v35, %v3625_v25  ;;  %v5736_v25 = vld [vmem:[%s4448_s29 + $0x2a0] sm:$0xff] }
 0x108   : > { %v1210_v49 = vsel %vm1082_vm1, %v1146_v40, 0.0  ;;  %vm1088_vm0 = vcmp.gt.f32.partialorder %v5704_v59, 0.0  ;;  %v1149_v45 = vsub.f32 %v5690_v57, %v3626_v61  ;;  %v1150_v48 = vsub.f32 %v5693_v32, %v3627_v14  ;;  %v5752_v14 = vld [vmem:[%s4454_s8 + $0x2a8] sm:$0xff] }
 0x109   : > { %v1273_v6 = vmul.f32 %v1209_v36, %v1209_v36  ;;  %v1464_v26 = vadd.f32 %v1463_v4, %v1272_v33  ;;  %v863_v52 = vadd.f32 %v862_v9, %v5530_v7  ;;  %v928_v54 = vadd.f32 %v5619_v31, %v927_v46 }
 0x10a   : > { %v1151_v40 = vsub.f32 %v5696_v5, %v3628_v8  ;;  %v1211_v37 = vsel %vm1083_vm4, %v1147_v53, 0.0  ;;  %vm1089_vm2 = vcmp.gt.f32.partialorder %v5718_v16, 0.0  ;;  %v1152_v44 = vsub.f32 %v5704_v59, %v3629_v23  ;;  %v5755_v53 = vld [vmem:[%s4448_s29 + $0x2a8] sm:$0xff] }
 0x10b   : > { %v1274_v61 = vmul.f32 %v1210_v49, %v1210_v49  ;;  %v3675_v7 = vsel %vm1070_vm13, 1.0, %v9187_v22  ;;  %v3676_v31 = vsel %vm1071_vm11, 1.0, %v9187_v22  ;;  %v864_v33 = vadd.f32 %v863_v52, %v5535_v3 }
 0x10c   : > { %v929_v4 = vadd.f32 %v5624_v20, %v928_v54  ;;  %v1153_v36 = vsub.f32 %v5718_v16, %v5725_v2  ;;  %v1212_v8 = vsel %vm1084_vm5, %v1148_v58, 0.0  ;;  %vm1090_vm13 = vcmp.gt.f32.partialorder %v5733_v27, 0.0 }
 0x10d   : > { %v1154_v15 = vsub.f32 %v5733_v27, %v5736_v25  ;;  %v1275_v63 = vmul.f32 %v1211_v37, %v1211_v37  ;;  %v3677_v3 = vsel %vm1072_vm14, 1.0, %v9187_v22  ;;  %v1465_v20 = vadd.f32 %v1464_v26, %v1273_v6 }
 0x10e   : > { %v865_v9 = vadd.f32 %v864_v33, %v5546_v55  ;;  %v930_v46 = vadd.f32 %v5634_v39, %v929_v4  ;;  %v1213_v23 = vsel %vm1085_vm8, %v1149_v45, 0.0  ;;  %v1521_v58 = vadd.f32 %v3676_v31, %v3675_v7  ;;  %v5779_v55 = vld [vmem:[%s4454_s8 + $0x2b0] sm:$0xff] }
 0x10f   : > { %v1155_v49 = vsub.f32 %v5752_v14, %v5755_v53  ;;  %v1276_v2 = vmul.f32 %v1212_v8, %v1212_v8  ;;  %vm9350_vm11 = vcmp.gt.f32.partialorder %v5397_v21, 0.0  ;;  %v1466_v54 = vadd.f32 %v1465_v20, %v1274_v61  ;;  %v3633_v39 = vld [vmem:[%s4448_s29 + $0x2b0] sm:$0xff]  ;;  %v5799_v8 = vld [vmem:[%s4454_s8 + $0x2b8] sm:$0xff] }
 0x110   : > { %v3678_v52 = vsel %vm9350_vm11, 1.0, %v9187_v22  ;;  %v866_v19 = vadd.f32 %v865_v9, %v5550_v0  ;;  %v931_v6 = vadd.f32 %v5639_v1, %v930_v46  ;;  %v1214_v45 = vsel %vm1086_vm3, %v1150_v48, 0.0 }
 0x111   : > { %v1522_v26 = vadd.f32 %v3677_v3, %v1521_v58  ;;  %vm1091_vm14 = vcmp.gt.f32.partialorder %v5752_v14, 0.0  ;;  %v1277_v25 = vmul.f32 %v1213_v23, %v1213_v23  ;;  %vm9351_vm11 = vcmp.gt.f32.partialorder %v5422_v10, 0.0 }
 0x112   : > { %v3679_v21 = vsel %vm9351_vm11, 1.0, %v9187_v22  ;;  %v1467_v37 = vadd.f32 %v1466_v54, %v1275_v63  ;;  %v867_v0 = vadd.f32 %v866_v19, %v5562_v41  ;;  %v932_v1 = vadd.f32 %v5645_v43, %v931_v6  ;;  %v3634_v41 = vld [vmem:[%s4448_s29 + $0x2b8] sm:$0xff]  ;;  %v808_v54 = vld [vmem:[#allocation7] sm:$0xff] }
 0x113   : > { %v1215_v61 = vsel %vm1087_vm9, %v1151_v40, 0.0  ;;  %v1523_v7 = vadd.f32 %v3678_v52, %v1522_v26  ;;  %v1156_v48 = vsub.f32 %v5779_v55, %v3633_v39  ;;  %v1278_v31 = vmul.f32 %v1214_v45, %v1214_v45  ;;  %v874_v45 = vld [vmem:[#allocation8] sm:$0xff] }
 0x114   : > { %v3680_v33 = vsel %vm1075_vm10, 1.0, %v9187_v22  ;;  %v1468_v4 = vadd.f32 %v1467_v37, %v1276_v2  ;;  %v868_v10 = vadd.f32 %v867_v0, %v5566_v30  ;;  %v933_v53 = vadd.f32 %v5650_v29, %v932_v1  ;;  %v5833_v26 = vld [vmem:[%s4454_s8 + $0x2c8] sm:$0xff] }
 0x115   : > { %v1216_v43 = vsel %vm1088_vm0, %v1152_v44, 0.0  ;;  %v1524_v40 = vadd.f32 %v3679_v21, %v1523_v7  ;;  %vm1092_vm11 = vcmp.gt.f32.partialorder %v5779_v55, 0.0  ;;  %v1279_v63 = vmul.f32 %v1215_v61, %v1215_v61  ;;  %v5844_v61 = vld [vmem:[%s4454_s8 + $0x2d0] sm:$0xff] }
 0x116   : > { %v3681_v17 = vsel %vm1076_vm15, 1.0, %v9187_v22  ;;  %v1469_v3 = vadd.f32 %v1468_v4, %v1277_v25  ;;  %v869_v30 = vadd.f32 %v868_v10, %v5571_v18  ;;  %v934_v29 = vadd.f32 %v5666_v24, %v933_v53  ;;  %v5819_v18 = vld [vmem:[%s4454_s8 + $0x2c0] sm:$0xff]  ;;  %v3636_v25 = vld [vmem:[%s4448_s29 + $0x2c8] sm:$0xff]  ;;  %v3637_v7 = vld [vmem:[%s4448_s29 + $0x2d0] sm:$0xff] }
 0x117   : > { %v1217_v20 = vsel %vm1089_vm2, %v1153_v36, 0.0  ;;  %v1525_v9 = vadd.f32 %v3680_v33, %v1524_v40  ;;  %v1157_v44 = vsub.f32 %v5799_v8, %v3634_v41  ;;  %v1280_v46 = vmul.f32 %v1216_v43, %v1216_v43  ;;  %v3635_v24 = vld [vmem:[%s4448_s29 + $0x2c0] sm:$0xff]  ;;  %v5855_v53 = vld [vmem:[%s4454_s8 + $0x2d8] sm:$0xff] }
 0x118   : > { %vm9352_vm10 = vcmp.gt.f32.partialorder %v5489_v11, 0.0  ;;  %v1470_v58 = vadd.f32 %v1469_v3, %v1278_v31  ;;  %v870_v56 = vadd.f32 %v869_v30, %v5582_v47  ;;  %v935_v2 = vadd.f32 %v5671_v50, %v934_v29  ;;  %v3638_v41 = vld [vmem:[%s4448_s29 + $0x2d8] sm:$0xff]  ;;  %v5866_v30 = vld [vmem:[%s4454_s8 + $0x2e0] sm:$0xff] }
 0x119   : > { %v3682_v23 = vsel %vm9352_vm10, 1.0, %v9187_v22  ;;  %v1218_v36 = vsel %vm1090_vm13, %v1154_v15, 0.0  ;;  %v1526_v52 = vadd.f32 %v3681_v17, %v1525_v9  ;;  %vm1093_vm15 = vcmp.gt.f32.partialorder %v5799_v8, 0.0  ;;  %v3639_v29 = vld [vmem:[%s4448_s29 + $0x2e0] sm:$0xff] }
 0x11a   : > { %v1281_v19 = vmul.f32 %v1217_v20, %v1217_v20  ;;  %vm9353_vm10 = vcmp.gt.f32.partialorder %v5520_v13, 0.0  ;;  %v1471_v47 = vadd.f32 %v1470_v58, %v1279_v63  ;;  %v871_v50 = vadd.f32 %v870_v56, %v5586_v38  ;;  %v5877_v58 = vld [vmem:[%s4454_s8 + $0x2e8] sm:$0xff] }
 0x11b   : > { %v3683_v11 = vsel %vm9353_vm10, 1.0, %v9187_v22  ;;  %v936_v6 = vadd.f32 %v5676_v60, %v935_v2  ;;  %v1219_v39 = vsel %vm1091_vm14, %v1155_v49, 0.0  ;;  %v1527_v15 = vadd.f32 %v3682_v23, %v1526_v52  ;;  %v3640_v56 = vld [vmem:[%s4448_s29 + $0x2e8] sm:$0xff] }
 0x11c   : > { %v1158_v21 = vsub.f32 %v5819_v18, %v3635_v24  ;;  %v1282_v37 = vmul.f32 %v1218_v36, %v1218_v36  ;;  %v3684_v13 = vsel %vm1079_vm12, 1.0, %v9187_v22  ;;  %v1472_v0 = vadd.f32 %v1471_v47, %v1280_v46 }
 0x11d   : > { %v872_v38 = vadd.f32 %v871_v50, %v808_v54  ;;  %v937_v60 = vadd.f32 %v5686_v62, %v936_v6  ;;  %v1220_v49 = vsel %vm1092_vm11, %v1156_v48, 0.0  ;;  %v1528_v1 = vadd.f32 %v3683_v11, %v1527_v15  ;;  %v3641_v11 = vld [vmem:[%s4448_s29 + $0x2f0] sm:$0xff] }
 0x11e   : > { %vm1094_vm10 = vcmp.gt.f32.partialorder %v5819_v18, 0.0  ;;  %v1283_v31 = vmul.f32 %v1219_v39, %v1219_v39  ;;  %v3685_v51 = vsel %vm1080_vm6, 1.0, %v9187_v22  ;;  %v1473_v33 = vadd.f32 %v1472_v0, %v1281_v19  ;;  %v5888_v19 = vld [vmem:[%s4454_s8 + $0x2f0] sm:$0xff] }
 0x11f   : > { %873 = vst [vmem:[#allocation7] sm:$0xff] %v872_v38  ;;  %v938_v4 = vadd.f32 %v937_v60, %v874_v45  ;;  %v1159_v62 = vsub.f32 %v5833_v26, %v3636_v25  ;;  %v1221_v48 = vsel %vm1093_vm15, %v1157_v44, 0.0  ;;  %v1529_v10 = vadd.f32 %v3684_v13, %v1528_v1  ;;  %v5899_v45 = vld [vmem:[%s4454_s8 + $0x2f8] sm:$0xff]  ;;  %v5910_v60 = vld [vmem:[%s4454_s8 + $0x300] sm:$0xff] }
 0x120   : > { %vm1095_vm12 = vcmp.gt.f32.partialorder %v5833_v26, 0.0  ;;  %v1284_v43 = vmul.f32 %v1220_v49, %v1220_v49  ;;  %v3686_v12 = vsel %vm1081_vm7, 1.0, %v9187_v22  ;;  %v1474_v40 = vadd.f32 %v1473_v33, %v1282_v37  ;;  %v3642_v25 = vld [vmem:[%s4448_s29 + $0x2f8] sm:$0xff]  ;;  %v3643_v49 = vld [vmem:[%s4448_s29 + $0x300] sm:$0xff] }
 0x121   : > { %939 = vst [vmem:[#allocation8] sm:$0xff] %v938_v4  ;;  %v1160_v63 = vsub.f32 %v5844_v61, %v3637_v7  ;;  %v1222_v17 = vsel %vm1094_vm10, %v1158_v21, 0.0  ;;  %v1530_v3 = vadd.f32 %v3685_v51, %v1529_v10  ;;  %vm1096_vm6 = vcmp.gt.f32.partialorder %v5844_v61, 0.0  ;;  %v5921_v4 = vld [vmem:[%s4454_s8 + $0x308] sm:$0xff] }
 0x122   : > { %v1285_v20 = vmul.f32 %v1221_v48, %v1221_v48  ;;  %v3687_v28 = vsel %vm1082_vm1, 1.0, %v9187_v22  ;;  %v1475_v9 = vadd.f32 %v1474_v40, %v1283_v31  ;;  %v1161_v44 = vsub.f32 %v5855_v53, %v3638_v41  ;;  %v5932_v40 = vld [vmem:[%s4454_s8 + $0x310] sm:$0xff] }
 0x123   : > { %v1223_v46 = vsel %vm1095_vm12, %v1159_v62, 0.0  ;;  %v1531_v23 = vadd.f32 %v3686_v12, %v1530_v3  ;;  %vm1097_vm7 = vcmp.gt.f32.partialorder %v5855_v53, 0.0  ;;  %v1286_v2 = vmul.f32 %v1222_v17, %v1222_v17  ;;  %v3644_v62 = vld [vmem:[%s4448_s29 + $0x308] sm:$0xff] }
 0x124   : > { %v3688_v42 = vsel %vm1083_vm4, 1.0, %v9187_v22  ;;  %v1476_v24 = vadd.f32 %v1475_v9, %v1284_v43  ;;  %v1162_v36 = vsub.f32 %v5866_v30, %v3639_v29  ;;  %v1224_v52 = vsel %vm1096_vm6, %v1160_v63, 0.0  ;;  %v3645_v63 = vld [vmem:[%s4448_s29 + $0x310] sm:$0xff]  ;;  %v5943_v9 = vld [vmem:[%s4454_s8 + $0x318] sm:$0xff] }
 0x125   : > { %v1532_v54 = vadd.f32 %v3687_v28, %v1531_v23  ;;  %vm1098_vm1 = vcmp.gt.f32.partialorder %v5866_v30, 0.0  ;;  %v1287_v47 = vmul.f32 %v1223_v46, %v1223_v46  ;;  %v3689_v34 = vsel %vm1084_vm5, 1.0, %v9187_v22 }
 0x126   : > { %v1477_v50 = vadd.f32 %v1476_v24, %v1285_v20  ;;  %v1163_v6 = vsub.f32 %v5877_v58, %v3640_v56  ;;  %v1225_v39 = vsel %vm1097_vm7, %v1161_v44, 0.0  ;;  %vm1099_vm4 = vcmp.gt.f32.partialorder %v5877_v58, 0.0  ;;  %v3646_v44 = vld [vmem:[%s4448_s29 + $0x318] sm:$0xff]  ;;  %v5954_v24 = vld [vmem:[%s4454_s8 + $0x320] sm:$0xff] }
 0x127   : > { %v1533_v15 = vadd.f32 %v3688_v42, %v1532_v54  ;;  %v1288_v21 = vmul.f32 %v1224_v52, %v1224_v52  ;;  %v3690_v35 = vsel %vm1085_vm8, 1.0, %v9187_v22  ;;  %v1164_v13 = vsub.f32 %v5888_v19, %v3641_v11 }
 0x128   : > { %v1478_v37 = vadd.f32 %v1477_v50, %v1286_v2  ;;  %v1226_v0 = vsel %vm1098_vm1, %v1162_v36, 0.0  ;;  %vm1100_vm5 = vcmp.gt.f32.partialorder %v5888_v19, 0.0  ;;  %v1289_v1 = vmul.f32 %v1225_v39, %v1225_v39  ;;  %v3647_v36 = vld [vmem:[%s4448_s29 + $0x320] sm:$0xff]  ;;  %v5965_v50 = vld [vmem:[%s4454_s8 + $0x328] sm:$0xff] }
 0x129   : > { %v1534_v38 = vadd.f32 %v3689_v34, %v1533_v15  ;;  %v3691_v57 = vsel %vm1086_vm3, 1.0, %v9187_v22  ;;  %v1165_v31 = vsub.f32 %v5899_v45, %v3642_v25  ;;  %v1227_v51 = vsel %vm1099_vm4, %v1163_v6, 0.0  ;;  %v3648_v6 = vld [vmem:[%s4448_s29 + $0x328] sm:$0xff] }
 0x12a   : > { %v1479_v7 = vadd.f32 %v1478_v37, %v1287_v47  ;;  %vm1101_vm8 = vcmp.gt.f32.partialorder %v5899_v45, 0.0  ;;  %v1290_v48 = vmul.f32 %v1226_v0, %v1226_v0  ;;  %v3692_v32 = vsel %vm1087_vm9, 1.0, %v9187_v22  ;;  %v5976_v37 = vld [vmem:[%s4454_s8 + $0x330] sm:$0xff] }
 0x12b   : > { %v1535_v33 = vadd.f32 %v3690_v35, %v1534_v38  ;;  %v1166_v41 = vsub.f32 %v5910_v60, %v3643_v49  ;;  %v1228_v43 = vsel %vm1100_vm5, %v1164_v13, 0.0  ;;  %vm1102_vm3 = vcmp.gt.f32.partialorder %v5910_v60, 0.0  ;;  %v3649_v13 = vld [vmem:[%s4448_s29 + $0x330] sm:$0xff] }
 0x12c   : > { %v1480_v10 = vadd.f32 %v1479_v7, %v1288_v21  ;;  %v1291_v17 = vmul.f32 %v1227_v51, %v1227_v51  ;;  %v3693_v5 = vsel %vm1088_vm0, 1.0, %v9187_v22  ;;  %v1167_v29 = vsub.f32 %v5921_v4, %v3644_v62  ;;  %v5987_v7 = vld [vmem:[%s4454_s8 + $0x338] sm:$0xff] }
 0x12d   : > { %v1536_v12 = vadd.f32 %v3691_v57, %v1535_v33  ;;  %v1229_v20 = vsel %vm1101_vm8, %v1165_v31, 0.0  ;;  %vm1103_vm9 = vcmp.gt.f32.partialorder %v5921_v4, 0.0  ;;  %v1292_v46 = vmul.f32 %v1228_v43, %v1228_v43  ;;  %v3650_v31 = vld [vmem:[%s4448_s29 + $0x338] sm:$0xff] }
 0x12e   : > { %v1481_v3 = vadd.f32 %v1480_v10, %v1289_v1  ;;  %v3694_v59 = vsel %vm1089_vm2, 1.0, %v9187_v22  ;;  %v1168_v56 = vsub.f32 %v5932_v40, %v3645_v63  ;;  %v1230_v2 = vsel %vm1102_vm3, %v1166_v41, 0.0  ;;  %v5998_v10 = vld [vmem:[%s4454_s8 + $0x340] sm:$0xff] }
 0x12f   : > { %v1537_v28 = vadd.f32 %v3692_v32, %v1536_v12  ;;  %vm1104_vm0 = vcmp.gt.f32.partialorder %v5932_v40, 0.0  ;;  %v1293_v52 = vmul.f32 %v1229_v20, %v1229_v20  ;;  %v3695_v16 = vsel %vm1090_vm13, 1.0, %v9187_v22  ;;  %v3651_v41 = vld [vmem:[%s4448_s29 + $0x340] sm:$0xff] }
 0x130   : > { %v1482_v23 = vadd.f32 %v1481_v3, %v1290_v48  ;;  %v1169_v11 = vsub.f32 %v5943_v9, %v3646_v44  ;;  %v1231_v47 = vsel %vm1103_vm9, %v1167_v29, 0.0  ;;  %vm1105_vm2 = vcmp.gt.f32.partialorder %v5943_v9, 0.0  ;;  %v6009_v3 = vld [vmem:[%s4454_s8 + $0x348] sm:$0xff] }
 0x131   : > { %v1538_v42 = vadd.f32 %v3693_v5, %v1537_v28  ;;  %v1294_v39 = vmul.f32 %v1230_v2, %v1230_v2  ;;  %v3696_v27 = vsel %vm1091_vm14, 1.0, %v9187_v22  ;;  %v1170_v25 = vsub.f32 %v5954_v24, %v3647_v36  ;;  %v3652_v29 = vld [vmem:[%s4448_s29 + $0x348] sm:$0xff] }
 0x132   : > { %v1483_v54 = vadd.f32 %v1482_v23, %v1291_v17  ;;  %v1232_v21 = vsel %vm1104_vm0, %v1168_v56, 0.0  ;;  %vm1106_vm13 = vcmp.gt.f32.partialorder %v5954_v24, 0.0  ;;  %v1295_v0 = vmul.f32 %v1231_v47, %v1231_v47  ;;  %v6020_v23 = vld [vmem:[%s4454_s8 + $0x350] sm:$0xff] }
 0x133   : > { %v1539_v34 = vadd.f32 %v3694_v59, %v1538_v42  ;;  %v3697_v14 = vsel %vm1092_vm11, 1.0, %v9187_v22  ;;  %v1171_v49 = vsub.f32 %v5965_v50, %v3648_v6  ;;  %v1233_v1 = vsel %vm1105_vm2, %v1169_v11, 0.0  ;;  %v3653_v56 = vld [vmem:[%s4448_s29 + $0x350] sm:$0xff]  ;;  %v3654_v11 = vld [vmem:[%s4448_s29 + $0x358] sm:$0xff] }
 0x134   : > { %v1484_v15 = vadd.f32 %v1483_v54, %v1292_v46  ;;  %vm1107_vm14 = vcmp.gt.f32.partialorder %v5965_v50, 0.0  ;;  %v1296_v51 = vmul.f32 %v1232_v21, %v1232_v21  ;;  %v3698_v55 = vsel %vm1093_vm15, 1.0, %v9187_v22  ;;  %v6031_v54 = vld [vmem:[%s4454_s8 + $0x358] sm:$0xff] }
 0x135   : > { %v1540_v35 = vadd.f32 %v3695_v16, %v1539_v34  ;;  %v1172_v62 = vsub.f32 %v5976_v37, %v3649_v13  ;;  %v1234_v48 = vsel %vm1106_vm13, %v1170_v25, 0.0  ;;  %vm1108_vm11 = vcmp.gt.f32.partialorder %v5976_v37, 0.0  ;;  %v3655_v25 = vld [vmem:[%s4448_s29 + $0x360] sm:$0xff] }
 0x136   : > { %v1485_v38 = vadd.f32 %v1484_v15, %v1293_v52  ;;  %v1297_v43 = vmul.f32 %v1233_v1, %v1233_v1  ;;  %v3699_v8 = vsel %vm1094_vm10, 1.0, %v9187_v22  ;;  %v1173_v63 = vsub.f32 %v5987_v7, %v3650_v31  ;;  %v6042_v15 = vld [vmem:[%s4454_s8 + $0x360] sm:$0xff] }
 0x137   : > { %v1541_v57 = vadd.f32 %v3696_v27, %v1540_v35  ;;  %v1235_v17 = vsel %vm1107_vm14, %v1171_v49, 0.0  ;;  %vm1109_vm15 = vcmp.gt.f32.partialorder %v5987_v7, 0.0  ;;  %v1298_v20 = vmul.f32 %v1234_v48, %v1234_v48  ;;  %v3656_v49 = vld [vmem:[%s4448_s29 + $0x368] sm:$0xff] }
 0x138   : > { %v1486_v33 = vadd.f32 %v1485_v38, %v1294_v39  ;;  %v3700_v18 = vsel %vm1095_vm12, 1.0, %v9187_v22  ;;  %v1174_v44 = vsub.f32 %v5998_v10, %v3651_v41  ;;  %v1236_v46 = vsel %vm1108_vm11, %v1172_v62, 0.0  ;;  %v6053_v38 = vld [vmem:[%s4454_s8 + $0x368] sm:$0xff]  ;;  %v3657_v62 = vld [vmem:[%s4448_s29 + $0x370] sm:$0xff] }
 0x139   : > { %v1542_v32 = vadd.f32 %v3697_v14, %v1541_v57  ;;  %vm1110_vm10 = vcmp.gt.f32.partialorder %v5998_v10, 0.0  ;;  %v1299_v2 = vmul.f32 %v1235_v17, %v1235_v17  ;;  %v3701_v26 = vsel %vm1096_vm6, 1.0, %v9187_v22 }
 0x13a   : > { %v1487_v12 = vadd.f32 %v1486_v33, %v1295_v0  ;;  %v1175_v36 = vsub.f32 %v6009_v3, %v3652_v29  ;;  %v1237_v52 = vsel %vm1109_vm15, %v1173_v63, 0.0  ;;  %vm1111_vm12 = vcmp.gt.f32.partialorder %v6009_v3, 0.0  ;;  %v6064_v33 = vld [vmem:[%s4454_s8 + $0x370] sm:$0xff]  ;;  %v3658_v63 = vld [vmem:[%s4448_s29 + $0x378] sm:$0xff] }
 0x13b   : > { %v1543_v5 = vadd.f32 %v3698_v55, %v1542_v32  ;;  %v1300_v47 = vmul.f32 %v1236_v46, %v1236_v46  ;;  %v3702_v61 = vsel %vm1097_vm7, 1.0, %v9187_v22  ;;  %v1176_v6 = vsub.f32 %v6020_v23, %v3653_v56 }
 0x13c   : > { %v1488_v28 = vadd.f32 %v1487_v12, %v1296_v51  ;;  %v1238_v39 = vsel %vm1110_vm10, %v1174_v44, 0.0  ;;  %vm1112_vm6 = vcmp.gt.f32.partialorder %v6020_v23, 0.0  ;;  %v1301_v21 = vmul.f32 %v1237_v52, %v1237_v52  ;;  %v6075_v12 = vld [vmem:[%s4454_s8 + $0x378] sm:$0xff]  ;;  %v3659_v44 = vld [vmem:[%s4448_s29 + $0x380] sm:$0xff] }
 0x13d   : > { %v1544_v59 = vadd.f32 %v3699_v8, %v1543_v5  ;;  %v3703_v53 = vsel %vm1098_vm1, 1.0, %v9187_v22  ;;  %v1177_v13 = vsub.f32 %v6031_v54, %v3654_v11  ;;  %v1239_v0 = vsel %vm1111_vm12, %v1175_v36, 0.0  ;;  %v3660_v36 = vld [vmem:[%s4448_s29 + $0x388] sm:$0xff] }
 0x13e   : > { %v1489_v42 = vadd.f32 %v1488_v28, %v1297_v43  ;;  %vm1113_vm7 = vcmp.gt.f32.partialorder %v6031_v54, 0.0  ;;  %v1302_v1 = vmul.f32 %v1238_v39, %v1238_v39  ;;  %v3704_v30 = vsel %vm1099_vm4, 1.0, %v9187_v22  ;;  %v6086_v28 = vld [vmem:[%s4454_s8 + $0x380] sm:$0xff] }
 0x13f   : > { %v1545_v16 = vadd.f32 %v3700_v18, %v1544_v59  ;;  %v1178_v31 = vsub.f32 %v6042_v15, %v3655_v25  ;;  %v1240_v51 = vsel %vm1112_vm6, %v1176_v6, 0.0  ;;  %vm1114_vm1 = vcmp.gt.f32.partialorder %v6042_v15, 0.0  ;;  %v3661_v6 = vld [vmem:[%s4448_s29 + $0x390] sm:$0xff] }
 0x140   : > { %v1490_v34 = vadd.f32 %v1489_v42, %v1298_v20  ;;  %v1303_v48 = vmul.f32 %v1239_v0, %v1239_v0  ;;  %v3705_v58 = vsel %vm1100_vm5, 1.0, %v9187_v22  ;;  %v1179_v41 = vsub.f32 %v6053_v38, %v3656_v49  ;;  %v6097_v42 = vld [vmem:[%s4454_s8 + $0x388] sm:$0xff] }
 0x141   : > { %v1546_v27 = vadd.f32 %v3701_v26, %v1545_v16  ;;  %v1241_v43 = vsel %vm1113_vm7, %v1177_v13, 0.0  ;;  %vm1115_vm4 = vcmp.gt.f32.partialorder %v6053_v38, 0.0  ;;  %v1304_v17 = vmul.f32 %v1240_v51, %v1240_v51  ;;  %v3662_v13 = vld [vmem:[%s4448_s29 + $0x398] sm:$0xff] }
 0x142   : > { %v1491_v35 = vadd.f32 %v1490_v34, %v1299_v2  ;;  %v3706_v19 = vsel %vm1101_vm8, 1.0, %v9187_v22  ;;  %v1180_v29 = vsub.f32 %v6064_v33, %v3657_v62  ;;  %v1242_v20 = vsel %vm1114_vm1, %v1178_v31, 0.0  ;;  %v6108_v34 = vld [vmem:[%s4454_s8 + $0x390] sm:$0xff]  ;;  %v3663_v31 = vld [vmem:[%s4448_s29 + $0x3a0] sm:$0xff] }
 0x143   : > { %v1547_v14 = vadd.f32 %v3702_v61, %v1546_v27  ;;  %vm1116_vm5 = vcmp.gt.f32.partialorder %v6064_v33, 0.0  ;;  %v1305_v46 = vmul.f32 %v1241_v43, %v1241_v43  ;;  %v3707_v45 = vsel %vm1102_vm3, 1.0, %v9187_v22 }
 0x144   : > { %v1492_v57 = vadd.f32 %v1491_v35, %v1300_v47  ;;  %v1181_v56 = vsub.f32 %v6075_v12, %v3658_v63  ;;  %v1243_v2 = vsel %vm1115_vm4, %v1179_v41, 0.0  ;;  %vm1117_vm8 = vcmp.gt.f32.partialorder %v6075_v12, 0.0  ;;  %v6119_v35 = vld [vmem:[%s4454_s8 + $0x398] sm:$0xff]  ;;  %v3664_v41 = vld [vmem:[%s4448_s29 + $0x3a8] sm:$0xff] }
 0x145   : > { %v1548_v55 = vadd.f32 %v3703_v53, %v1547_v14  ;;  %v1306_v52 = vmul.f32 %v1242_v20, %v1242_v20  ;;  %v3708_v60 = vsel %vm1103_vm9, 1.0, %v9187_v22  ;;  %v1182_v11 = vsub.f32 %v6086_v28, %v3659_v44 }
 0x146   : > { %v1493_v32 = vadd.f32 %v1492_v57, %v1301_v21  ;;  %v1244_v47 = vsel %vm1116_vm5, %v1180_v29, 0.0  ;;  %vm1118_vm3 = vcmp.gt.f32.partialorder %v6086_v28, 0.0  ;;  %v1307_v39 = vmul.f32 %v1243_v2, %v1243_v2  ;;  %v6130_v57 = vld [vmem:[%s4454_s8 + $0x3a0] sm:$0xff]  ;;  %v3665_v29 = vld [vmem:[%s4448_s29 + $0x3b0] sm:$0xff] }
 0x147   : > { %v1549_v8 = vadd.f32 %v3704_v30, %v1548_v55  ;;  %v3709_v4 = vsel %vm1104_vm0, 1.0, %v9187_v22  ;;  %v1183_v25 = vsub.f32 %v6097_v42, %v3660_v36  ;;  %v1245_v21 = vsel %vm1117_vm8, %v1181_v56, 0.0  ;;  %v3666_v56 = vld [vmem:[%s4448_s29 + $0x3b8] sm:$0xff] }
 0x148   : > { %v1494_v5 = vadd.f32 %v1493_v32, %v1302_v1  ;;  %vm1119_vm9 = vcmp.gt.f32.partialorder %v6097_v42, 0.0  ;;  %v1308_v0 = vmul.f32 %v1244_v47, %v1244_v47  ;;  %v3710_v40 = vsel %vm1105_vm2, 1.0, %v9187_v22  ;;  %v6141_v32 = vld [vmem:[%s4454_s8 + $0x3a8] sm:$0xff] }
 0x149   : > { %v1550_v18 = vadd.f32 %v3705_v58, %v1549_v8  ;;  %v1184_v49 = vsub.f32 %v6108_v34, %v3661_v6  ;;  %v1246_v1 = vsel %vm1118_vm3, %v1182_v11, 0.0  ;;  %vm1120_vm0 = vcmp.gt.f32.partialorder %v6108_v34, 0.0  ;;  %v3667_v11 = vld [vmem:[%s4448_s29 + $0x3c0] sm:$0xff] }
 0x14a   : > { %v1495_v59 = vadd.f32 %v1494_v5, %v1303_v48  ;;  %v1309_v51 = vmul.f32 %v1245_v21, %v1245_v21  ;;  %v3711_v9 = vsel %vm1106_vm13, 1.0, %v9187_v22  ;;  %v1185_v62 = vsub.f32 %v6119_v35, %v3662_v13  ;;  %v6152_v5 = vld [vmem:[%s4454_s8 + $0x3b0] sm:$0xff] }
 0x14b   : > { %v1551_v26 = vadd.f32 %v3706_v19, %v1550_v18  ;;  %v1247_v48 = vsel %vm1119_vm9, %v1183_v25, 0.0  ;;  %vm1121_vm2 = vcmp.gt.f32.partialorder %v6119_v35, 0.0  ;;  %v1310_v43 = vmul.f32 %v1246_v1, %v1246_v1  ;;  %v3668_v25 = vld [vmem:[%s4448_s29 + $0x3c8] sm:$0xff] }
 0x14c   : > { %v1496_v16 = vadd.f32 %v1495_v59, %v1304_v17  ;;  %v3712_v24 = vsel %vm1107_vm14, 1.0, %v9187_v22  ;;  %v1186_v63 = vsub.f32 %v6130_v57, %v3663_v31  ;;  %v1248_v17 = vsel %vm1120_vm0, %v1184_v49, 0.0  ;;  %v6163_v59 = vld [vmem:[%s4454_s8 + $0x3b8] sm:$0xff]  ;;  %v3669_v49 = vld [vmem:[%s4448_s29 + $0x3d0] sm:$0xff] }
 0x14d   : > { %v1552_v61 = vadd.f32 %v3707_v45, %v1551_v26  ;;  %vm1122_vm13 = vcmp.gt.f32.partialorder %v6130_v57, 0.0  ;;  %v1311_v20 = vmul.f32 %v1247_v48, %v1247_v48  ;;  %v3713_v50 = vsel %vm1108_vm11, 1.0, %v9187_v22 }
 0x14e   : > { %v1497_v27 = vadd.f32 %v1496_v16, %v1305_v46  ;;  %v1187_v44 = vsub.f32 %v6141_v32, %v3664_v41  ;;  %v1249_v46 = vsel %vm1121_vm2, %v1185_v62, 0.0  ;;  %vm1123_vm14 = vcmp.gt.f32.partialorder %v6141_v32, 0.0  ;;  %v6174_v16 = vld [vmem:[%s4454_s8 + $0x3c0] sm:$0xff]  ;;  %v3670_v62 = vld [vmem:[%s4448_s29 + $0x3d8] sm:$0xff] }
 0x14f   : > { %v1553_v53 = vadd.f32 %v3708_v60, %v1552_v61  ;;  %v1312_v2 = vmul.f32 %v1248_v17, %v1248_v17  ;;  %v3714_v37 = vsel %vm1109_vm15, 1.0, %v9187_v22  ;;  %v1188_v36 = vsub.f32 %v6152_v5, %v3665_v29 }
 0x150   : > { %v1498_v14 = vadd.f32 %v1497_v27, %v1306_v52  ;;  %v1250_v52 = vsel %vm1122_vm13, %v1186_v63, 0.0  ;;  %vm1124_vm11 = vcmp.gt.f32.partialorder %v6152_v5, 0.0  ;;  %v1313_v47 = vmul.f32 %v1249_v46, %v1249_v46  ;;  %v6185_v27 = vld [vmem:[%s4454_s8 + $0x3c8] sm:$0xff]  ;;  %v3671_v63 = vld [vmem:[%s4448_s29 + $0x3e0] sm:$0xff] }
 0x151   : > { %v1554_v30 = vadd.f32 %v3709_v4, %v1553_v53  ;;  %v3715_v7 = vsel %vm1110_vm10, 1.0, %v9187_v22  ;;  %v1189_v6 = vsub.f32 %v6163_v59, %v3666_v56  ;;  %vm1125_vm15 = vcmp.gt.f32.partialorder %v6163_v59, 0.0 }
 0x152   : > { %v1499_v55 = vadd.f32 %v1498_v14, %v1307_v39  ;;  %v1251_v39 = vsel %vm1123_vm14, %v1187_v44, 0.0  ;;  %v1314_v21 = vmul.f32 %v1250_v52, %v1250_v52  ;;  %v3716_v10 = vsel %vm1111_vm12, 1.0, %v9187_v22  ;;  %v6196_v14 = vld [vmem:[%s4454_s8 + $0x3d0] sm:$0xff]  ;;  %v3672_v44 = vld [vmem:[%s4448_s29 + $0x3e8] sm:$0xff] }
 0x153   : > { %v1555_v58 = vadd.f32 %v3710_v40, %v1554_v30  ;;  %v1190_v13 = vsub.f32 %v6174_v16, %v3667_v11  ;;  %vm1126_vm10 = vcmp.gt.f32.partialorder %v6174_v16, 0.0  ;;  %v1315_v1 = vmul.f32 %v1251_v39, %v1251_v39 }
 0x154   : > { %v1500_v8 = vadd.f32 %v1499_v55, %v1308_v0  ;;  %v1252_v0 = vsel %vm1124_vm11, %v1188_v36, 0.0  ;;  %v3717_v3 = vsel %vm1112_vm6, 1.0, %v9187_v22  ;;  %v1191_v31 = vsub.f32 %v6185_v27, %v3668_v25  ;;  %v6207_v55 = vld [vmem:[%s4454_s8 + $0x3d8] sm:$0xff]  ;;  %v3673_v36 = vld [vmem:[%s4448_s29 + $0x3f0] sm:$0xff] }
 0x155   : > { %v1556_v19 = vadd.f32 %v3711_v9, %v1555_v58  ;;  %vm1127_vm12 = vcmp.gt.f32.partialorder %v6185_v27, 0.0  ;;  %v1316_v48 = vmul.f32 %v1252_v0, %v1252_v0  ;;  %v3718_v23 = vsel %vm1113_vm7, 1.0, %v9187_v22 }
 0x156   : > { %v1501_v18 = vadd.f32 %v1500_v8, %v1309_v51  ;;  %v1253_v51 = vsel %vm1125_vm15, %v1189_v6, 0.0  ;;  %v1192_v41 = vsub.f32 %v6196_v14, %v3669_v49  ;;  %v6218_v8 = vld [vmem:[%s4454_s8 + $0x3e0] sm:$0xff]  ;;  %vm1128_vm6 = vcmp.gt.f32.partialorder %v6196_v14, 0.0  ;;  %v3674_v6 = vld [vmem:[%s4448_s29 + $0x3f8] sm:$0xff] }
 0x157   : > { %v1557_v45 = vadd.f32 %v3712_v24, %v1556_v19  ;;  %v1317_v17 = vmul.f32 %v1253_v51, %v1253_v51  ;;  %v3719_v54 = vsel %vm1114_vm1, 1.0, %v9187_v22  ;;  %v1193_v29 = vsub.f32 %v6207_v55, %v3670_v62 }
 0x158   : > { %v1502_v26 = vadd.f32 %v1501_v18, %v1310_v43  ;;  %v1254_v43 = vsel %vm1126_vm10, %v1190_v13, 0.0  ;;  %v6229_v18 = vld [vmem:[%s4454_s8 + $0x3e8] sm:$0xff]  ;;  %vm1129_vm7 = vcmp.gt.f32.partialorder %v6207_v55, 0.0  ;;  %v3720_v15 = vsel %vm1115_vm4, 1.0, %v9187_v22 }
 0x159   : > { %v1558_v60 = vadd.f32 %v3713_v50, %v1557_v45  ;;  %v1318_v46 = vmul.f32 %v1254_v43, %v1254_v43  ;;  %v1194_v56 = vsub.f32 %v6218_v8, %v3671_v63  ;;  %vm1130_vm1 = vcmp.gt.f32.partialorder %v6218_v8, 0.0 }
 0x15a   : > { %v1503_v61 = vadd.f32 %v1502_v26, %v1311_v20  ;;  %v1255_v20 = vsel %vm1127_vm12, %v1191_v31, 0.0  ;;  %v6240_v26 = vld [vmem:[%s4454_s8 + $0x3f0] sm:$0xff]  ;;  %v1195_v11 = vsub.f32 %v6229_v18, %v3672_v44  ;;  %vm1131_vm4 = vcmp.gt.f32.partialorder %v6229_v18, 0.0 }
 0x15b   : > { %v1559_v4 = vadd.f32 %v3714_v37, %v1558_v60  ;;  %v1319_v52 = vmul.f32 %v1255_v20, %v1255_v20  ;;  %v3721_v60 = vsel %vm1116_vm5, 1.0, %v9187_v22  ;;  %v1196_v33 = vsub.f32 %v6240_v26, %v3673_v36 }
 0x15c   : > { %v1504_v53 = vadd.f32 %v1503_v61, %v1312_v2  ;;  %v1256_v2 = vsel %vm1128_vm6, %v1192_v41, 0.0  ;;  %v3610_v61 = vld [vmem:[%s4454_s8 + $0x3f8] sm:$0xff]  ;;  %vm1132_vm5 = vcmp.gt.f32.partialorder %v6240_v26, 0.0  ;;  %v3723_v13 = vsel %vm1118_vm3, 1.0, %v9187_v22 }
 0x15d   : > { %v1560_v40 = vadd.f32 %v3715_v7, %v1559_v4  ;;  %v1320_v39 = vmul.f32 %v1256_v2, %v1256_v2  ;;  %v3722_v4 = vsel %vm1117_vm8, 1.0, %v9187_v22  ;;  %v1259_v12 = vsel %vm1131_vm4, %v1195_v11, 0.0 }
 0x15e   : > { %v1505_v30 = vadd.f32 %v1504_v53, %v1313_v47  ;;  %v1257_v47 = vsel %vm1129_vm7, %v1193_v29, 0.0  ;;  %vm1133_vm8 = vcmp.gt.f32.partialorder %v3610_v61, 0.0  ;;  %v1260_v31 = vsel %vm1132_vm5, %v1196_v33, 0.0  ;;  %v1454_v29 = vld [vmem:[#allocation7] sm:$0xff] }
 0x15f   : > { %v1561_v9 = vadd.f32 %v3716_v10, %v1560_v40  ;;  %v1321_v53 = vmul.f32 %v1257_v47, %v1257_v47  ;;  %v1197_v40 = vsub.f32 %v3610_v61, %v3674_v6  ;;  %v3725_v28 = vsel %vm1120_vm0, 1.0, %v9187_v22  ;;  %v1520_v47 = vld [vmem:[#allocation8] sm:$0xff] }
 0x160   : > { %v1506_v58 = vadd.f32 %v1505_v30, %v1314_v21  ;;  %v1258_v21 = vsel %vm1130_vm1, %v1194_v56, 0.0  ;;  %v3726_v42 = vsel %vm1121_vm2, 1.0, %v9187_v22  ;;  %v3727_v63 = vsel %vm1122_vm13, 1.0, %v9187_v22 }
 0x161   : > { %v1562_v24 = vadd.f32 %v3717_v3, %v1561_v9  ;;  %v3724_v3 = vsel %vm1119_vm9, 1.0, %v9187_v22  ;;  %v1323_v9 = vmul.f32 %v1259_v12, %v1259_v12  ;;  %v3728_v34 = vsel %vm1123_vm14, 1.0, %v9187_v22 }
 0x162   : > { %v1507_v19 = vadd.f32 %v1506_v58, %v1315_v1  ;;  %v1322_v1 = vmul.f32 %v1258_v21, %v1258_v21  ;;  %v1324_v58 = vmul.f32 %v1260_v31, %v1260_v31  ;;  %v3729_v35 = vsel %vm1124_vm11, 1.0, %v9187_v22 }
 0x163   : > { %v1563_v50 = vadd.f32 %v3718_v23, %v1562_v24  ;;  %v3730_v57 = vsel %vm1125_vm15, 1.0, %v9187_v22  ;;  %v3731_v32 = vsel %vm1126_vm10, 1.0, %v9187_v22  ;;  %v3732_v56 = vsel %vm1127_vm12, 1.0, %v9187_v22 }
 0x164   : > { %v1508_v45 = vadd.f32 %v1507_v19, %v1316_v48  ;;  %v1261_v48 = vsel %vm1133_vm8, %v1197_v40, 0.0  ;;  %v3733_v2 = vsel %vm1128_vm6, 1.0, %v9187_v22  ;;  %v3734_v59 = vsel %vm1129_vm7, 1.0, %v9187_v22 }
 0x165   : > { %v1564_v37 = vadd.f32 %v3719_v54, %v1563_v50  ;;  %v1325_v24 = vmul.f32 %v1261_v48, %v1261_v48  ;;  %v3735_v16 = vsel %vm1130_vm1, 1.0, %v9187_v22  ;;  %v3736_v27 = vsel %vm1131_vm4, 1.0, %v9187_v22 }
 0x166   : > { %v1509_v38 = vadd.f32 %v1508_v45, %v1317_v17  ;;  %v3737_v14 = vsel %vm1132_vm5, 1.0, %v9187_v22  ;;  %v3738_v55 = vsel %vm1133_vm8, 1.0, %v9187_v22 }
 0x167   : > { %v1565_v7 = vadd.f32 %v3720_v15, %v1564_v37 }
 0x168   : > { %v1510_v25 = vadd.f32 %v1509_v38, %v1318_v46 }
 0x169   : > { %v1566_v10 = vadd.f32 %v3721_v60, %v1565_v7 }
 0x16a   : > { %v1511_v0 = vadd.f32 %v1510_v25, %v1319_v52 }
 0x16b   : > { %v1567_v49 = vadd.f32 %v3722_v4, %v1566_v10 }
 0x16c   : > { %v1512_v30 = vadd.f32 %v1511_v0, %v1320_v39 }
 0x16d   : > { %v1568_v51 = vadd.f32 %v3723_v13, %v1567_v49 }
 0x16e   : > { %v1513_v62 = vadd.f32 %v1512_v30, %v1321_v53 }
 0x16f   : > { %v1569_v23 = vadd.f32 %v3724_v3, %v1568_v51 }
 0x170   : > { %v1514_v41 = vadd.f32 %v1513_v62, %v1322_v1 }
 0x171   : > { %v1570_v43 = vadd.f32 %v3725_v28, %v1569_v23 }
 0x172   : > { %v1515_v17 = vadd.f32 %v1514_v41, %v1323_v9 }
 0x173   : > { %v1571_v54 = vadd.f32 %v3726_v42, %v1570_v43 }
 0x174   : > { %v1516_v19 = vadd.f32 %v1515_v17, %v1324_v58 }
 0x175   : > { %v1572_v20 = vadd.f32 %v3727_v63, %v1571_v54 }
 0x176   : > { %v1517_v50 = vadd.f32 %v1516_v19, %v1325_v24 }
 0x177   : > { %v1573_v44 = vadd.f32 %v3728_v34, %v1572_v20 }
 0x178   : > { %v1518_v46 = vadd.f32 %v1517_v50, %v1454_v29 }
 0x179   : > { %v1574_v15 = vadd.f32 %v3729_v35, %v1573_v44 }
 0x17a   : > { %1519 = vst [vmem:[#allocation7] sm:$0xff] %v1518_v46 }
 0x17b   : > { %v1575_v45 = vadd.f32 %v3730_v57, %v1574_v15 }
 0x17d   : > { %v1576_v5 = vadd.f32 %v3731_v32, %v1575_v45 }
 0x17f   : > { %v1577_v37 = vadd.f32 %v3732_v56, %v1576_v5 }
 0x181   : > { %v1578_v36 = vadd.f32 %v3733_v2, %v1577_v37 }
 0x183   : > { %v1579_v52 = vadd.f32 %v3734_v59, %v1578_v36 }
 0x185   : > { %v1580_v60 = vadd.f32 %v3735_v16, %v1579_v52 }
 0x187   : > { %v1581_v38 = vadd.f32 %v3736_v27, %v1580_v60 }
 0x189   : > { %v1582_v11 = vadd.f32 %v3737_v14, %v1581_v38 }
 0x18b   : > { %v1583_v7 = vadd.f32 %v3738_v55, %v1582_v11 }
 0x18d   : > { %v1584_v6 = vadd.f32 %v1583_v7, %v1520_v47 }
 0x18f   : > { %1585 = vst [vmem:[#allocation8] sm:$0xff] %v1584_v6 }
 0x190 PF: > { %p3739_p7 = scmp.le.s32.totalorder %s291_s9, 1096 }
 0x192   : > { %1589 = sbr.rel (%p3739_p7) target bundleno = 736 (0x2e0), region = 48 }
 0x197   : > { %v1590_v8 = vlaneseq  ;;  %v6317_v26 = vld [vmem:[%s4454_s8] sm:$0xff]  ;;  %v6329_v4 = vld [vmem:[%s4454_s8 + $0x8] sm:$0xff]  ;;  %v6332_v25 = vstv %s4462_s21  ;;  %v6385_v62 = vld [vmem:[%s4454_s8 + $0x10] sm:$0xff]  ;;  %s2687_s15 = sadd.s32 512, %s4462_s21 }
 0x198   : > { %vm1783_vm3 = vcmp.gt.f32.partialorder %v6317_v26, 0.0  ;;  %vm1784_vm9 = vcmp.gt.f32.partialorder %v6329_v4, 0.0  ;;  %v6409_v63 = vld [vmem:[%s4454_s8 + $0x18] sm:$0xff]  ;;  %vm1785_vm0 = vcmp.gt.f32.partialorder %v6385_v62, 0.0  ;;  %v6438_v57 = vld [vmem:[%s4454_s8 + $0x20] sm:$0xff]  ;;  %v6453_v56 = vld [vmem:[%s4454_s8 + $0x28] sm:$0xff] }
 0x199   : > { %v6314_v18 = vshrl.u32 %v1590_v8, 7  ;;  %vm1786_vm2 = vcmp.gt.f32.partialorder %v6409_v63, 0.0  ;;  %v1719_v59 = vld [vmem:[%s4448_s29] sm:$0xff]  ;;  %v1720_v36 = vld [vmem:[%s4448_s29 + $0x8] sm:$0xff]  ;;  %vm1787_vm14 = vcmp.gt.f32.partialorder %v6438_v57, 0.0  ;;  %vm1788_vm15 = vcmp.gt.f32.partialorder %v6453_v56, 0.0 }
 0x19a   : > { %v2041_v6 = vsub.f32 %v6317_v26, %v1719_v59  ;;  %v2042_v8 = vsub.f32 %v6329_v4, %v1720_v36  ;;  %v1728_v7 = vld [vmem:[%s4448_s29 + $0x48] sm:$0xff] }
 0x19b   : > { %9354 = vst [vmem:[#allocation61_spill] sm:$0xff] %v6314_v18  ;;  %v6320_v22 = vadd.s32 8, %v6314_v18  ;;  %v6323_v61 = vadd.s32 16, %v6314_v18  ;;  %v6326_v39 = vadd.s32 24, %v6314_v18  ;;  %v6335_v33 = vadd.s32 32, %v6314_v18 }
 0x19c   : > { %v6338_v21 = vadd.s32 40, %v6314_v18  ;;  %v6341_v10 = vadd.s32 48, %v6314_v18  ;;  %v6344_v53 = vadd.s32 56, %v6314_v18  ;;  %v6347_v13 = vadd.s32 64, %v6314_v18 }
 0x19d   : > { %9355 = vst [vmem:[#allocation62_spill] sm:$0xff] %v6320_v22  ;;  %v6350_v0 = vadd.s32 72, %v6314_v18  ;;  %v6353_v40 = vadd.s32 80, %v6314_v18  ;;  %v6356_v12 = vadd.s32 88, %v6314_v18  ;;  %v6360_v49 = vadd.s32 96, %v6314_v18 }
 0x19e   : > { %9356 = vst [vmem:[#allocation63_spill] sm:$0xff] %v6323_v61  ;;  %v6363_v1 = vadd.s32 104, %v6314_v18  ;;  %v6366_v3 = vadd.s32 112, %v6314_v18  ;;  %v6369_v30 = vadd.s32 120, %v6314_v18  ;;  %v6373_v31 = vadd.s32 128, %v6314_v18 }
 0x19f   : > { %9357 = vst [vmem:[#allocation64_spill] sm:$0xff] %v6326_v39  ;;  %v6376_v51 = vadd.s32 136, %v6314_v18  ;;  %v6379_v9 = vadd.s32 144, %v6314_v18  ;;  %v6382_v28 = vadd.s32 152, %v6314_v18  ;;  %v6388_v48 = vadd.s32 160, %v6314_v18 }
 0x1a0   : > { %9358 = vst [vmem:[#allocation65_spill] sm:$0xff] %v6335_v33  ;;  %v6391_v23 = vadd.s32 168, %v6314_v18  ;;  %v6394_v58 = vadd.s32 176, %v6314_v18  ;;  %v6397_v42 = vadd.s32 184, %v6314_v18  ;;  %v6400_v41 = vadd.s32 192, %v6314_v18 }
 0x1a1   : > { %9359 = vst [vmem:[#allocation66_spill] sm:$0xff] %v6338_v21  ;;  %v6403_v43 = vadd.s32 200, %v6314_v18  ;;  %v6406_v24 = vadd.s32 208, %v6314_v18  ;;  %v1849_v17 = vadd.s32 %v6332_v25, %v6314_v18  ;;  %v6414_v54 = vadd.s32 216, %v6314_v18 }
 0x1a2   : > { %9360 = vst [vmem:[#allocation67_spill] sm:$0xff] %v6341_v10  ;;  %v6417_v34 = vadd.s32 224, %v6314_v18  ;;  %v6420_v19 = vadd.s32 232, %v6314_v18  ;;  %v1850_v29 = vadd.s32 %v6332_v25, %v6320_v22  ;;  %v6426_v20 = vadd.s32 240, %v6314_v18 }
 0x1a3   : > { %9361 = vst [vmem:[#allocation68_spill] sm:$0xff] %v6344_v53  ;;  %v6429_v35 = vadd.s32 248, %v6314_v18  ;;  %v6432_v50 = vadd.s32 256, %v6314_v18  ;;  %v6435_v44 = vadd.s32 264, %v6314_v18  ;;  %v6441_v46 = vadd.s32 272, %v6314_v18 }
 0x1a4   : > { %9362 = vst [vmem:[#allocation69_spill] sm:$0xff] %v6347_v13  ;;  %v6444_v15 = vadd.s32 280, %v6314_v18  ;;  %v6447_v32 = vadd.s32 288, %v6314_v18  ;;  %v6450_v45 = vadd.s32 296, %v6314_v18  ;;  %v6457_v5 = vadd.s32 304, %v6314_v18 }
 0x1a5   : > { %9363 = vst [vmem:[#allocation70_spill] sm:$0xff] %v6350_v0  ;;  %v6460_v2 = vadd.s32 312, %v6314_v18  ;;  %v6463_v37 = vadd.s32 320, %v6314_v18  ;;  %vm1913_vm13 = vcmp.lt.s32.totalorder %v1849_v17, 1096  ;;  %v6468_v16 = vadd.s32 328, %v6314_v18 }
 0x1a6   : > { %9364 = vst [vmem:[#allocation71_spill] sm:$0xff] %v6353_v40  ;;  %v6471_v52 = vadd.s32 336, %v6314_v18  ;;  %v1851_v27 = vadd.s32 %v6332_v25, %v6323_v61  ;;  %vm1914_vm11 = vcmp.lt.s32.totalorder %v1850_v29, 1096  ;;  %v6477_v60 = vadd.s32 344, %v6314_v18  ;;  %vm6496_vm10 = vmand %vm1783_vm3, %vm1913_vm13 }
 0x1a7   : > { %9365 = vst [vmem:[#allocation72_spill] sm:$0xff] %v6356_v12  ;;  %v6480_v14 = vadd.s32 352, %v6314_v18  ;;  %v6483_v38 = vadd.s32 360, %v6314_v18  ;;  %v6486_v55 = vadd.s32 368, %v6314_v18  ;;  %v6489_v11 = vadd.s32 376, %v6314_v18  ;;  %vm6518_vm12 = vmand %vm1784_vm9, %vm1914_vm11 }
 0x1a8   : > { %9366 = vst [vmem:[#allocation73_spill] sm:$0xff] %v6450_v45  ;;  %v1852_v47 = vadd.s32 %v6332_v25, %v6326_v39  ;;  %v6503_v17 = vadd.s32 384, %v6314_v18  ;;  %v6506_v61 = vadd.s32 392, %v6314_v18  ;;  %v6509_v22 = vadd.s32 400, %v6314_v18 }
 0x1a9   : > { %9367 = vst [vmem:[#allocation74_spill] sm:$0xff] %v6457_v5  ;;  %v6512_v39 = vadd.s32 408, %v6314_v18  ;;  %v6523_v59 = vadd.s32 416, %v6314_v18  ;;  %v6526_v36 = vadd.s32 424, %v6314_v18  ;;  %vm1915_vm6 = vcmp.lt.s32.totalorder %v1851_v27, 1096  ;;  %v1729_v5 = vld [vmem:[%s4448_s29 + $0x50] sm:$0xff] }
 0x1aa   : > { %9368 = vst [vmem:[#allocation75_spill] sm:$0xff] %v6460_v2  ;;  %v6534_v4 = vadd.s32 440, %v6314_v18  ;;  %v6537_v29 = vadd.s32 448, %v6314_v18  ;;  %vm1916_vm7 = vcmp.lt.s32.totalorder %v1852_v47, 1096  ;;  %vm6563_vm1 = vmand %vm1785_vm0, %vm1915_vm6  ;;  %v1855_v27 = vadd.s32 %v6332_v25, %v6341_v10 }
 0x1ab   : > { %9369 = vst [vmem:[#allocation76_spill] sm:$0xff] %v6463_v37  ;;  %vm6592_vm5 = vmand %vm1786_vm2, %vm1916_vm7  ;;  %v1860_v26 = vadd.s32 %v6332_v25, %v6356_v12  ;;  %v9409_v37 = vmov 0.0   ;;  %v6689_v12 = vld [vmem:[%s4454_s8 + $0x78] sm:$0xff] }
 0x1ac   : > { %9370 = vst [vmem:[#allocation77_spill] sm:$0xff] %v6468_v16  ;;  %vm1919_vm13 = vcmp.lt.s32.totalorder %v1855_v27, 1096  ;;  %v1859_v27 = vadd.s32 %v6332_v25, %v6353_v40 }
 0x1ad   : > { %9371 = vst [vmem:[#allocation78_spill] sm:$0xff] %v6471_v52 }
 0x1ae   : > { %9372 = vst [vmem:[#allocation79_spill] sm:$0xff] %v6477_v60  ;;  %v6597_v60 = vld [vmem:[%s4454_s8 + $0x48] sm:$0xff] }
 0x1af   : > { %9373 = vst [vmem:[#allocation80_spill] sm:$0xff] %v6480_v14  ;;  %vm1792_vm11 = vcmp.gt.f32.partialorder %v6597_v60, 0.0 }
 0x1b0   : > { %9374 = vst [vmem:[#allocation81_spill] sm:$0xff] %v6483_v38 }
 0x1b1   : > { %9375 = vst [vmem:[#allocation82_spill] sm:$0xff] %v6486_v55  ;;  %v6586_v55 = vadd.s32 504, %v6314_v18 }
 0x1b2   : > { %9376 = vst [vmem:[#allocation83_spill] sm:$0xff] %v6489_v11  ;;  %v1721_v11 = vld [vmem:[%s4448_s29 + $0x10] sm:$0xff] }
 0x1b3   : > { %9379 = vst [vmem:[#allocation84_spill] sm:$0xff] %v6503_v17  ;;  %v6554_v17 = vadd.s32 472, %v6314_v18 }
 0x1b4   : > { %9380 = vst [vmem:[#allocation85_spill] sm:$0xff] %v6506_v61  ;;  %v2105_v61 = vsel %vm6496_vm10, %v2041_v6, 0.0 }
 0x1b5   : > { %9381 = vst [vmem:[#allocation86_spill] sm:$0xff] %v6509_v22  ;;  %v1853_v22 = vadd.s32 %v6332_v25, %v6335_v33  ;;  %v2043_v33 = vsub.f32 %v6385_v62, %v1721_v11  ;;  %v1723_v11 = vld [vmem:[%s4448_s29 + $0x20] sm:$0xff]  ;;  %v2169_v14 = vmul.f32 %v2105_v61, %v2105_v61  ;;  %v1857_v61 = vadd.s32 %v6332_v25, %v6347_v13  ;;  %v1726_v13 = vld [vmem:[%s4448_s29 + $0x38] sm:$0xff] }
 0x1b6   : > { %9382 = vst [vmem:[#allocation87_spill] sm:$0xff] %v6512_v39  ;;  %v6531_v39 = vadd.s32 432, %v6314_v18  ;;  %v2045_v47 = vsub.f32 %v6438_v57, %v1723_v11  ;;  %v6621_v11 = vld [vmem:[%s4454_s8 + $0x58] sm:$0xff] }
 0x1b7   : > { %9385 = vst [vmem:[#allocation88_spill] sm:$0xff] %v6523_v59  ;;  %v1722_v59 = vld [vmem:[%s4448_s29 + $0x18] sm:$0xff]  ;;  %vm1917_vm4 = vcmp.lt.s32.totalorder %v1853_v22, 1096 }
 0x1b8   : > { %9386 = vst [vmem:[#allocation89_spill] sm:$0xff] %v6526_v36  ;;  %v1854_v36 = vadd.s32 %v6332_v25, %v6338_v21  ;;  %v6557_v21 = vadd.s32 480, %v6314_v18  ;;  %v2044_v62 = vsub.f32 %v6409_v63, %v1722_v59  ;;  %v6600_v59 = vld [vmem:[%s4454_s8 + $0x50] sm:$0xff]  ;;  %v2107_v63 = vsel %vm6563_vm1, %v2043_v33, 0.0  ;;  %vm6616_vm2 = vmand %vm1787_vm14, %vm1917_vm4 }
 0x1b9   : > { %9387 = vst [vmem:[#allocation90_spill] sm:$0xff] %v6531_v39  ;;  %v2106_v39 = vsel %vm6518_vm12, %v2042_v8, 0.0  ;;  %v6568_v8 = vadd.s32 488, %v6314_v18  ;;  %vm1793_vm14 = vcmp.gt.f32.partialorder %v6600_v59, 0.0  ;;  %v2171_v57 = vmul.f32 %v2107_v63, %v2107_v63 }
 0x1ba   : > { %9388 = vst [vmem:[#allocation91_spill] sm:$0xff] %v6534_v4  ;;  %v6548_v4 = vadd.s32 456, %v6314_v18  ;;  %v2170_v10 = vmul.f32 %v2106_v39, %v2106_v39  ;;  %vm1918_vm8 = vcmp.lt.s32.totalorder %v1854_v36, 1096  ;;  %v2109_v16 = vsel %vm6616_vm2, %v2045_v47, 0.0  ;;  %v6645_v36 = vld [vmem:[%s4454_s8 + $0x68] sm:$0xff] }
 0x1bb   : > { %9389 = vst [vmem:[#allocation92_spill] sm:$0xff] %v6537_v29  ;;  %v6551_v29 = vadd.s32 464, %v6314_v18  ;;  %vm6635_vm6 = vmand %vm1788_vm15, %vm1918_vm8  ;;  %vm1794_vm15 = vcmp.gt.f32.partialorder %v6621_v11, 0.0  ;;  %v9154_v63 = vmov 0.0   ;;  %v2173_v40 = vmul.f32 %v2109_v16, %v2109_v16 }
 0x1bc   : > { %9390 = vst [vmem:[#allocation93_spill] sm:$0xff] %v6548_v4  ;;  %v6574_v4 = vld [vmem:[%s4454_s8 + $0x38] sm:$0xff]  ;;  %v2362_v52 = vadd.f32 %v2170_v10, %v2169_v14  ;;  %v3741_v47 = vsel %vm6518_vm12, 1.0, %v9154_v63  ;;  %vm1796_vm12 = vcmp.gt.f32.partialorder %v6645_v36, 0.0  ;;  %v1861_v16 = vadd.s32 %v6332_v25, %v6360_v49 }
 0x1bd   : > { %9391 = vst [vmem:[#allocation94_spill] sm:$0xff] %v6551_v29  ;;  %v6571_v29 = vld [vmem:[%s4454_s8 + $0x30] sm:$0xff]  ;;  %vm1790_vm9 = vcmp.gt.f32.partialorder %v6574_v4, 0.0 }
 0x1be   : > { %9392 = vst [vmem:[#allocation95_spill] sm:$0xff] %v6554_v17  ;;  %v6577_v17 = vld [vmem:[%s4454_s8 + $0x40] sm:$0xff]  ;;  %vm1789_vm3 = vcmp.gt.f32.partialorder %v6571_v29, 0.0  ;;  %v2363_v2 = vadd.f32 %v2362_v52, %v2171_v57  ;;  %v3743_v57 = vsel %vm6592_vm5, 1.0, %v9409_v37 }
 0x1bf   : > { %9393 = vst [vmem:[#allocation96_spill] sm:$0xff] %v6557_v21  ;;  %v6583_v21 = vadd.s32 496, %v6314_v18  ;;  %v1856_v18 = vadd.s32 %v6332_v25, %v6344_v53  ;;  %vm1791_vm0 = vcmp.gt.f32.partialorder %v6577_v17, 0.0  ;;  %v2108_v53 = vsel %vm6592_vm5, %v2044_v62, 0.0  ;;  %vm6652_vm4 = vmand %vm1789_vm3, %vm1919_vm13 }
 0x1c0   : > { %9396 = vst [vmem:[#allocation97_spill] sm:$0xff] %v6568_v8  ;;  %v1724_v8 = vld [vmem:[%s4448_s29 + $0x28] sm:$0xff]  ;;  %v2172_v14 = vmul.f32 %v2108_v53, %v2108_v53  ;;  %vm1921_vm3 = vcmp.lt.s32.totalorder %v1857_v61, 1096 }
 0x1c1   : > { %9397 = vst [vmem:[#allocation98_spill] sm:$0xff] %v6583_v21  ;;  %v2046_v33 = vsub.f32 %v6453_v56, %v1724_v8  ;;  %v6627_v21 = vld [vmem:[%s4454_s8 + $0x60] sm:$0xff]  ;;  %v1858_v8 = vadd.s32 %v6332_v25, %v6350_v0  ;;  %vm1920_vm7 = vcmp.lt.s32.totalorder %v1856_v18, 1096  ;;  %v6669_v0 = vld [vmem:[%s4454_s8 + $0x70] sm:$0xff] }
 0x1c2   : > { %9398 = vst [vmem:[#allocation99_spill] sm:$0xff] %v6586_v55  ;;  %v1725_v55 = vld [vmem:[%s4448_s29 + $0x30] sm:$0xff]  ;;  %v1727_v56 = vld [vmem:[%s4448_s29 + $0x40] sm:$0xff]  ;;  %vm1795_vm8 = vcmp.gt.f32.partialorder %v6627_v21, 0.0 }
 0x1c3   : > { %v2047_v62 = vsub.f32 %v6571_v29, %v1725_v55  ;;  %v3740_v55 = vsel %vm6496_vm10, 1.0, %v9154_v63  ;;  %v2048_v29 = vsub.f32 %v6574_v4, %v1726_v13  ;;  %v2110_v53 = vsel %vm6635_vm6, %v2046_v33, 0.0  ;;  %vm6677_vm10 = vmand %vm1790_vm9, %vm1920_vm7 }
 0x1c4   : > { %v3742_v13 = vsel %vm6563_vm1, 1.0, %v9409_v37  ;;  %vm1922_vm13 = vcmp.lt.s32.totalorder %v1858_v8, 1096  ;;  %v2049_v33 = vsub.f32 %v6577_v17, %v1727_v56  ;;  %v2428_v4 = vadd.f32 %v3741_v47, %v3740_v55  ;;  %vm6697_vm1 = vmand %vm1791_vm0, %vm1921_vm3  ;;  %v6709_v55 = vld [vmem:[%s4454_s8 + $0x80] sm:$0xff]  ;;  %v1730_v47 = vld [vmem:[%s4448_s29 + $0x58] sm:$0xff] }
 0x1c5   : > { %v2111_v18 = vsel %vm6652_vm4, %v2047_v62, 0.0  ;;  %v2174_v6 = vmul.f32 %v2110_v53, %v2110_v53  ;;  %v2364_v62 = vadd.f32 %v2363_v2, %v2172_v14  ;;  %vm1797_vm9 = vcmp.gt.f32.partialorder %v6669_v0, 0.0  ;;  %vm6717_vm5 = vmand %vm1792_vm11, %vm1922_vm13 }
 0x1c6   : > { %vm1923_vm7 = vcmp.lt.s32.totalorder %v1859_v27, 1096  ;;  %v2050_v56 = vsub.f32 %v6597_v60, %v1728_v7  ;;  %v2112_v17 = vsel %vm6677_vm10, %v2048_v29, 0.0  ;;  %v2429_v61 = vadd.f32 %v3742_v13, %v2428_v4  ;;  %v6729_v13 = vld [vmem:[%s4454_s8 + $0x88] sm:$0xff]  ;;  %v1731_v4 = vld [vmem:[%s4448_s29 + $0x60] sm:$0xff] }
 0x1c7   : > { %v1862_v53 = vadd.s32 %v6332_v25, %v6363_v1  ;;  %v2175_v38 = vmul.f32 %v2111_v18, %v2111_v18  ;;  %v3744_v14 = vsel %vm6616_vm2, 1.0, %v9409_v37  ;;  %v2365_v29 = vadd.f32 %v2364_v62, %v2173_v40  ;;  %vm6737_vm2 = vmand %vm1793_vm14, %vm1923_vm7  ;;  %v6749_v62 = vld [vmem:[%s4454_s8 + $0x90] sm:$0xff] }
 0x1c8   : > { %vm1798_vm0 = vcmp.gt.f32.partialorder %v6689_v12, 0.0  ;;  %vm1924_vm3 = vcmp.lt.s32.totalorder %v1860_v26, 1096  ;;  %v2051_v7 = vsub.f32 %v6600_v59, %v1729_v5  ;;  %v2113_v60 = vsel %vm6697_vm1, %v2049_v33, 0.0 }
 0x1c9   : > { %v2430_v8 = vadd.f32 %v3743_v57, %v2429_v61  ;;  %v1863_v18 = vadd.s32 %v6332_v25, %v6366_v3  ;;  %v2176_v39 = vmul.f32 %v2112_v17, %v2112_v17  ;;  %v3745_v5 = vsel %vm6635_vm6, 1.0, %v9409_v37  ;;  %v1732_v61 = vld [vmem:[%s4448_s29 + $0x68] sm:$0xff]  ;;  %vm6757_vm14 = vmand %vm1794_vm15, %vm1924_vm3 }
 0x1ca   : > { %v2366_v33 = vadd.f32 %v2365_v29, %v2174_v6  ;;  %vm1799_vm11 = vcmp.gt.f32.partialorder %v6709_v55, 0.0  ;;  %vm1925_vm13 = vcmp.lt.s32.totalorder %v1861_v16, 1096  ;;  %v2052_v57 = vsub.f32 %v6621_v11, %v1730_v47  ;;  %v6769_v29 = vld [vmem:[%s4454_s8 + $0x98] sm:$0xff] }
 0x1cb   : > { %v2114_v59 = vsel %vm6717_vm5, %v2050_v56, 0.0  ;;  %v2431_v27 = vadd.f32 %v3744_v14, %v2430_v8  ;;  %v1864_v17 = vadd.s32 %v6332_v25, %v6369_v30  ;;  %v2177_v6 = vmul.f32 %v2113_v60, %v2113_v60  ;;  %v1733_v8 = vld [vmem:[%s4448_s29 + $0x70] sm:$0xff]  ;;  %vm6777_vm15 = vmand %vm1795_vm8, %vm1925_vm13 }
 0x1cc   : > { %v3746_v47 = vsel %vm6652_vm4, 1.0, %v9409_v37  ;;  %v2367_v56 = vadd.f32 %v2366_v33, %v2175_v38  ;;  %vm1800_vm6 = vcmp.gt.f32.partialorder %v6729_v13, 0.0  ;;  %vm1926_vm7 = vcmp.lt.s32.totalorder %v1862_v53, 1096  ;;  %v6789_v33 = vld [vmem:[%s4454_s8 + $0xa0] sm:$0xff] }
 0x1cd   : > { %v2053_v14 = vsub.f32 %v6627_v21, %v1731_v4  ;;  %v2115_v11 = vsel %vm6737_vm2, %v2051_v7, 0.0  ;;  %v2432_v26 = vadd.f32 %v3745_v5, %v2431_v27  ;;  %v1865_v60 = vadd.s32 %v6332_v25, %v6373_v31  ;;  %v1734_v27 = vld [vmem:[%s4448_s29 + $0x78] sm:$0xff]  ;;  %vm6797_vm8 = vmand %vm1796_vm12, %vm1926_vm7 }
 0x1ce   : > { %v2178_v38 = vmul.f32 %v2114_v59, %v2114_v59  ;;  %v3747_v4 = vsel %vm6677_vm10, 1.0, %v9409_v37  ;;  %v2368_v7 = vadd.f32 %v2367_v56, %v2176_v39  ;;  %vm1801_vm4 = vcmp.gt.f32.partialorder %v6749_v62, 0.0  ;;  %v6809_v56 = vld [vmem:[%s4454_s8 + $0xa8] sm:$0xff] }
 0x1cf   : > { %vm1927_vm3 = vcmp.lt.s32.totalorder %v1863_v18, 1096  ;;  %v2054_v5 = vsub.f32 %v6645_v36, %v1732_v61  ;;  %v2116_v21 = vsel %vm6757_vm14, %v2052_v57, 0.0  ;;  %v2433_v16 = vadd.f32 %v3746_v47, %v2432_v26  ;;  %v1735_v26 = vld [vmem:[%s4448_s29 + $0x80] sm:$0xff] }
 0x1d0   : > { %v1866_v59 = vadd.s32 %v6332_v25, %v6376_v51  ;;  %v2179_v39 = vmul.f32 %v2115_v11, %v2115_v11  ;;  %v3748_v61 = vsel %vm6697_vm1, 1.0, %v9409_v37  ;;  %v2369_v57 = vadd.f32 %v2368_v7, %v2177_v6  ;;  %vm6817_vm12 = vmand %vm1797_vm9, %vm1927_vm3  ;;  %v6829_v7 = vld [vmem:[%s4454_s8 + $0xb0] sm:$0xff] }
 0x1d1   : > { %vm1802_vm10 = vcmp.gt.f32.partialorder %v6769_v29, 0.0  ;;  %vm1928_vm13 = vcmp.lt.s32.totalorder %v1864_v17, 1096  ;;  %v2055_v47 = vsub.f32 %v6669_v0, %v1733_v8  ;;  %v2117_v36 = vsel %vm6777_vm15, %v2053_v14, 0.0 }
 0x1d2   : > { %v2434_v53 = vadd.f32 %v3747_v4, %v2433_v16  ;;  %v1867_v11 = vadd.s32 %v6332_v25, %v6379_v9  ;;  %v2180_v6 = vmul.f32 %v2116_v21, %v2116_v21  ;;  %v3749_v8 = vsel %vm6717_vm5, 1.0, %v9409_v37  ;;  %v1736_v16 = vld [vmem:[%s4448_s29 + $0x88] sm:$0xff]  ;;  %vm6837_vm9 = vmand %vm1798_vm0, %vm1928_vm13 }
 0x1d3   : > { %v2370_v14 = vadd.f32 %v2369_v57, %v2178_v38  ;;  %vm1803_vm1 = vcmp.gt.f32.partialorder %v6789_v33, 0.0  ;;  %vm1929_vm7 = vcmp.lt.s32.totalorder %v1865_v60, 1096  ;;  %v2056_v4 = vsub.f32 %v6689_v12, %v1734_v27  ;;  %v6849_v57 = vld [vmem:[%s4454_s8 + $0xb8] sm:$0xff] }
 0x1d4   : > { %v2118_v0 = vsel %vm6797_vm8, %v2054_v5, 0.0  ;;  %v2435_v18 = vadd.f32 %v3748_v61, %v2434_v53  ;;  %v1868_v21 = vadd.s32 %v6332_v25, %v6382_v28  ;;  %v2181_v38 = vmul.f32 %v2117_v36, %v2117_v36  ;;  %v1737_v53 = vld [vmem:[%s4448_s29 + $0x90] sm:$0xff]  ;;  %vm6857_vm0 = vmand %vm1799_vm11, %vm1929_vm7 }
 0x1d5   : > { %v3750_v27 = vsel %vm6737_vm2, 1.0, %v9409_v37  ;;  %v2371_v5 = vadd.f32 %v2370_v14, %v2179_v39  ;;  %vm1804_vm5 = vcmp.gt.f32.partialorder %v6809_v56, 0.0  ;;  %vm1930_vm3 = vcmp.lt.s32.totalorder %v1866_v59, 1096  ;;  %v6869_v14 = vld [vmem:[%s4454_s8 + $0xc0] sm:$0xff] }
 0x1d6   : > { %v2057_v61 = vsub.f32 %v6709_v55, %v1735_v26  ;;  %v2119_v12 = vsel %vm6817_vm12, %v2055_v47, 0.0  ;;  %v2436_v17 = vadd.f32 %v3749_v8, %v2435_v18  ;;  %v1869_v36 = vadd.s32 %v6332_v25, %v6388_v48  ;;  %v1738_v18 = vld [vmem:[%s4448_s29 + $0x98] sm:$0xff]  ;;  %vm6877_vm11 = vmand %vm1800_vm6, %vm1930_vm3 }
 0x1d7   : > { %v2182_v39 = vmul.f32 %v2118_v0, %v2118_v0  ;;  %v3751_v26 = vsel %vm6757_vm14, 1.0, %v9409_v37  ;;  %v2372_v47 = vadd.f32 %v2371_v5, %v2180_v6  ;;  %vm1805_vm2 = vcmp.gt.f32.partialorder %v6829_v7, 0.0  ;;  %v6889_v5 = vld [vmem:[%s4454_s8 + $0xc8] sm:$0xff] }
 0x1d8   : > { %vm1931_vm13 = vcmp.lt.s32.totalorder %v1867_v11, 1096  ;;  %v2058_v8 = vsub.f32 %v6729_v13, %v1736_v16  ;;  %v2120_v55 = vsel %vm6837_vm9, %v2056_v4, 0.0  ;;  %v2437_v60 = vadd.f32 %v3750_v27, %v2436_v17  ;;  %v1739_v17 = vld [vmem:[%s4448_s29 + $0xa0] sm:$0xff] }
 0x1d9   : > { %v1870_v0 = vadd.s32 %v6332_v25, %v6391_v23  ;;  %v2183_v6 = vmul.f32 %v2119_v12, %v2119_v12  ;;  %v3752_v16 = vsel %vm6777_vm15, 1.0, %v9409_v37  ;;  %v2373_v4 = vadd.f32 %v2372_v47, %v2181_v38  ;;  %vm6897_vm6 = vmand %vm1801_vm4, %vm1931_vm13  ;;  %v6909_v47 = vld [vmem:[%s4454_s8 + $0xd0] sm:$0xff] }
 0x1da   : > { %vm1806_vm14 = vcmp.gt.f32.partialorder %v6849_v57, 0.0  ;;  %vm1932_vm7 = vcmp.lt.s32.totalorder %v1868_v21, 1096  ;;  %v2059_v27 = vsub.f32 %v6749_v62, %v1737_v53  ;;  %v2121_v13 = vsel %vm6857_vm0, %v2057_v61, 0.0 }
 0x1db   : > { %v2438_v59 = vadd.f32 %v3751_v26, %v2437_v60  ;;  %v1871_v12 = vadd.s32 %v6332_v25, %v6394_v58  ;;  %v2184_v38 = vmul.f32 %v2120_v55, %v2120_v55  ;;  %v3753_v53 = vsel %vm6797_vm8, 1.0, %v9409_v37  ;;  %v1740_v60 = vld [vmem:[%s4448_s29 + $0xa8] sm:$0xff]  ;;  %vm6917_vm4 = vmand %vm1802_vm10, %vm1932_vm7 }
 0x1dc   : > { %v2374_v61 = vadd.f32 %v2373_v4, %v2182_v39  ;;  %vm1807_vm15 = vcmp.gt.f32.partialorder %v6869_v14, 0.0  ;;  %vm1933_vm3 = vcmp.lt.s32.totalorder %v1869_v36, 1096  ;;  %v2060_v26 = vsub.f32 %v6769_v29, %v1738_v18  ;;  %v6929_v4 = vld [vmem:[%s4454_s8 + $0xd8] sm:$0xff] }
 0x1dd   : > { %v2122_v62 = vsel %vm6877_vm11, %v2058_v8, 0.0  ;;  %v2439_v11 = vadd.f32 %v3752_v16, %v2438_v59  ;;  %v1872_v55 = vadd.s32 %v6332_v25, %v6397_v42  ;;  %v2185_v39 = vmul.f32 %v2121_v13, %v2121_v13  ;;  %v1741_v59 = vld [vmem:[%s4448_s29 + $0xb0] sm:$0xff]  ;;  %vm6937_vm10 = vmand %vm1803_vm1, %vm1933_vm3 }
 0x1de   : > { %v3754_v18 = vsel %vm6817_vm12, 1.0, %v9409_v37  ;;  %v2375_v8 = vadd.f32 %v2374_v61, %v2183_v6  ;;  %vm1808_vm8 = vcmp.gt.f32.partialorder %v6889_v5, 0.0  ;;  %vm1934_vm13 = vcmp.lt.s32.totalorder %v1870_v0, 1096  ;;  %v6949_v61 = vld [vmem:[%s4454_s8 + $0xe0] sm:$0xff] }
 0x1df   : > { %v2061_v16 = vsub.f32 %v6789_v33, %v1739_v17  ;;  %v2123_v29 = vsel %vm6897_vm6, %v2059_v27, 0.0  ;;  %v2440_v21 = vadd.f32 %v3753_v53, %v2439_v11  ;;  %v1873_v13 = vadd.s32 %v6332_v25, %v6400_v41  ;;  %v1742_v11 = vld [vmem:[%s4448_s29 + $0xb8] sm:$0xff]  ;;  %vm6957_vm1 = vmand %vm1804_vm5, %vm1934_vm13 }
 0x1e0   : > { %v2186_v6 = vmul.f32 %v2122_v62, %v2122_v62  ;;  %v3755_v17 = vsel %vm6837_vm9, 1.0, %v9409_v37  ;;  %v2376_v27 = vadd.f32 %v2375_v8, %v2184_v38  ;;  %vm1809_vm12 = vcmp.gt.f32.partialorder %v6909_v47, 0.0  ;;  %v6969_v8 = vld [vmem:[%s4454_s8 + $0xe8] sm:$0xff] }
 0x1e1   : > { %vm1935_vm7 = vcmp.lt.s32.totalorder %v1871_v12, 1096  ;;  %v2062_v53 = vsub.f32 %v6809_v56, %v1740_v60  ;;  %v2124_v33 = vsel %vm6917_vm4, %v2060_v26, 0.0  ;;  %v2441_v36 = vadd.f32 %v3754_v18, %v2440_v21  ;;  %v1743_v21 = vld [vmem:[%s4448_s29 + $0xc0] sm:$0xff] }
 0x1e2   : > { %v1874_v62 = vadd.s32 %v6332_v25, %v6403_v43  ;;  %v2187_v38 = vmul.f32 %v2123_v29, %v2123_v29  ;;  %v3756_v60 = vsel %vm6857_vm0, 1.0, %v9409_v37  ;;  %v2377_v26 = vadd.f32 %v2376_v27, %v2185_v39  ;;  %vm6977_vm5 = vmand %vm1805_vm2, %vm1935_vm7  ;;  %v6989_v27 = vld [vmem:[%s4454_s8 + $0xf0] sm:$0xff] }
 0x1e3   : > { %vm1810_vm9 = vcmp.gt.f32.partialorder %v6929_v4, 0.0  ;;  %vm1936_vm3 = vcmp.lt.s32.totalorder %v1872_v55, 1096  ;;  %v2063_v18 = vsub.f32 %v6829_v7, %v1741_v59  ;;  %v2125_v56 = vsel %vm6937_vm10, %v2061_v16, 0.0 }
 0x1e4   : > { %v2442_v0 = vadd.f32 %v3755_v17, %v2441_v36  ;;  %v1875_v29 = vadd.s32 %v6332_v25, %v6406_v24  ;;  %v2188_v39 = vmul.f32 %v2124_v33, %v2124_v33  ;;  %v3757_v59 = vsel %vm6877_vm11, 1.0, %v9409_v37  ;;  %v1744_v36 = vld [vmem:[%s4448_s29 + $0xc8] sm:$0xff]  ;;  %vm6997_vm2 = vmand %vm1806_vm14, %vm1936_vm3 }
 0x1e5   : > { %v2378_v16 = vadd.f32 %v2377_v26, %v2186_v6  ;;  %vm1811_vm0 = vcmp.gt.f32.partialorder %v6949_v61, 0.0  ;;  %vm1937_vm13 = vcmp.lt.s32.totalorder %v1873_v13, 1096  ;;  %v2064_v17 = vsub.f32 %v6849_v57, %v1742_v11  ;;  %v7009_v26 = vld [vmem:[%s4454_s8 + $0xf8] sm:$0xff] }
 0x1e6   : > { %v2126_v7 = vsel %vm6957_vm1, %v2062_v53, 0.0  ;;  %v2443_v12 = vadd.f32 %v3756_v60, %v2442_v0  ;;  %v1876_v33 = vadd.s32 %v6332_v25, %v6414_v54  ;;  %v2189_v6 = vmul.f32 %v2125_v56, %v2125_v56  ;;  %v1745_v0 = vld [vmem:[%s4448_s29 + $0xd0] sm:$0xff]  ;;  %vm7017_vm14 = vmand %vm1807_vm15, %vm1937_vm13 }
 0x1e7   : > { %v3758_v11 = vsel %vm6897_vm6, 1.0, %v9409_v37  ;;  %v2379_v53 = vadd.f32 %v2378_v16, %v2187_v38  ;;  %vm1812_vm11 = vcmp.gt.f32.partialorder %v6969_v8, 0.0  ;;  %vm1938_vm7 = vcmp.lt.s32.totalorder %v1874_v62, 1096  ;;  %v7029_v16 = vld [vmem:[%s4454_s8 + $0x100] sm:$0xff] }
 0x1e8   : > { %v2065_v60 = vsub.f32 %v6869_v14, %v1743_v21  ;;  %v2127_v57 = vsel %vm6977_vm5, %v2063_v18, 0.0  ;;  %v2444_v55 = vadd.f32 %v3757_v59, %v2443_v12  ;;  %v1877_v56 = vadd.s32 %v6332_v25, %v6417_v34  ;;  %v1746_v12 = vld [vmem:[%s4448_s29 + $0xd8] sm:$0xff]  ;;  %vm7037_vm15 = vmand %vm1808_vm8, %vm1938_vm7 }
 0x1e9   : > { %v2190_v38 = vmul.f32 %v2126_v7, %v2126_v7  ;;  %v3759_v21 = vsel %vm6917_vm4, 1.0, %v9409_v37  ;;  %v2380_v18 = vadd.f32 %v2379_v53, %v2188_v39  ;;  %vm1813_vm6 = vcmp.gt.f32.partialorder %v6989_v27, 0.0  ;;  %v7049_v53 = vld [vmem:[%s4454_s8 + $0x108] sm:$0xff] }
 0x1ea   : > { %vm1939_vm3 = vcmp.lt.s32.totalorder %v1875_v29, 1096  ;;  %v2066_v59 = vsub.f32 %v6889_v5, %v1744_v36  ;;  %v2128_v14 = vsel %vm6997_vm2, %v2064_v17, 0.0  ;;  %v2445_v13 = vadd.f32 %v3758_v11, %v2444_v55  ;;  %v1747_v55 = vld [vmem:[%s4448_s29 + $0xe0] sm:$0xff] }
 0x1eb   : > { %v1878_v7 = vadd.s32 %v6332_v25, %v6420_v19  ;;  %v2191_v39 = vmul.f32 %v2127_v57, %v2127_v57  ;;  %v3760_v36 = vsel %vm6937_vm10, 1.0, %v9409_v37  ;;  %v2381_v17 = vadd.f32 %v2380_v18, %v2189_v6  ;;  %vm7057_vm8 = vmand %vm1809_vm12, %vm1939_vm3  ;;  %v7069_v18 = vld [vmem:[%s4454_s8 + $0x110] sm:$0xff] }
 0x1ec   : > { %vm1814_vm4 = vcmp.gt.f32.partialorder %v7009_v26, 0.0  ;;  %vm1940_vm13 = vcmp.lt.s32.totalorder %v1876_v33, 1096  ;;  %v2067_v11 = vsub.f32 %v6909_v47, %v1745_v0  ;;  %v2129_v5 = vsel %vm7017_vm14, %v2065_v60, 0.0 }
 0x1ed   : > { %v2446_v62 = vadd.f32 %v3759_v21, %v2445_v13  ;;  %v1879_v57 = vadd.s32 %v6332_v25, %v6426_v20  ;;  %v2192_v6 = vmul.f32 %v2128_v14, %v2128_v14  ;;  %v3761_v0 = vsel %vm6957_vm1, 1.0, %v9409_v37  ;;  %v1748_v13 = vld [vmem:[%s4448_s29 + $0xe8] sm:$0xff]  ;;  %vm7077_vm12 = vmand %vm1810_vm9, %vm1940_vm13 }
 0x1ee   : > { %v2382_v60 = vadd.f32 %v2381_v17, %v2190_v38  ;;  %vm1815_vm10 = vcmp.gt.f32.partialorder %v7029_v16, 0.0  ;;  %vm1941_vm7 = vcmp.lt.s32.totalorder %v1877_v56, 1096  ;;  %v2068_v21 = vsub.f32 %v6929_v4, %v1746_v12  ;;  %v7089_v17 = vld [vmem:[%s4454_s8 + $0x118] sm:$0xff] }
 0x1ef   : > { %v2130_v47 = vsel %vm7037_vm15, %v2066_v59, 0.0  ;;  %v2447_v29 = vadd.f32 %v3760_v36, %v2446_v62  ;;  %v1880_v14 = vadd.s32 %v6332_v25, %v6429_v35  ;;  %v2193_v38 = vmul.f32 %v2129_v5, %v2129_v5  ;;  %v1749_v62 = vld [vmem:[%s4448_s29 + $0xf0] sm:$0xff]  ;;  %vm7097_vm9 = vmand %vm1811_vm0, %vm1941_vm7 }
 0x1f0   : > { %v3762_v12 = vsel %vm6977_vm5, 1.0, %v9409_v37  ;;  %v2383_v59 = vadd.f32 %v2382_v60, %v2191_v39  ;;  %vm1816_vm1 = vcmp.gt.f32.partialorder %v7049_v53, 0.0  ;;  %vm1942_vm3 = vcmp.lt.s32.totalorder %v1878_v7, 1096  ;;  %v7109_v60 = vld [vmem:[%s4454_s8 + $0x120] sm:$0xff] }
 0x1f1   : > { %v2069_v36 = vsub.f32 %v6949_v61, %v1747_v55  ;;  %v2131_v4 = vsel %vm7057_vm8, %v2067_v11, 0.0  ;;  %v2448_v33 = vadd.f32 %v3761_v0, %v2447_v29  ;;  %v1881_v5 = vadd.s32 %v6332_v25, %v6432_v50  ;;  %v1750_v29 = vld [vmem:[%s4448_s29 + $0xf8] sm:$0xff]  ;;  %vm7117_vm0 = vmand %vm1812_vm11, %vm1942_vm3 }
 0x1f2   : > { %v2194_v39 = vmul.f32 %v2130_v47, %v2130_v47  ;;  %v3763_v55 = vsel %vm6997_vm2, 1.0, %v9409_v37  ;;  %v2384_v11 = vadd.f32 %v2383_v59, %v2192_v6  ;;  %vm1817_vm5 = vcmp.gt.f32.partialorder %v7069_v18, 0.0  ;;  %v7129_v59 = vld [vmem:[%s4454_s8 + $0x128] sm:$0xff] }
 0x1f3   : > { %vm1943_vm13 = vcmp.lt.s32.totalorder %v1879_v57, 1096  ;;  %v2070_v0 = vsub.f32 %v6969_v8, %v1748_v13  ;;  %v2132_v61 = vsel %vm7077_vm12, %v2068_v21, 0.0  ;;  %v2449_v56 = vadd.f32 %v3762_v12, %v2448_v33  ;;  %v1751_v33 = vld [vmem:[%s4448_s29 + $0x100] sm:$0xff] }
 0x1f4   : > { %v1882_v47 = vadd.s32 %v6332_v25, %v6435_v44  ;;  %v2195_v6 = vmul.f32 %v2131_v4, %v2131_v4  ;;  %v3764_v13 = vsel %vm7017_vm14, 1.0, %v9409_v37  ;;  %v2385_v21 = vadd.f32 %v2384_v11, %v2193_v38  ;;  %vm7137_vm11 = vmand %vm1813_vm6, %vm1943_vm13  ;;  %v7149_v11 = vld [vmem:[%s4454_s8 + $0x130] sm:$0xff] }
 0x1f5   : > { %vm1818_vm2 = vcmp.gt.f32.partialorder %v7089_v17, 0.0  ;;  %vm1944_vm7 = vcmp.lt.s32.totalorder %v1880_v14, 1096  ;;  %v2071_v12 = vsub.f32 %v6989_v27, %v1749_v62  ;;  %v2133_v8 = vsel %vm7097_vm9, %v2069_v36, 0.0 }
 0x1f6   : > { %v2450_v7 = vadd.f32 %v3763_v55, %v2449_v56  ;;  %v1883_v4 = vadd.s32 %v6332_v25, %v6441_v46  ;;  %v2196_v38 = vmul.f32 %v2132_v61, %v2132_v61  ;;  %v3765_v62 = vsel %vm7037_vm15, 1.0, %v9409_v37  ;;  %v1752_v56 = vld [vmem:[%s4448_s29 + $0x108] sm:$0xff]  ;;  %vm7157_vm6 = vmand %vm1814_vm4, %vm1944_vm7 }
 0x1f7   : > { %v2386_v36 = vadd.f32 %v2385_v21, %v2194_v39  ;;  %vm1819_vm14 = vcmp.gt.f32.partialorder %v7109_v60, 0.0  ;;  %vm1945_vm3 = vcmp.lt.s32.totalorder %v1881_v5, 1096  ;;  %v2072_v55 = vsub.f32 %v7009_v26, %v1750_v29  ;;  %v7169_v21 = vld [vmem:[%s4454_s8 + $0x138] sm:$0xff] }
 0x1f8   : > { %v2134_v27 = vsel %vm7117_vm0, %v2070_v0, 0.0  ;;  %v2451_v57 = vadd.f32 %v3764_v13, %v2450_v7  ;;  %v1884_v61 = vadd.s32 %v6332_v25, %v6444_v15  ;;  %v2197_v39 = vmul.f32 %v2133_v8, %v2133_v8  ;;  %v1753_v7 = vld [vmem:[%s4448_s29 + $0x110] sm:$0xff]  ;;  %vm7177_vm4 = vmand %vm1815_vm10, %vm1945_vm3 }
 0x1f9   : > { %v3766_v29 = vsel %vm7057_vm8, 1.0, %v9409_v37  ;;  %v2387_v0 = vadd.f32 %v2386_v36, %v2195_v6  ;;  %vm1820_vm15 = vcmp.gt.f32.partialorder %v7129_v59, 0.0  ;;  %vm1946_vm13 = vcmp.lt.s32.totalorder %v1882_v47, 1096  ;;  %v7189_v36 = vld [vmem:[%s4454_s8 + $0x140] sm:$0xff] }
 0x1fa   : > { %v2073_v13 = vsub.f32 %v7029_v16, %v1751_v33  ;;  %v2135_v26 = vsel %vm7137_vm11, %v2071_v12, 0.0  ;;  %v2452_v14 = vadd.f32 %v3765_v62, %v2451_v57  ;;  %v1885_v8 = vadd.s32 %v6332_v25, %v6447_v32  ;;  %v1754_v57 = vld [vmem:[%s4448_s29 + $0x118] sm:$0xff]  ;;  %vm7197_vm10 = vmand %vm1816_vm1, %vm1946_vm13 }
 0x1fb   : > { %v2198_v6 = vmul.f32 %v2134_v27, %v2134_v27  ;;  %v3767_v33 = vsel %vm7077_vm12, 1.0, %v9409_v37  ;;  %v2388_v12 = vadd.f32 %v2387_v0, %v2196_v38  ;;  %vm1821_vm8 = vcmp.gt.f32.partialorder %v7149_v11, 0.0  ;;  %v7209_v0 = vld [vmem:[%s4454_s8 + $0x148] sm:$0xff] }
 0x1fc   : > { %vm1947_vm7 = vcmp.lt.s32.totalorder %v1883_v4, 1096  ;;  %v2074_v62 = vsub.f32 %v7049_v53, %v1752_v56  ;;  %v2136_v16 = vsel %vm7157_vm6, %v2072_v55, 0.0  ;;  %v2453_v5 = vadd.f32 %v3766_v29, %v2452_v14  ;;  %v1755_v14 = vld [vmem:[%s4448_s29 + $0x120] sm:$0xff] }
 0x1fd   : > { %v1886_v27 = vadd.s32 %v6332_v25, %v6450_v45  ;;  %v2199_v38 = vmul.f32 %v2135_v26, %v2135_v26  ;;  %v3768_v56 = vsel %vm7097_vm9, 1.0, %v9409_v37  ;;  %v2389_v55 = vadd.f32 %v2388_v12, %v2197_v39  ;;  %v9462_v26 = vld [vmem:[#allocation74_spill] sm:$0xff]  ;;  %vm7217_vm1 = vmand %vm1817_vm5, %vm1947_vm7  ;;  %v7229_v12 = vld [vmem:[%s4454_s8 + $0x150] sm:$0xff] }
 0x1fe   : > { %vm1822_vm12 = vcmp.gt.f32.partialorder %v7169_v21, 0.0  ;;  %vm1948_vm3 = vcmp.lt.s32.totalorder %v1884_v61, 1096  ;;  %v2075_v29 = vsub.f32 %v7069_v18, %v1753_v7  ;;  %v2137_v53 = vsel %vm7177_vm4, %v2073_v13, 0.0 }
 0x1ff   : > { %v2454_v47 = vadd.f32 %v3767_v33, %v2453_v5  ;;  %v1887_v45 = vadd.s32 %v6332_v25, %v9462_v26  ;;  %v2200_v39 = vmul.f32 %v2136_v16, %v2136_v16  ;;  %v3769_v7 = vsel %vm7117_vm0, 1.0, %v9409_v37  ;;  %v1756_v5 = vld [vmem:[%s4448_s29 + $0x128] sm:$0xff]  ;;  %v9465_v16 = vld [vmem:[#allocation75_spill] sm:$0xff]  ;;  %vm7237_vm5 = vmand %vm1818_vm2, %vm1948_vm3 }
 0x200   : > { %v2390_v13 = vadd.f32 %v2389_v55, %v2198_v6  ;;  %vm1823_vm9 = vcmp.gt.f32.partialorder %v7189_v36, 0.0  ;;  %vm1949_vm13 = vcmp.lt.s32.totalorder %v1885_v8, 1096  ;;  %v2076_v33 = vsub.f32 %v7089_v17, %v1754_v57  ;;  %v7249_v55 = vld [vmem:[%s4454_s8 + $0x158] sm:$0xff] }
 0x201   : > { %v2138_v18 = vsel %vm7197_vm10, %v2074_v62, 0.0  ;;  %v2455_v4 = vadd.f32 %v3768_v56, %v2454_v47  ;;  %v1888_v26 = vadd.s32 %v6332_v25, %v9465_v16  ;;  %v2201_v6 = vmul.f32 %v2137_v53, %v2137_v53  ;;  %v1757_v47 = vld [vmem:[%s4448_s29 + $0x130] sm:$0xff]  ;;  %v9468_v53 = vld [vmem:[#allocation76_spill] sm:$0xff]  ;;  %vm7257_vm2 = vmand %vm1819_vm14, %vm1949_vm13 }
 0x202   : > { %v3770_v57 = vsel %vm7137_vm11, 1.0, %v9409_v37  ;;  %v2391_v62 = vadd.f32 %v2390_v13, %v2199_v38  ;;  %vm1824_vm0 = vcmp.gt.f32.partialorder %v7209_v0, 0.0  ;;  %vm1950_vm7 = vcmp.lt.s32.totalorder %v1886_v27, 1096  ;;  %v7269_v13 = vld [vmem:[%s4454_s8 + $0x160] sm:$0xff] }
 0x203   : > { %v2077_v56 = vsub.f32 %v7109_v60, %v1755_v14  ;;  %v2139_v17 = vsel %vm7217_vm1, %v2075_v29, 0.0  ;;  %v2456_v61 = vadd.f32 %v3769_v7, %v2455_v4  ;;  %v1889_v16 = vadd.s32 %v6332_v25, %v9468_v53  ;;  %v1758_v4 = vld [vmem:[%s4448_s29 + $0x138] sm:$0xff]  ;;  %vm7277_vm14 = vmand %vm1820_vm15, %vm1950_vm7 }
 0x204   : > { %v2202_v38 = vmul.f32 %v2138_v18, %v2138_v18  ;;  %v3771_v14 = vsel %vm7157_vm6, 1.0, %v9409_v37  ;;  %v2392_v29 = vadd.f32 %v2391_v62, %v2200_v39  ;;  %vm1825_vm11 = vcmp.gt.f32.partialorder %v7229_v12, 0.0  ;;  %v9471_v18 = vld [vmem:[#allocation77_spill] sm:$0xff]  ;;  %v7289_v62 = vld [vmem:[%s4454_s8 + $0x168] sm:$0xff] }
 0x205   : > { %vm1951_vm3 = vcmp.lt.s32.totalorder %v1887_v45, 1096  ;;  %v2078_v7 = vsub.f32 %v7129_v59, %v1756_v5  ;;  %v2140_v60 = vsel %vm7237_vm5, %v2076_v33, 0.0  ;;  %v2457_v8 = vadd.f32 %v3770_v57, %v2456_v61  ;;  %v1759_v61 = vld [vmem:[%s4448_s29 + $0x140] sm:$0xff] }
 0x206   : > { %v1890_v53 = vadd.s32 %v6332_v25, %v9471_v18  ;;  %v2203_v39 = vmul.f32 %v2139_v17, %v2139_v17  ;;  %v3772_v5 = vsel %vm7177_vm4, 1.0, %v9409_v37  ;;  %v2393_v33 = vadd.f32 %v2392_v29, %v2201_v6  ;;  %v9474_v17 = vld [vmem:[#allocation78_spill] sm:$0xff]  ;;  %vm7297_vm15 = vmand %vm1821_vm8, %vm1951_vm3  ;;  %v7309_v29 = vld [vmem:[%s4454_s8 + $0x170] sm:$0xff] }
 0x207   : > { %vm1826_vm6 = vcmp.gt.f32.partialorder %v7249_v55, 0.0  ;;  %vm1952_vm13 = vcmp.lt.s32.totalorder %v1888_v26, 1096  ;;  %v2079_v57 = vsub.f32 %v7149_v11, %v1757_v47  ;;  %v2141_v59 = vsel %vm7257_vm2, %v2077_v56, 0.0 }
 0x208   : > { %v2458_v27 = vadd.f32 %v3771_v14, %v2457_v8  ;;  %v1891_v18 = vadd.s32 %v6332_v25, %v9474_v17  ;;  %v2204_v6 = vmul.f32 %v2140_v60, %v2140_v60  ;;  %v3773_v47 = vsel %vm7197_vm10, 1.0, %v9409_v37  ;;  %v1760_v8 = vld [vmem:[%s4448_s29 + $0x148] sm:$0xff]  ;;  %v9477_v60 = vld [vmem:[#allocation79_spill] sm:$0xff]  ;;  %vm7317_vm8 = vmand %vm1822_vm12, %vm1952_vm13 }
 0x209   : > { %v2394_v56 = vadd.f32 %v2393_v33, %v2202_v38  ;;  %vm1827_vm4 = vcmp.gt.f32.partialorder %v7269_v13, 0.0  ;;  %vm1953_vm7 = vcmp.lt.s32.totalorder %v1889_v16, 1096  ;;  %v2080_v14 = vsub.f32 %v7169_v21, %v1758_v4  ;;  %v7329_v33 = vld [vmem:[%s4454_s8 + $0x178] sm:$0xff] }
 0x20a   : > { %v2142_v45 = vsel %vm7277_vm14, %v2078_v7, 0.0  ;;  %v2459_v11 = vadd.f32 %v3772_v5, %v2458_v27  ;;  %v1892_v17 = vadd.s32 %v6332_v25, %v9477_v60  ;;  %v2205_v38 = vmul.f32 %v2141_v59, %v2141_v59  ;;  %v1761_v27 = vld [vmem:[%s4448_s29 + $0x150] sm:$0xff]  ;;  %v9480_v59 = vld [vmem:[#allocation80_spill] sm:$0xff]  ;;  %vm7337_vm12 = vmand %vm1823_vm9, %vm1953_vm7 }
 0x20b   : > { %v3774_v4 = vsel %vm7217_vm1, 1.0, %v9409_v37  ;;  %v2395_v7 = vadd.f32 %v2394_v56, %v2203_v39  ;;  %vm1828_vm10 = vcmp.gt.f32.partialorder %v7289_v62, 0.0  ;;  %vm1954_vm3 = vcmp.lt.s32.totalorder %v1890_v53, 1096  ;;  %v7349_v56 = vld [vmem:[%s4454_s8 + $0x180] sm:$0xff] }
 0x20c   : > { %v2081_v5 = vsub.f32 %v7189_v36, %v1759_v61  ;;  %v2143_v21 = vsel %vm7297_vm15, %v2079_v57, 0.0  ;;  %v2460_v26 = vadd.f32 %v3773_v47, %v2459_v11  ;;  %v1893_v60 = vadd.s32 %v6332_v25, %v9480_v59  ;;  %v1762_v11 = vld [vmem:[%s4448_s29 + $0x158] sm:$0xff]  ;;  %vm7357_vm9 = vmand %vm1824_vm0, %vm1954_vm3 }
 0x20d   : > { %v2206_v39 = vmul.f32 %v2142_v45, %v2142_v45  ;;  %v3775_v61 = vsel %vm7237_vm5, 1.0, %v9409_v37  ;;  %v2396_v57 = vadd.f32 %v2395_v7, %v2204_v6  ;;  %vm1829_vm1 = vcmp.gt.f32.partialorder %v7309_v29, 0.0  ;;  %v9483_v45 = vld [vmem:[#allocation81_spill] sm:$0xff]  ;;  %v7369_v7 = vld [vmem:[%s4454_s8 + $0x188] sm:$0xff] }
 0x20e   : > { %vm1955_vm13 = vcmp.lt.s32.totalorder %v1891_v18, 1096  ;;  %v2082_v47 = vsub.f32 %v7209_v0, %v1760_v8  ;;  %v2144_v36 = vsel %vm7317_vm8, %v2080_v14, 0.0  ;;  %v2461_v16 = vadd.f32 %v3774_v4, %v2460_v26  ;;  %v1763_v26 = vld [vmem:[%s4448_s29 + $0x160] sm:$0xff] }
 0x20f   : > { %v1894_v59 = vadd.s32 %v6332_v25, %v9483_v45  ;;  %v2207_v6 = vmul.f32 %v2143_v21, %v2143_v21  ;;  %v3776_v8 = vsel %vm7257_vm2, 1.0, %v9409_v37  ;;  %v2397_v14 = vadd.f32 %v2396_v57, %v2205_v38  ;;  %v9486_v21 = vld [vmem:[#allocation82_spill] sm:$0xff]  ;;  %vm7377_vm0 = vmand %vm1825_vm11, %vm1955_vm13  ;;  %v7389_v57 = vld [vmem:[%s4454_s8 + $0x190] sm:$0xff] }
 0x210   : > { %vm1830_vm5 = vcmp.gt.f32.partialorder %v7329_v33, 0.0  ;;  %vm1956_vm7 = vcmp.lt.s32.totalorder %v1892_v17, 1096  ;;  %v2083_v4 = vsub.f32 %v7229_v12, %v1761_v27  ;;  %v2145_v0 = vsel %vm7337_vm12, %v2081_v5, 0.0 }
 0x211   : > { %v2462_v53 = vadd.f32 %v3775_v61, %v2461_v16  ;;  %v1895_v45 = vadd.s32 %v6332_v25, %v9486_v21  ;;  %v2208_v38 = vmul.f32 %v2144_v36, %v2144_v36  ;;  %v3777_v27 = vsel %vm7277_vm14, 1.0, %v9409_v37  ;;  %v1764_v16 = vld [vmem:[%s4448_s29 + $0x168] sm:$0xff]  ;;  %v9489_v36 = vld [vmem:[#allocation83_spill] sm:$0xff]  ;;  %vm7397_vm11 = vmand %vm1826_vm6, %vm1956_vm7 }
 0x212   : > { %v2398_v5 = vadd.f32 %v2397_v14, %v2206_v39  ;;  %vm1831_vm2 = vcmp.gt.f32.partialorder %v7349_v56, 0.0  ;;  %vm1957_vm3 = vcmp.lt.s32.totalorder %v1893_v60, 1096  ;;  %v2084_v61 = vsub.f32 %v7249_v55, %v1762_v11  ;;  %v7409_v14 = vld [vmem:[%s4454_s8 + $0x198] sm:$0xff] }
 0x213   : > { %v2146_v12 = vsel %vm7357_vm9, %v2082_v47, 0.0  ;;  %v2463_v18 = vadd.f32 %v3776_v8, %v2462_v53  ;;  %v1896_v21 = vadd.s32 %v6332_v25, %v9489_v36  ;;  %v2209_v39 = vmul.f32 %v2145_v0, %v2145_v0  ;;  %v1765_v53 = vld [vmem:[%s4448_s29 + $0x170] sm:$0xff]  ;;  %v9492_v0 = vld [vmem:[#allocation84_spill] sm:$0xff]  ;;  %vm7417_vm6 = vmand %vm1827_vm4, %vm1957_vm3 }
 0x214   : > { %v3778_v11 = vsel %vm7297_vm15, 1.0, %v9409_v37  ;;  %v2399_v47 = vadd.f32 %v2398_v5, %v2207_v6  ;;  %vm1832_vm14 = vcmp.gt.f32.partialorder %v7369_v7, 0.0  ;;  %vm1958_vm13 = vcmp.lt.s32.totalorder %v1894_v59, 1096  ;;  %v7429_v5 = vld [vmem:[%s4454_s8 + $0x1a0] sm:$0xff] }
 0x215   : > { %v2085_v8 = vsub.f32 %v7269_v13, %v1763_v26  ;;  %v2147_v55 = vsel %vm7377_vm0, %v2083_v4, 0.0  ;;  %v2464_v17 = vadd.f32 %v3777_v27, %v2463_v18  ;;  %v1897_v36 = vadd.s32 %v6332_v25, %v9492_v0  ;;  %v1766_v18 = vld [vmem:[%s4448_s29 + $0x178] sm:$0xff]  ;;  %vm7437_vm4 = vmand %vm1828_vm10, %vm1958_vm13 }
 0x216   : > { %v2210_v6 = vmul.f32 %v2146_v12, %v2146_v12  ;;  %v3779_v26 = vsel %vm7317_vm8, 1.0, %v9409_v37  ;;  %v2400_v4 = vadd.f32 %v2399_v47, %v2208_v38  ;;  %vm1833_vm15 = vcmp.gt.f32.partialorder %v7389_v57, 0.0  ;;  %v9495_v12 = vld [vmem:[#allocation85_spill] sm:$0xff]  ;;  %v7449_v47 = vld [vmem:[%s4454_s8 + $0x1a8] sm:$0xff] }
 0x217   : > { %vm1959_vm7 = vcmp.lt.s32.totalorder %v1895_v45, 1096  ;;  %v2086_v27 = vsub.f32 %v7289_v62, %v1764_v16  ;;  %v2148_v13 = vsel %vm7397_vm11, %v2084_v61, 0.0  ;;  %v2465_v60 = vadd.f32 %v3778_v11, %v2464_v17  ;;  %v1767_v17 = vld [vmem:[%s4448_s29 + $0x180] sm:$0xff] }
 0x218   : > { %v1898_v0 = vadd.s32 %v6332_v25, %v9495_v12  ;;  %v2211_v38 = vmul.f32 %v2147_v55, %v2147_v55  ;;  %v3780_v16 = vsel %vm7337_vm12, 1.0, %v9409_v37  ;;  %v2401_v61 = vadd.f32 %v2400_v4, %v2209_v39  ;;  %v9498_v55 = vld [vmem:[#allocation86_spill] sm:$0xff]  ;;  %vm7457_vm10 = vmand %vm1829_vm1, %vm1959_vm7  ;;  %v7469_v4 = vld [vmem:[%s4454_s8 + $0x1b0] sm:$0xff] }
 0x219   : > { %vm1834_vm8 = vcmp.gt.f32.partialorder %v7409_v14, 0.0  ;;  %vm1960_vm3 = vcmp.lt.s32.totalorder %v1896_v21, 1096  ;;  %v2087_v11 = vsub.f32 %v7309_v29, %v1765_v53  ;;  %v2149_v62 = vsel %vm7417_vm6, %v2085_v8, 0.0 }
 0x21a   : > { %v2466_v59 = vadd.f32 %v3779_v26, %v2465_v60  ;;  %v1899_v12 = vadd.s32 %v6332_v25, %v9498_v55  ;;  %v2212_v39 = vmul.f32 %v2148_v13, %v2148_v13  ;;  %v3781_v53 = vsel %vm7357_vm9, 1.0, %v9409_v37  ;;  %v1768_v60 = vld [vmem:[%s4448_s29 + $0x188] sm:$0xff]  ;;  %v9501_v13 = vld [vmem:[#allocation87_spill] sm:$0xff]  ;;  %vm7477_vm1 = vmand %vm1830_vm5, %vm1960_vm3 }
 0x21b   : > { %v2402_v8 = vadd.f32 %v2401_v61, %v2210_v6  ;;  %vm1835_vm12 = vcmp.gt.f32.partialorder %v7429_v5, 0.0  ;;  %vm1961_vm13 = vcmp.lt.s32.totalorder %v1897_v36, 1096  ;;  %v2088_v26 = vsub.f32 %v7329_v33, %v1766_v18  ;;  %v7489_v61 = vld [vmem:[%s4454_s8 + $0x1b8] sm:$0xff] }
 0x21c   : > { %v2150_v29 = vsel %vm7437_vm4, %v2086_v27, 0.0  ;;  %v2467_v45 = vadd.f32 %v3780_v16, %v2466_v59  ;;  %v1900_v55 = vadd.s32 %v6332_v25, %v9501_v13  ;;  %v2213_v6 = vmul.f32 %v2149_v62, %v2149_v62  ;;  %v1769_v59 = vld [vmem:[%s4448_s29 + $0x190] sm:$0xff]  ;;  %v9504_v62 = vld [vmem:[#allocation88_spill] sm:$0xff]  ;;  %vm7497_vm5 = vmand %vm1831_vm2, %vm1961_vm13 }
 0x21d   : > { %v3782_v18 = vsel %vm7377_vm0, 1.0, %v9409_v37  ;;  %v2403_v27 = vadd.f32 %v2402_v8, %v2211_v38  ;;  %vm1836_vm9 = vcmp.gt.f32.partialorder %v7449_v47, 0.0  ;;  %vm1962_vm7 = vcmp.lt.s32.totalorder %v1898_v0, 1096  ;;  %v7509_v8 = vld [vmem:[%s4454_s8 + $0x1c0] sm:$0xff] }
 0x21e   : > { %v2089_v16 = vsub.f32 %v7349_v56, %v1767_v17  ;;  %v2151_v33 = vsel %vm7457_vm10, %v2087_v11, 0.0  ;;  %v2468_v21 = vadd.f32 %v3781_v53, %v2467_v45  ;;  %v1901_v13 = vadd.s32 %v6332_v25, %v9504_v62  ;;  %v1770_v45 = vld [vmem:[%s4448_s29 + $0x198] sm:$0xff]  ;;  %vm7517_vm2 = vmand %vm1832_vm14, %vm1962_vm7 }
 0x21f   : > { %v2214_v38 = vmul.f32 %v2150_v29, %v2150_v29  ;;  %v3783_v17 = vsel %vm7397_vm11, 1.0, %v9409_v37  ;;  %v2404_v11 = vadd.f32 %v2403_v27, %v2212_v39  ;;  %vm1837_vm0 = vcmp.gt.f32.partialorder %v7469_v4, 0.0  ;;  %v9507_v29 = vld [vmem:[#allocation89_spill] sm:$0xff]  ;;  %v7529_v27 = vld [vmem:[%s4454_s8 + $0x1c8] sm:$0xff] }
 0x220   : > { %vm1963_vm3 = vcmp.lt.s32.totalorder %v1899_v12, 1096  ;;  %v2090_v53 = vsub.f32 %v7369_v7, %v1768_v60  ;;  %v2152_v56 = vsel %vm7477_vm1, %v2088_v26, 0.0  ;;  %v2469_v36 = vadd.f32 %v3782_v18, %v2468_v21  ;;  %v1771_v21 = vld [vmem:[%s4448_s29 + $0x1a0] sm:$0xff] }
 0x221   : > { %v1902_v62 = vadd.s32 %v6332_v25, %v9507_v29  ;;  %v2215_v39 = vmul.f32 %v2151_v33, %v2151_v33  ;;  %v3784_v60 = vsel %vm7417_vm6, 1.0, %v9409_v37  ;;  %v2405_v26 = vadd.f32 %v2404_v11, %v2213_v6  ;;  %v9510_v33 = vld [vmem:[#allocation90_spill] sm:$0xff]  ;;  %vm7537_vm14 = vmand %vm1833_vm15, %vm1963_vm3  ;;  %v7549_v11 = vld [vmem:[%s4454_s8 + $0x1d0] sm:$0xff] }
 0x222   : > { %vm1838_vm11 = vcmp.gt.f32.partialorder %v7489_v61, 0.0  ;;  %vm1964_vm13 = vcmp.lt.s32.totalorder %v1900_v55, 1096  ;;  %v2091_v18 = vsub.f32 %v7389_v57, %v1769_v59  ;;  %v2153_v7 = vsel %vm7497_vm5, %v2089_v16, 0.0 }
 0x223   : > { %v2470_v0 = vadd.f32 %v3783_v17, %v2469_v36  ;;  %v1903_v29 = vadd.s32 %v6332_v25, %v9510_v33  ;;  %v2216_v6 = vmul.f32 %v2152_v56, %v2152_v56  ;;  %v3785_v59 = vsel %vm7437_vm4, 1.0, %v9409_v37  ;;  %v1772_v36 = vld [vmem:[%s4448_s29 + $0x1a8] sm:$0xff]  ;;  %v9513_v56 = vld [vmem:[#allocation91_spill] sm:$0xff]  ;;  %vm7557_vm15 = vmand %vm1834_vm8, %vm1964_vm13 }
 0x224   : > { %v2406_v16 = vadd.f32 %v2405_v26, %v2214_v38  ;;  %vm1839_vm6 = vcmp.gt.f32.partialorder %v7509_v8, 0.0  ;;  %vm1965_vm7 = vcmp.lt.s32.totalorder %v1901_v13, 1096  ;;  %v2092_v17 = vsub.f32 %v7409_v14, %v1770_v45  ;;  %v7569_v26 = vld [vmem:[%s4454_s8 + $0x1d8] sm:$0xff] }
 0x225   : > { %v2154_v57 = vsel %vm7517_vm2, %v2090_v53, 0.0  ;;  %v2471_v12 = vadd.f32 %v3784_v60, %v2470_v0  ;;  %v1904_v33 = vadd.s32 %v6332_v25, %v9513_v56  ;;  %v2217_v38 = vmul.f32 %v2153_v7, %v2153_v7  ;;  %v1773_v0 = vld [vmem:[%s4448_s29 + $0x1b0] sm:$0xff]  ;;  %v9516_v7 = vld [vmem:[#allocation92_spill] sm:$0xff]  ;;  %vm7577_vm8 = vmand %vm1835_vm12, %vm1965_vm7 }
 0x226   : > { %v3786_v45 = vsel %vm7457_vm10, 1.0, %v9409_v37  ;;  %v2407_v53 = vadd.f32 %v2406_v16, %v2215_v39  ;;  %vm1840_vm4 = vcmp.gt.f32.partialorder %v7529_v27, 0.0  ;;  %vm1966_vm3 = vcmp.lt.s32.totalorder %v1902_v62, 1096  ;;  %v7589_v16 = vld [vmem:[%s4454_s8 + $0x1e0] sm:$0xff] }
 0x227   : > { %v2093_v60 = vsub.f32 %v7429_v5, %v1771_v21  ;;  %v2155_v14 = vsel %vm7537_vm14, %v2091_v18, 0.0  ;;  %v2472_v55 = vadd.f32 %v3785_v59, %v2471_v12  ;;  %v1905_v56 = vadd.s32 %v6332_v25, %v9516_v7  ;;  %v1774_v12 = vld [vmem:[%s4448_s29 + $0x1b8] sm:$0xff]  ;;  %vm7597_vm12 = vmand %vm1836_vm9, %vm1966_vm3 }
 0x228   : > { %v2218_v39 = vmul.f32 %v2154_v57, %v2154_v57  ;;  %v3787_v21 = vsel %vm7477_vm1, 1.0, %v9409_v37  ;;  %v2408_v18 = vadd.f32 %v2407_v53, %v2216_v6  ;;  %vm1841_vm10 = vcmp.gt.f32.partialorder %v7549_v11, 0.0  ;;  %v9519_v57 = vld [vmem:[#allocation93_spill] sm:$0xff]  ;;  %v7609_v53 = vld [vmem:[%s4454_s8 + $0x1e8] sm:$0xff] }
 0x229   : > { %vm1967_vm13 = vcmp.lt.s32.totalorder %v1903_v29, 1096  ;;  %v2094_v59 = vsub.f32 %v7449_v47, %v1772_v36  ;;  %v2156_v5 = vsel %vm7557_vm15, %v2092_v17, 0.0  ;;  %v2473_v13 = vadd.f32 %v3786_v45, %v2472_v55  ;;  %v1775_v55 = vld [vmem:[%s4448_s29 + $0x1c0] sm:$0xff] }
 0x22a   : > { %v1906_v7 = vadd.s32 %v6332_v25, %v9519_v57  ;;  %v2219_v6 = vmul.f32 %v2155_v14, %v2155_v14  ;;  %v3788_v36 = vsel %vm7497_vm5, 1.0, %v9409_v37  ;;  %v2409_v17 = vadd.f32 %v2408_v18, %v2217_v38  ;;  %v9522_v57 = vld [vmem:[#allocation94_spill] sm:$0xff]  ;;  %vm7617_vm9 = vmand %vm1837_vm0, %vm1967_vm13  ;;  %v1776_v18 = vld [vmem:[%s4448_s29 + $0x1c8] sm:$0xff] }
 0x22b   : > { %vm1842_vm1 = vcmp.gt.f32.partialorder %v7569_v26, 0.0  ;;  %vm1968_vm7 = vcmp.lt.s32.totalorder %v1904_v33, 1096  ;;  %v2095_v45 = vsub.f32 %v7469_v4, %v1773_v0  ;;  %v2157_v62 = vsel %vm7577_vm8, %v2093_v60, 0.0 }
 0x22c   : > { %v2474_v47 = vadd.f32 %v3787_v21, %v2473_v13  ;;  %v1907_v14 = vadd.s32 %v6332_v25, %v9522_v57  ;;  %v2220_v38 = vmul.f32 %v2156_v5, %v2156_v5  ;;  %v3789_v0 = vsel %vm7517_vm2, 1.0, %v9409_v37  ;;  %v9525_v13 = vld [vmem:[#allocation95_spill] sm:$0xff]  ;;  %vm7634_vm0 = vmand %vm1838_vm11, %vm1968_vm7 }
 0x22d   : > { %v2410_v60 = vadd.f32 %v2409_v17, %v2218_v39  ;;  %vm1843_vm5 = vcmp.gt.f32.partialorder %v7589_v16, 0.0  ;;  %vm1969_vm3 = vcmp.lt.s32.totalorder %v1905_v56, 1096  ;;  %v2096_v21 = vsub.f32 %v7489_v61, %v1774_v12  ;;  %v9528_v17 = vld [vmem:[#allocation96_spill] sm:$0xff] }
 0x22e   : > { %v2158_v29 = vsel %vm7597_vm12, %v2094_v59, 0.0  ;;  %v2475_v4 = vadd.f32 %v3788_v36, %v2474_v47  ;;  %v1908_v57 = vadd.s32 %v6332_v25, %v9525_v13  ;;  %v2221_v39 = vmul.f32 %v2157_v62, %v2157_v62  ;;  %v1777_v36 = vld [vmem:[%s4448_s29 + $0x1d0] sm:$0xff]  ;;  %vm7651_vm11 = vmand %vm1839_vm6, %vm1969_vm3 }
 0x22f   : > { %v3790_v5 = vsel %vm7537_vm14, 1.0, %v9409_v37  ;;  %v2411_v12 = vadd.f32 %v2410_v60, %v2219_v6  ;;  %vm1844_vm2 = vcmp.gt.f32.partialorder %v7609_v53, 0.0  ;;  %vm1970_vm13 = vcmp.lt.s32.totalorder %v1906_v7, 1096  ;;  %v1778_v60 = vld [vmem:[%s4448_s29 + $0x1d8] sm:$0xff] }
 0x230   : > { %v2097_v59 = vsub.f32 %v7509_v8, %v1775_v55  ;;  %v2159_v33 = vsel %vm7617_vm9, %v2095_v45, 0.0  ;;  %v2476_v61 = vadd.f32 %v3789_v0, %v2475_v4  ;;  %v1909_v47 = vadd.s32 %v6332_v25, %v9528_v17  ;;  %v9531_v8 = vld [vmem:[#allocation97_spill] sm:$0xff]  ;;  %vm7667_vm6 = vmand %vm1840_vm4, %vm1970_vm13 }
 0x231   : > { %v2222_v6 = vmul.f32 %v2158_v29, %v2158_v29  ;;  %v3791_v62 = vsel %vm7557_vm15, 1.0, %v9409_v37  ;;  %v2412_v55 = vadd.f32 %v2411_v12, %v2220_v38  ;;  %vm1971_vm14 = vcmp.lt.s32.totalorder %v1907_v14, 1096  ;;  %v1779_v12 = vld [vmem:[%s4448_s29 + $0x1e0] sm:$0xff] }
 0x232   : > { %v2098_v45 = vsub.f32 %v7529_v27, %v1776_v18  ;;  %v2160_v0 = vsel %vm7634_vm0, %v2096_v21, 0.0  ;;  %v2477_v56 = vadd.f32 %v3790_v5, %v2476_v61  ;;  %v1910_v4 = vadd.s32 %v6332_v25, %v9531_v8  ;;  %v9534_v27 = vld [vmem:[#allocation98_spill] sm:$0xff]  ;;  %vm7683_vm4 = vmand %vm1841_vm10, %vm1971_vm14  ;;  %v3877_v8 = vld [vmem:[%s4448_s29 + $0x248] sm:$0xff] }
 0x233   : > { %v2223_v38 = vmul.f32 %v2159_v33, %v2159_v33  ;;  %v3792_v29 = vsel %vm7577_vm8, 1.0, %v9409_v37  ;;  %v2413_v18 = vadd.f32 %v2412_v55, %v2221_v39  ;;  %vm1972_vm15 = vcmp.lt.s32.totalorder %v1908_v57, 1096  ;;  %v1780_v55 = vld [vmem:[%s4448_s29 + $0x1e8] sm:$0xff] }
 0x234   : > { %v2099_v21 = vsub.f32 %v7549_v11, %v1777_v36  ;;  %v2161_v5 = vsel %vm7651_vm11, %v2097_v59, 0.0  ;;  %v2478_v7 = vadd.f32 %v3791_v62, %v2477_v56  ;;  %v1911_v61 = vadd.s32 %v6332_v25, %v9534_v27  ;;  %v1717_v59 = vld [vmem:[%s4454_s8 + $0x1f0] sm:$0xff]  ;;  %v9537_v56 = vld [vmem:[#allocation99_spill] sm:$0xff]  ;;  %vm7700_vm10 = vmand %vm1842_vm1, %vm1972_vm15 }
 0x235   : > { %v2224_v39 = vmul.f32 %v2160_v0, %v2160_v0  ;;  %v3793_v33 = vsel %vm7597_vm12, 1.0, %v9409_v37  ;;  %v2414_v36 = vadd.f32 %v2413_v18, %v2222_v6  ;;  %vm1973_vm8 = vcmp.lt.s32.totalorder %v1909_v47, 1096  ;;  %v1782_v47 = vld [vmem:[%s4448_s29 + $0x1f8] sm:$0xff] }
 0x236   : > { %v2100_v62 = vsub.f32 %v7569_v26, %v1778_v60  ;;  %v2162_v14 = vsel %vm7667_vm6, %v2098_v45, 0.0  ;;  %v2479_v11 = vadd.f32 %v3792_v29, %v2478_v7  ;;  %v1912_v27 = vadd.s32 %v6332_v25, %v9537_v56  ;;  %v1718_v45 = vld [vmem:[%s4454_s8 + $0x1f8] sm:$0xff]  ;;  %v1781_v26 = vld [vmem:[%s4448_s29 + $0x1f0] sm:$0xff]  ;;  %vm7715_vm7 = vmand %vm1843_vm5, %vm1973_vm8 }
 0x237   : > { %v2225_v6 = vmul.f32 %v2161_v5, %v2161_v5  ;;  %v3794_v0 = vsel %vm7617_vm9, 1.0, %v9409_v37  ;;  %v2415_v60 = vadd.f32 %v2414_v36, %v2223_v38  ;;  %vm1974_vm12 = vcmp.lt.s32.totalorder %v1910_v4, 1096  ;;  %v2427_v4 = vld [vmem:[#allocation8] sm:$0xff] }
 0x238   : > { %v2101_v29 = vsub.f32 %v7589_v16, %v1779_v12  ;;  %v2163_v25 = vsel %vm7683_vm4, %v2099_v21, 0.0  ;;  %v2480_v57 = vadd.f32 %v3793_v33, %v2479_v11  ;;  %vm1845_vm1 = vcmp.gt.f32.partialorder %v1717_v59, 0.0  ;;  %vm7729_vm5 = vmand %vm1844_vm2, %vm1974_vm12 }
 0x239   : > { %v2226_v10 = vmul.f32 %v2162_v14, %v2162_v14  ;;  %v3795_v38 = vsel %vm7634_vm0, 1.0, %v9409_v37  ;;  %v2416_v5 = vadd.f32 %v2415_v60, %v2224_v39  ;;  %vm1975_vm9 = vcmp.lt.s32.totalorder %v1911_v61, 1096 }
 0x23a   : > { %v2102_v7 = vsub.f32 %v7609_v53, %v1780_v55  ;;  %v2164_v21 = vsel %vm7700_vm10, %v2100_v62, 0.0  ;;  %v2481_v12 = vadd.f32 %v3794_v0, %v2480_v57  ;;  %vm1846_vm3 = vcmp.gt.f32.partialorder %v1718_v45, 0.0  ;;  %vm7739_vm13 = vmand %vm1845_vm1, %vm1975_vm9 }
 0x23b   : > { %v2227_v33 = vmul.f32 %v2163_v25, %v2163_v25  ;;  %v3796_v63 = vsel %vm7651_vm11, 1.0, %v9409_v37  ;;  %v2417_v61 = vadd.f32 %v2416_v5, %v2225_v6  ;;  %vm1976_vm0 = vcmp.lt.s32.totalorder %v1912_v27, 1096 }
 0x23c   : > { %v2103_v39 = vsub.f32 %v1717_v59, %v1781_v26  ;;  %v2165_v36 = vsel %vm7715_vm7, %v2101_v29, 0.0  ;;  %v2482_v62 = vadd.f32 %v3795_v38, %v2481_v12  ;;  %v2228_v53 = vmul.f32 %v2164_v21, %v2164_v21  ;;  %vm7749_vm2 = vmand %vm1846_vm3, %vm1976_vm0 }
 0x23d   : > { %v3797_v14 = vsel %vm7667_vm6, 1.0, %v9409_v37  ;;  %v2418_v11 = vadd.f32 %v2417_v61, %v2226_v10  ;;  %v2104_v52 = vsub.f32 %v1718_v45, %v1782_v47  ;;  %v2166_v27 = vsel %vm7729_vm5, %v2102_v7, 0.0  ;;  %v2361_v61 = vld [vmem:[#allocation7] sm:$0xff] }
 0x23e   : > { %v2483_v55 = vadd.f32 %v3796_v63, %v2482_v62  ;;  %v2229_v59 = vmul.f32 %v2165_v36, %v2165_v36  ;;  %v3798_v0 = vsel %vm7683_vm4, 1.0, %v9409_v37  ;;  %v2167_v2 = vsel %vm7739_vm13, %v2103_v39, 0.0 }
 0x23f   : > { %v2419_v60 = vadd.f32 %v2418_v11, %v2227_v33  ;;  %v2230_v25 = vmul.f32 %v2166_v27, %v2166_v27  ;;  %v3799_v45 = vsel %vm7700_vm10, 1.0, %v9409_v37  ;;  %v2168_v26 = vsel %vm7749_vm2, %v2104_v52, 0.0  ;;  %v9548_v11 = vld [vmem:[#allocation61_spill] sm:$0xff] }
 0x240   : > { %v2484_v29 = vadd.f32 %v3797_v14, %v2483_v55  ;;  %v2231_v38 = vmul.f32 %v2167_v2, %v2167_v2  ;;  %v3800_v40 = vsel %vm7715_vm7, 1.0, %v9409_v37  ;;  %v2232_v21 = vmul.f32 %v2168_v26, %v2168_v26  ;;  %v3804_v55 = vld [vmem:[%s4454_s8 + $0x200] sm:$0xff] }
 0x241   : > { %v2420_v57 = vadd.f32 %v2419_v60, %v2228_v53  ;;  %v3801_v12 = vsel %vm7729_vm5, 1.0, %v9409_v37  ;;  %v3802_v33 = vsel %vm7739_vm13, 1.0, %v9409_v37  ;;  %v3803_v39 = vsel %vm7749_vm2, 1.0, %v9409_v37  ;;  %v3806_v60 = vld [vmem:[%s4454_s8 + $0x210] sm:$0xff]  ;;  %v9550_v2 = vld [vmem:[#allocation63_spill] sm:$0xff] }
 0x242   : > { %v2485_v10 = vadd.f32 %v3798_v0, %v2484_v29  ;;  %v7776_v62 = vstv %s2687_s15  ;;  %v3805_v0 = vld [vmem:[%s4454_s8 + $0x208] sm:$0xff]  ;;  %vm2623_vm11 = vcmp.gt.f32.partialorder %v3804_v55, 0.0  ;;  %vm2625_vm4 = vcmp.gt.f32.partialorder %v3806_v60, 0.0 }
 0x243   : > { %v2421_v5 = vadd.f32 %v2420_v57, %v2229_v59  ;;  %v2689_v52 = vadd.s32 %v7776_v62, %v9548_v11  ;;  %v9549_v59 = vld [vmem:[#allocation62_spill] sm:$0xff]  ;;  %v2691_v29 = vadd.s32 %v7776_v62, %v9550_v2  ;;  %vm2624_vm6 = vcmp.gt.f32.partialorder %v3805_v0, 0.0  ;;  %v9551_v57 = vld [vmem:[#allocation64_spill] sm:$0xff]  ;;  %v7843_v2 = vld [vmem:[%s4454_s8 + $0x250] sm:$0xff] }
 0x244   : > { %v2486_v7 = vadd.f32 %v3799_v45, %v2485_v10  ;;  %v2690_v6 = vadd.s32 %v7776_v62, %v9549_v59  ;;  %v3869_v45 = vld [vmem:[%s4448_s29 + $0x208] sm:$0xff]  ;;  %v2692_v26 = vadd.s32 %v7776_v62, %v9551_v57  ;;  %v3807_v10 = vld [vmem:[%s4454_s8 + $0x218] sm:$0xff] }
 0x245   : > { %v2422_v47 = vadd.f32 %v2421_v5, %v2230_v25  ;;  %v3868_v25 = vld [vmem:[%s4448_s29 + $0x200] sm:$0xff]  ;;  %vm2753_vm14 = vcmp.lt.s32.totalorder %v2689_v52, 1096  ;;  %v9552_v5 = vld [vmem:[#allocation65_spill] sm:$0xff]  ;;  %vm2755_vm8 = vcmp.lt.s32.totalorder %v2691_v29, 1096  ;;  %vm2626_vm1 = vcmp.gt.f32.partialorder %v3807_v10, 0.0  ;;  %v9563_v29 = vld [vmem:[#allocation68_spill] sm:$0xff] }
 0x246   : > { %v2487_v22 = vadd.f32 %v3800_v40, %v2486_v7  ;;  %vm2754_vm15 = vcmp.lt.s32.totalorder %v2690_v6, 1096  ;;  %v3808_v40 = vld [vmem:[%s4454_s8 + $0x220] sm:$0xff]  ;;  %v2693_v7 = vadd.s32 %v7776_v62, %v9552_v5  ;;  %vm7796_vm10 = vmand %vm2623_vm11, %vm2753_vm14  ;;  %vm2756_vm7 = vcmp.lt.s32.totalorder %v2692_v26, 1096  ;;  %v3874_v26 = vld [vmem:[%s4448_s29 + $0x230] sm:$0xff] }
 0x247   : > { %v2423_v63 = vadd.f32 %v2422_v47, %v2231_v38  ;;  %v3870_v38 = vld [vmem:[%s4448_s29 + $0x210] sm:$0xff]  ;;  %v2882_v47 = vsub.f32 %v3805_v0, %v3869_v45  ;;  %vm7801_vm12 = vmand %vm2624_vm6, %vm2754_vm15  ;;  %vm2627_vm9 = vcmp.gt.f32.partialorder %v3808_v40, 0.0  ;;  %v7824_v52 = vld [vmem:[%s4454_s8 + $0x240] sm:$0xff] }
 0x248   : > { %v2488_v18 = vadd.f32 %v3801_v12, %v2487_v22  ;;  %v2881_v12 = vsub.f32 %v3804_v55, %v3868_v25  ;;  %v3871_v22 = vld [vmem:[%s4448_s29 + $0x218] sm:$0xff]  ;;  %vm7819_vm3 = vmand %vm2625_vm4, %vm2755_vm8  ;;  %vm2757_vm5 = vcmp.lt.s32.totalorder %v2693_v7, 1096  ;;  %v3873_v0 = vld [vmem:[%s4448_s29 + $0x228] sm:$0xff]  ;;  %v2696_v25 = vadd.s32 %v7776_v62, %v9563_v29 }
 0x249   : > { %v2424_v16 = vadd.f32 %v2423_v63, %v2232_v21  ;;  %v3809_v63 = vld [vmem:[%s4454_s8 + $0x228] sm:$0xff]  ;;  %v2884_v55 = vsub.f32 %v3807_v10, %v3871_v22  ;;  %v2946_v6 = vsel %vm7801_vm12, %v2882_v47, 0.0  ;;  %vm7838_vm11 = vmand %vm2626_vm1, %vm2756_vm7  ;;  %vm2631_vm6 = vcmp.gt.f32.partialorder %v7824_v52, 0.0  ;;  %v9566_v47 = vld [vmem:[#allocation69_spill] sm:$0xff] }
 0x24a   : > { %v2489_v36 = vadd.f32 %v3802_v33, %v2488_v18  ;;  %v7810_v18 = vld [vmem:[%s4454_s8 + $0x238] sm:$0xff]  ;;  %v2945_v59 = vsel %vm7796_vm10, %v2881_v12, 0.0  ;;  %vm2628_vm0 = vcmp.gt.f32.partialorder %v3809_v63, 0.0  ;;  %vm7857_vm4 = vmand %vm2627_vm9, %vm2757_vm5  ;;  %v3010_v12 = vmul.f32 %v2946_v6, %v2946_v6  ;;  %v7889_v29 = vld [vmem:[%s4454_s8 + $0x268] sm:$0xff] }
 0x24b   : > { %v2425_v53 = vadd.f32 %v2424_v16, %v2361_v61  ;;  %v7807_v61 = vld [vmem:[%s4454_s8 + $0x230] sm:$0xff]  ;;  %vm2630_vm2 = vcmp.gt.f32.partialorder %v7810_v18, 0.0  ;;  %v3009_v5 = vmul.f32 %v2945_v59, %v2945_v59  ;;  %v2697_v22 = vadd.s32 %v7776_v62, %v9566_v47  ;;  %v3875_v7 = vld [vmem:[%s4448_s29 + $0x238] sm:$0xff]  ;;  %v3876_v21 = vld [vmem:[%s4448_s29 + $0x240] sm:$0xff] }
 0x24c   : > { %v2490_v14 = vadd.f32 %v3803_v39, %v2489_v36  ;;  %v9557_v39 = vld [vmem:[#allocation66_spill] sm:$0xff]  ;;  %v2883_v36 = vsub.f32 %v3806_v60, %v3870_v38  ;;  %vm2629_vm13 = vcmp.gt.f32.partialorder %v7807_v61, 0.0  ;;  %vm2633_vm1 = vcmp.gt.f32.partialorder %v7843_v2, 0.0 }
 0x24d   : > { %2426 = vst [vmem:[#allocation7] sm:$0xff] %v2425_v53  ;;  %v2694_v16 = vadd.s32 %v7776_v62, %v9557_v39  ;;  %v3872_v53 = vld [vmem:[%s4448_s29 + $0x220] sm:$0xff]  ;;  %v7850_v38 = vld [vmem:[%s4454_s8 + $0x258] sm:$0xff]  ;;  %v2886_v39 = vsub.f32 %v3809_v63, %v3873_v0  ;;  %v3932_v59 = vsel %vm7796_vm10, 1.0, %v9409_v37  ;;  %vm2760_vm5 = vcmp.lt.s32.totalorder %v2696_v25, 1096 }
 0x24e   : > { %v2491_v27 = vadd.f32 %v2490_v14, %v2427_v4  ;;  %v9558_v4 = vld [vmem:[#allocation67_spill] sm:$0xff]  ;;  %v2885_v45 = vsub.f32 %v3808_v40, %v3872_v53  ;;  %v2947_v57 = vsel %vm7819_vm3, %v2883_v36, 0.0  ;;  %v2948_v36 = vsel %vm7838_vm11, %v2884_v55, 0.0  ;;  %v9569_v6 = vld [vmem:[#allocation70_spill] sm:$0xff]  ;;  %v8389_v40 = vld [vmem:[%s4454_s8 + $0x330] sm:$0xff] }
 0x24f   : > { %v2695_v14 = vadd.s32 %v7776_v62, %v9558_v4  ;;  %vm2758_vm14 = vcmp.lt.s32.totalorder %v2694_v16, 1096  ;;  %v7866_v53 = vld [vmem:[%s4454_s8 + $0x260] sm:$0xff]  ;;  %v3011_v4 = vmul.f32 %v2947_v57, %v2947_v57  ;;  %v3933_v55 = vsel %vm7801_vm12, 1.0, %v9409_v37 }
 0x250   : > { %2492 = vst [vmem:[#allocation8] sm:$0xff] %v2491_v27  ;;  %v7827_v27 = vld [vmem:[%s4454_s8 + $0x248] sm:$0xff]  ;;  %vm7872_vm7 = vmand %vm2628_vm0, %vm2758_vm14  ;;  %vm2634_vm9 = vcmp.gt.f32.partialorder %v7850_v38, 0.0  ;;  %v2698_v0 = vadd.s32 %v7776_v62, %v9569_v6  ;;  %v2887_v63 = vsub.f32 %v7807_v61, %v3874_v26  ;;  %v2949_v16 = vsel %vm7857_vm4, %v2885_v45, 0.0  ;;  %v9570_v57 = vld [vmem:[#allocation71_spill] sm:$0xff] }
 0x251   : > { %vm2632_vm15 = vcmp.gt.f32.partialorder %v7827_v27, 0.0  ;;  %vm2759_vm8 = vcmp.lt.s32.totalorder %v2695_v14, 1096  ;;  %v2699_v33 = vadd.s32 %v7776_v62, %v9570_v57  ;;  %v3012_v6 = vmul.f32 %v2948_v36, %v2948_v36  ;;  %v7909_v57 = vld [vmem:[%s4454_s8 + $0x270] sm:$0xff]  ;;  %v9573_v36 = vld [vmem:[#allocation72_spill] sm:$0xff] }
 0x252   : > { %vm7897_vm10 = vmand %vm2629_vm13, %vm2759_vm8  ;;  %v3934_v26 = vsel %vm7819_vm3, 1.0, %v9409_v37  ;;  %v3202_v56 = vadd.f32 %v3010_v12, %v3009_v5  ;;  %vm2635_vm12 = vcmp.gt.f32.partialorder %v7866_v53, 0.0  ;;  %vm2761_vm0 = vcmp.lt.s32.totalorder %v2697_v22, 1096  ;;  %v7949_v22 = vld [vmem:[%s4454_s8 + $0x280] sm:$0xff] }
 0x253   : > { %v2888_v45 = vsub.f32 %v7810_v18, %v3875_v7  ;;  %v2950_v61 = vsel %vm7872_vm7, %v2886_v39, 0.0  ;;  %v3268_v14 = vadd.f32 %v3933_v55, %v3932_v59  ;;  %v2700_v17 = vadd.s32 %v7776_v62, %v9573_v36  ;;  %vm7917_vm3 = vmand %vm2630_vm2, %vm2760_vm5  ;;  %v7929_v59 = vld [vmem:[%s4454_s8 + $0x278] sm:$0xff]  ;;  %v3878_v55 = vld [vmem:[%s4448_s29 + $0x250] sm:$0xff] }
 0x254   : > { %v3013_v5 = vmul.f32 %v2949_v16, %v2949_v16  ;;  %v3935_v12 = vsel %vm7838_vm11, 1.0, %v9409_v37  ;;  %v3203_v39 = vadd.f32 %v3202_v56, %v3011_v4  ;;  %vm2636_vm13 = vcmp.gt.f32.partialorder %v7889_v29, 0.0  ;;  %vm7937_vm2 = vmand %vm2631_vm6, %vm2761_vm0  ;;  %v3880_v36 = vld [vmem:[%s4448_s29 + $0x260] sm:$0xff] }
 0x255   : > { %vm2762_vm14 = vcmp.lt.s32.totalorder %v2698_v0, 1096  ;;  %v2889_v7 = vsub.f32 %v7824_v52, %v3876_v21  ;;  %v2951_v18 = vsel %vm7897_vm10, %v2887_v63, 0.0  ;;  %v3269_v25 = vadd.f32 %v3934_v26, %v3268_v14  ;;  %v3879_v26 = vld [vmem:[%s4448_s29 + $0x258] sm:$0xff]  ;;  %v7969_v0 = vld [vmem:[%s4454_s8 + $0x288] sm:$0xff] }
 0x256   : > { %v2701_v16 = vadd.s32 %v7776_v62, %v6360_v49  ;;  %v3014_v60 = vmul.f32 %v2950_v61, %v2950_v61  ;;  %v3936_v4 = vsel %vm7857_vm4, 1.0, %v9409_v37  ;;  %v3204_v63 = vadd.f32 %v3203_v39, %v3012_v6  ;;  %vm7957_vm6 = vmand %vm2632_vm15, %vm2762_vm14 }
 0x257   : > { %vm2637_vm11 = vcmp.gt.f32.partialorder %v7909_v57, 0.0  ;;  %vm2763_vm8 = vcmp.lt.s32.totalorder %v2699_v33, 1096  ;;  %v2890_v21 = vsub.f32 %v7827_v27, %v3877_v8  ;;  %v2952_v49 = vsel %vm7917_vm3, %v2888_v45, 0.0  ;;  %v7989_v33 = vld [vmem:[%s4454_s8 + $0x290] sm:$0xff] }
 0x258   : > { %v3270_v52 = vadd.f32 %v3935_v12, %v3269_v25  ;;  %v2702_v61 = vadd.s32 %v7776_v62, %v6363_v1  ;;  %v3015_v6 = vmul.f32 %v2951_v18, %v2951_v18  ;;  %v3937_v8 = vsel %vm7872_vm7, 1.0, %v9409_v37  ;;  %vm7977_vm15 = vmand %vm2633_vm1, %vm2763_vm8  ;;  %v3881_v25 = vld [vmem:[%s4448_s29 + $0x268] sm:$0xff] }
 0x259   : > { %v3205_v45 = vadd.f32 %v3204_v63, %v3013_v5  ;;  %vm2638_vm4 = vcmp.gt.f32.partialorder %v7929_v59, 0.0  ;;  %vm2764_vm5 = vcmp.lt.s32.totalorder %v2700_v17, 1096  ;;  %v2891_v14 = vsub.f32 %v7843_v2, %v3878_v55 }
 0x25a   : > { %v2953_v1 = vsel %vm7937_vm2, %v2889_v7, 0.0  ;;  %v3271_v27 = vadd.f32 %v3936_v4, %v3270_v52  ;;  %v2703_v12 = vadd.s32 %v7776_v62, %v6366_v3  ;;  %v3016_v5 = vmul.f32 %v2952_v49, %v2952_v49  ;;  %vm7997_vm1 = vmand %vm2634_vm9, %vm2764_vm5  ;;  %v3882_v49 = vld [vmem:[%s4448_s29 + $0x270] sm:$0xff] }
 0x25b   : > { %v3938_v39 = vsel %vm7897_vm10, 1.0, %v9409_v37  ;;  %v3206_v7 = vadd.f32 %v3205_v45, %v3014_v60  ;;  %vm2639_vm7 = vcmp.gt.f32.partialorder %v7949_v22, 0.0  ;;  %vm2765_vm0 = vcmp.lt.s32.totalorder %v2701_v16, 1096  ;;  %v8029_v16 = vld [vmem:[%s4454_s8 + $0x2a0] sm:$0xff] }
 0x25c   : > { %v2892_v18 = vsub.f32 %v7850_v38, %v3879_v26  ;;  %v2954_v3 = vsel %vm7957_vm6, %v2890_v21, 0.0  ;;  %v3272_v2 = vadd.f32 %v3937_v8, %v3271_v27  ;;  %v2704_v55 = vadd.s32 %v7776_v62, %v6369_v30  ;;  %v8009_v38 = vld [vmem:[%s4454_s8 + $0x298] sm:$0xff]  ;;  %vm8017_vm9 = vmand %vm2635_vm12, %vm2765_vm0 }
 0x25d   : > { %v3017_v60 = vmul.f32 %v2953_v1, %v2953_v1  ;;  %v3939_v4 = vsel %vm7917_vm3, 1.0, %v9409_v37  ;;  %v3207_v63 = vadd.f32 %v3206_v7, %v3015_v6  ;;  %vm2640_vm10 = vcmp.gt.f32.partialorder %v7969_v0, 0.0  ;;  %v3884_v7 = vld [vmem:[%s4448_s29 + $0x280] sm:$0xff] }
 0x25e   : > { %vm2766_vm14 = vcmp.lt.s32.totalorder %v2702_v61, 1096  ;;  %v2893_v21 = vsub.f32 %v7866_v53, %v3880_v36  ;;  %v2955_v30 = vsel %vm7977_vm15, %v2891_v14, 0.0  ;;  %v3273_v17 = vadd.f32 %v3938_v39, %v3272_v2  ;;  %v3883_v14 = vld [vmem:[%s4448_s29 + $0x278] sm:$0xff]  ;;  %v8049_v61 = vld [vmem:[%s4454_s8 + $0x2a8] sm:$0xff] }
 0x25f   : > { %v2705_v52 = vadd.s32 %v7776_v62, %v6373_v31  ;;  %v3018_v26 = vmul.f32 %v2954_v3, %v2954_v3  ;;  %v3940_v6 = vsel %vm7937_vm2, 1.0, %v9409_v37  ;;  %v3208_v8 = vadd.f32 %v3207_v63, %v3016_v5  ;;  %vm8037_vm12 = vmand %vm2636_vm13, %vm2766_vm14 }
 0x260   : > { %vm2641_vm3 = vcmp.gt.f32.partialorder %v7989_v33, 0.0  ;;  %vm2767_vm8 = vcmp.lt.s32.totalorder %v2703_v12, 1096  ;;  %v2894_v45 = vsub.f32 %v7889_v29, %v3881_v25  ;;  %v2956_v31 = vsel %vm7997_vm1, %v2892_v18, 0.0  ;;  %v8069_v12 = vld [vmem:[%s4454_s8 + $0x2b0] sm:$0xff] }
 0x261   : > { %v3274_v53 = vadd.f32 %v3939_v4, %v3273_v17  ;;  %v2706_v1 = vadd.s32 %v7776_v62, %v6376_v51  ;;  %v3019_v27 = vmul.f32 %v2955_v30, %v2955_v30  ;;  %v3941_v36 = vsel %vm7957_vm6, 1.0, %v9409_v37  ;;  %vm8057_vm13 = vmand %vm2637_vm11, %vm2767_vm8  ;;  %v3885_v4 = vld [vmem:[%s4448_s29 + $0x288] sm:$0xff] }
 0x262   : > { %v3209_v5 = vadd.f32 %v3208_v8, %v3017_v60  ;;  %vm2642_vm2 = vcmp.gt.f32.partialorder %v8009_v38, 0.0  ;;  %vm2768_vm5 = vcmp.lt.s32.totalorder %v2704_v55, 1096  ;;  %v2895_v39 = vsub.f32 %v7909_v57, %v3882_v49  ;;  %v8089_v55 = vld [vmem:[%s4454_s8 + $0x2b8] sm:$0xff] }
 0x263   : > { %v2957_v51 = vsel %vm8017_vm9, %v2893_v21, 0.0  ;;  %v3275_v29 = vadd.f32 %v3940_v6, %v3274_v53  ;;  %v2707_v18 = vadd.s32 %v7776_v62, %v6379_v9  ;;  %v3020_v3 = vmul.f32 %v2956_v31, %v2956_v31  ;;  %vm8077_vm11 = vmand %vm2638_vm4, %vm2768_vm5 }
 0x264   : > { %v3942_v2 = vsel %vm7977_vm15, 1.0, %v9409_v37  ;;  %v3210_v25 = vadd.f32 %v3209_v5, %v3018_v26  ;;  %vm2643_vm6 = vcmp.gt.f32.partialorder %v8029_v16, 0.0  ;;  %vm2769_vm0 = vcmp.lt.s32.totalorder %v2705_v52, 1096  ;;  %v3886_v26 = vld [vmem:[%s4448_s29 + $0x290] sm:$0xff]  ;;  %v8109_v52 = vld [vmem:[%s4454_s8 + $0x2c0] sm:$0xff] }
 0x265   : > { %v2896_v60 = vsub.f32 %v7929_v59, %v3883_v14  ;;  %v2958_v9 = vsel %vm8037_vm12, %v2894_v45, 0.0  ;;  %v3276_v57 = vadd.f32 %v3941_v36, %v3275_v29  ;;  %v2708_v63 = vadd.s32 %v7776_v62, %v6382_v28  ;;  %vm8097_vm4 = vmand %vm2639_vm7, %vm2769_vm0  ;;  %v3887_v14 = vld [vmem:[%s4448_s29 + $0x298] sm:$0xff]  ;;  %v3888_v29 = vld [vmem:[%s4448_s29 + $0x2a0] sm:$0xff] }
 0x266   : > { %v3021_v21 = vmul.f32 %v2957_v51, %v2957_v51  ;;  %v3943_v30 = vsel %vm7997_vm1, 1.0, %v9409_v37  ;;  %v3211_v17 = vadd.f32 %v3210_v25, %v3019_v27  ;;  %vm2644_vm15 = vcmp.gt.f32.partialorder %v8049_v61, 0.0 }
 0x267   : > { %vm2770_vm14 = vcmp.lt.s32.totalorder %v2706_v1, 1096  ;;  %v2897_v49 = vsub.f32 %v7949_v22, %v3884_v7  ;;  %v2959_v28 = vsel %vm8057_vm13, %v2895_v39, 0.0  ;;  %v3277_v59 = vadd.f32 %v3942_v2, %v3276_v57  ;;  %v8129_v1 = vld [vmem:[%s4454_s8 + $0x2c8] sm:$0xff] }
 0x268   : > { %v2709_v6 = vadd.s32 %v7776_v62, %v6388_v48  ;;  %v3022_v8 = vmul.f32 %v2958_v9, %v2958_v9  ;;  %v3944_v45 = vsel %vm8017_vm9, 1.0, %v9409_v37  ;;  %v3212_v31 = vadd.f32 %v3211_v17, %v3020_v3  ;;  %vm8117_vm7 = vmand %vm2640_vm10, %vm2770_vm14  ;;  %v3889_v9 = vld [vmem:[%s4448_s29 + $0x2a8] sm:$0xff] }
 0x269   : > { %vm2645_vm1 = vcmp.gt.f32.partialorder %v8069_v12, 0.0  ;;  %vm2771_vm8 = vcmp.lt.s32.totalorder %v2707_v18, 1096  ;;  %v2898_v53 = vsub.f32 %v7969_v0, %v3885_v4  ;;  %v2960_v48 = vsel %vm8077_vm11, %v2896_v60, 0.0  ;;  %v8149_v18 = vld [vmem:[%s4454_s8 + $0x2d0] sm:$0xff] }
 0x26a   : > { %v3278_v22 = vadd.f32 %v3943_v30, %v3277_v59  ;;  %v2710_v27 = vadd.s32 %v7776_v62, %v6391_v23  ;;  %v3023_v36 = vmul.f32 %v2959_v28, %v2959_v28  ;;  %v3945_v5 = vsel %vm8037_vm12, 1.0, %v9409_v37  ;;  %vm8137_vm10 = vmand %vm2641_vm3, %vm2771_vm8 }
 0x26b   : > { %v3213_v39 = vadd.f32 %v3212_v31, %v3021_v21  ;;  %vm2646_vm9 = vcmp.gt.f32.partialorder %v8089_v55, 0.0  ;;  %vm2772_vm5 = vcmp.lt.s32.totalorder %v2708_v63, 1096  ;;  %v2899_v51 = vsub.f32 %v7989_v33, %v3886_v26  ;;  %v8169_v63 = vld [vmem:[%s4454_s8 + $0x2d8] sm:$0xff] }
 0x26c   : > { %v2961_v23 = vsel %vm8097_vm4, %v2897_v49, 0.0  ;;  %v3279_v0 = vadd.f32 %v3944_v45, %v3278_v22  ;;  %v2711_v7 = vadd.s32 %v7776_v62, %v6394_v58  ;;  %v3024_v3 = vmul.f32 %v2960_v48, %v2960_v48  ;;  %vm8157_vm3 = vmand %vm2642_vm2, %vm2772_vm5  ;;  %v3890_v49 = vld [vmem:[%s4448_s29 + $0x2b0] sm:$0xff]  ;;  %v3891_v31 = vld [vmem:[%s4448_s29 + $0x2b8] sm:$0xff] }
 0x26d   : > { %v3946_v2 = vsel %vm8057_vm13, 1.0, %v9409_v37  ;;  %v3214_v25 = vadd.f32 %v3213_v39, %v3022_v8  ;;  %vm2647_vm12 = vcmp.gt.f32.partialorder %v8109_v52, 0.0  ;;  %vm2773_vm0 = vcmp.lt.s32.totalorder %v2709_v6, 1096  ;;  %v8189_v6 = vld [vmem:[%s4454_s8 + $0x2e0] sm:$0xff] }
 0x26e   : > { %v2900_v60 = vsub.f32 %v8009_v38, %v3887_v14  ;;  %v2962_v58 = vsel %vm8117_vm7, %v2898_v53, 0.0  ;;  %v3280_v33 = vadd.f32 %v3945_v5, %v3279_v0  ;;  %v2712_v57 = vadd.s32 %v7776_v62, %v6397_v42  ;;  %vm8177_vm2 = vmand %vm2643_vm6, %vm2773_vm0  ;;  %v3892_v5 = vld [vmem:[%s4448_s29 + $0x2c0] sm:$0xff] }
 0x26f   : > { %v3025_v4 = vmul.f32 %v2961_v23, %v2961_v23  ;;  %v3947_v21 = vsel %vm8077_vm11, 1.0, %v9409_v37  ;;  %v3215_v30 = vadd.f32 %v3214_v25, %v3023_v36  ;;  %vm2648_vm13 = vcmp.gt.f32.partialorder %v8129_v1, 0.0 }
 0x270   : > { %vm2774_vm14 = vcmp.lt.s32.totalorder %v2710_v27, 1096  ;;  %v2901_v17 = vsub.f32 %v8029_v16, %v3888_v29  ;;  %v2963_v42 = vsel %vm8137_vm10, %v2899_v51, 0.0  ;;  %v3281_v38 = vadd.f32 %v3946_v2, %v3280_v33  ;;  %v8209_v27 = vld [vmem:[%s4454_s8 + $0x2e8] sm:$0xff] }
 0x271   : > { %v2713_v28 = vadd.s32 %v7776_v62, %v6400_v41  ;;  %v3026_v59 = vmul.f32 %v2962_v58, %v2962_v58  ;;  %v3948_v26 = vsel %vm8097_vm4, 1.0, %v9409_v37  ;;  %v3216_v8 = vadd.f32 %v3215_v30, %v3024_v3  ;;  %vm8197_vm6 = vmand %vm2644_vm15, %vm2774_vm14  ;;  %v3893_v3 = vld [vmem:[%s4448_s29 + $0x2c8] sm:$0xff] }
 0x272   : > { %vm2649_vm11 = vcmp.gt.f32.partialorder %v8149_v18, 0.0  ;;  %vm2775_vm8 = vcmp.lt.s32.totalorder %v2711_v7, 1096  ;;  %v2902_v45 = vsub.f32 %v8049_v61, %v3889_v9  ;;  %v2964_v41 = vsel %vm8157_vm3, %v2900_v60, 0.0  ;;  %v8229_v7 = vld [vmem:[%s4454_s8 + $0x2f0] sm:$0xff]  ;;  %v8249_v9 = vld [vmem:[%s4454_s8 + $0x2f8] sm:$0xff] }
 0x273   : > { %v3282_v16 = vadd.f32 %v3947_v21, %v3281_v38  ;;  %v2714_v53 = vadd.s32 %v7776_v62, %v6403_v43  ;;  %v3027_v48 = vmul.f32 %v2963_v42, %v2963_v42  ;;  %v3949_v22 = vsel %vm8117_vm7, 1.0, %v9409_v37  ;;  %vm8217_vm15 = vmand %vm2645_vm1, %vm2775_vm8  ;;  %v8269_v38 = vld [vmem:[%s4454_s8 + $0x300] sm:$0xff] }
 0x274   : > { %v3217_v14 = vadd.f32 %v3216_v8, %v3025_v4  ;;  %vm2650_vm4 = vcmp.gt.f32.partialorder %v8169_v63, 0.0  ;;  %vm2776_vm5 = vcmp.lt.s32.totalorder %v2712_v57, 1096  ;;  %v2903_v36 = vsub.f32 %v8069_v12, %v3890_v49  ;;  %v3894_v57 = vld [vmem:[%s4448_s29 + $0x2d0] sm:$0xff]  ;;  %v3895_v49 = vld [vmem:[%s4448_s29 + $0x2d8] sm:$0xff] }
 0x275   : > { %v2965_v43 = vsel %vm8177_vm2, %v2901_v17, 0.0  ;;  %v3283_v61 = vadd.f32 %v3948_v26, %v3282_v16  ;;  %v2715_v39 = vadd.s32 %v7776_v62, %v6406_v24  ;;  %v3028_v51 = vmul.f32 %v2964_v41, %v2964_v41  ;;  %vm8237_vm1 = vmand %vm2646_vm9, %vm2776_vm5  ;;  %v8289_v41 = vld [vmem:[%s4454_s8 + $0x308] sm:$0xff]  ;;  %v3896_v16 = vld [vmem:[%s4448_s29 + $0x2e0] sm:$0xff] }
 0x276   : > { %v3950_v23 = vsel %vm8137_vm10, 1.0, %v9409_v37  ;;  %v3218_v0 = vadd.f32 %v3217_v14, %v3026_v59  ;;  %vm2651_vm7 = vcmp.gt.f32.partialorder %v8189_v6, 0.0  ;;  %vm2777_vm0 = vcmp.lt.s32.totalorder %v2713_v28, 1096 }
 0x277   : > { %v2904_v29 = vsub.f32 %v8089_v55, %v3891_v31  ;;  %v2966_v24 = vsel %vm8197_vm6, %v2902_v45, 0.0  ;;  %v3284_v12 = vadd.f32 %v3949_v22, %v3283_v61  ;;  %v2716_v2 = vadd.s32 %v7776_v62, %v6414_v54  ;;  %vm8257_vm9 = vmand %vm2647_vm12, %vm2777_vm0 }
 0x278   : > { %v3029_v25 = vmul.f32 %v2965_v43, %v2965_v43  ;;  %v3951_v60 = vsel %vm8157_vm3, 1.0, %v9409_v37  ;;  %v3219_v58 = vadd.f32 %v3218_v0, %v3027_v48  ;;  %vm2652_vm10 = vcmp.gt.f32.partialorder %v8209_v27, 0.0  ;;  %v3897_v43 = vld [vmem:[%s4448_s29 + $0x2e8] sm:$0xff]  ;;  %v8329_v0 = vld [vmem:[%s4454_s8 + $0x318] sm:$0xff] }
 0x279   : > { %vm2778_vm14 = vcmp.lt.s32.totalorder %v2714_v53, 1096  ;;  %v2905_v33 = vsub.f32 %v8109_v52, %v3892_v5  ;;  %v2967_v54 = vsel %vm8217_vm15, %v2903_v36, 0.0  ;;  %v3285_v55 = vadd.f32 %v3950_v23, %v3284_v12  ;;  %v8309_v36 = vld [vmem:[%s4454_s8 + $0x310] sm:$0xff]  ;;  %v3904_v12 = vld [vmem:[%s4448_s29 + $0x320] sm:$0xff] }
 0x27a   : > { %v2717_v4 = vadd.s32 %v7776_v62, %v6417_v34  ;;  %v3030_v21 = vmul.f32 %v2966_v24, %v2966_v24  ;;  %v3952_v30 = vsel %vm8177_vm2, 1.0, %v9409_v37  ;;  %v3220_v17 = vadd.f32 %v3219_v58, %v3028_v51  ;;  %vm8277_vm12 = vmand %vm2648_vm13, %vm2778_vm14  ;;  %v3899_v58 = vld [vmem:[%s4448_s29 + $0x2f8] sm:$0xff]  ;;  %v3902_v53 = vld [vmem:[%s4448_s29 + $0x310] sm:$0xff] }
 0x27b   : > { %vm2653_vm3 = vcmp.gt.f32.partialorder %v8229_v7, 0.0  ;;  %vm2779_vm8 = vcmp.lt.s32.totalorder %v2715_v39, 1096  ;;  %v2906_v42 = vsub.f32 %v8129_v1, %v3893_v3  ;;  %v2968_v34 = vsel %vm8237_vm1, %v2904_v29, 0.0  ;;  %v3898_v29 = vld [vmem:[%s4448_s29 + $0x2f0] sm:$0xff] }
 0x27c   : > { %v3286_v52 = vadd.f32 %v3951_v60, %v3285_v55  ;;  %v2718_v28 = vadd.s32 %v7776_v62, %v6420_v19  ;;  %v3031_v59 = vmul.f32 %v2967_v54, %v2967_v54  ;;  %v3953_v26 = vsel %vm8197_vm6, 1.0, %v9409_v37  ;;  %vm8297_vm13 = vmand %vm2649_vm11, %vm2779_vm8  ;;  %v8349_v60 = vld [vmem:[%s4454_s8 + $0x320] sm:$0xff]  ;;  %v9626_v5 = vld [vmem:[#allocation73_spill] sm:$0xff] }
 0x27d   : > { %v3221_v8 = vadd.f32 %v3220_v17, %v3029_v25  ;;  %vm2654_vm2 = vcmp.gt.f32.partialorder %v8249_v9, 0.0  ;;  %vm2780_vm5 = vcmp.lt.s32.totalorder %v2716_v2, 1096  ;;  %v2907_v45 = vsub.f32 %v8149_v18, %v3894_v57  ;;  %v8469_v54 = vld [vmem:[%s4454_s8 + $0x350] sm:$0xff] }
 0x27e   : > { %v2969_v19 = vsel %vm8257_vm9, %v2905_v33, 0.0  ;;  %v3287_v1 = vadd.f32 %v3952_v30, %v3286_v52  ;;  %v2719_v31 = vadd.s32 %v7776_v62, %v6426_v20  ;;  %v3032_v47 = vmul.f32 %v2968_v34, %v2968_v34  ;;  %vm8317_vm11 = vmand %vm2650_vm4, %vm2780_vm5  ;;  %v3900_v30 = vld [vmem:[%s4448_s29 + $0x300] sm:$0xff] }
 0x27f   : > { %v3954_v48 = vsel %vm8217_vm15, 1.0, %v9409_v37  ;;  %v3222_v22 = vadd.f32 %v3221_v8, %v3030_v21  ;;  %vm2655_vm6 = vcmp.gt.f32.partialorder %v8269_v38, 0.0  ;;  %vm2781_vm0 = vcmp.lt.s32.totalorder %v2717_v4, 1096  ;;  %v8369_v21 = vld [vmem:[%s4454_s8 + $0x328] sm:$0xff] }
 0x280   : > { %v2908_v14 = vsub.f32 %v8169_v63, %v3895_v49  ;;  %v2970_v20 = vsel %vm8277_vm12, %v2906_v42, 0.0  ;;  %v3288_v18 = vadd.f32 %v3953_v26, %v3287_v1  ;;  %v2720_v61 = vadd.s32 %v7776_v62, %v6429_v35  ;;  %vm8337_vm4 = vmand %vm2651_vm7, %vm2781_vm0 }
 0x281   : > { %v3033_v39 = vmul.f32 %v2969_v19, %v2969_v19  ;;  %v3955_v11 = vsel %vm8237_vm1, 1.0, %v9409_v37  ;;  %v3223_v51 = vadd.f32 %v3222_v22, %v3031_v59  ;;  %vm2656_vm15 = vcmp.gt.f32.partialorder %v8289_v41, 0.0  ;;  %v3901_v59 = vld [vmem:[%s4448_s29 + $0x308] sm:$0xff] }
 0x282   : > { %vm2782_vm14 = vcmp.lt.s32.totalorder %v2718_v28, 1096  ;;  %v2909_v23 = vsub.f32 %v8189_v6, %v3896_v16  ;;  %v2971_v35 = vsel %vm8297_vm13, %v2907_v45, 0.0  ;;  %v3289_v63 = vadd.f32 %v3954_v48, %v3288_v18 }
 0x283   : > { %v2721_v24 = vadd.s32 %v7776_v62, %v6432_v50  ;;  %v3034_v3 = vmul.f32 %v2970_v20, %v2970_v20  ;;  %v3956_v2 = vsel %vm8257_vm9, 1.0, %v9409_v37  ;;  %v3224_v56 = vadd.f32 %v3223_v51, %v3032_v47  ;;  %vm8357_vm7 = vmand %vm2652_vm10, %vm2782_vm14 }
 0x284   : > { %vm2657_vm1 = vcmp.gt.f32.partialorder %v8309_v36, 0.0  ;;  %vm2783_vm8 = vcmp.lt.s32.totalorder %v2719_v31, 1096  ;;  %v2910_v25 = vsub.f32 %v8209_v27, %v3897_v43  ;;  %v2972_v50 = vsel %vm8317_vm11, %v2908_v14, 0.0  ;;  %v8409_v31 = vld [vmem:[%s4454_s8 + $0x338] sm:$0xff]  ;;  %v8429_v43 = vld [vmem:[%s4454_s8 + $0x340] sm:$0xff] }
 0x285   : > { %v3290_v6 = vadd.f32 %v3955_v11, %v3289_v63  ;;  %v2722_v33 = vadd.s32 %v7776_v62, %v6435_v44  ;;  %v3035_v55 = vmul.f32 %v2971_v35, %v2971_v35  ;;  %v3957_v57 = vsel %vm8277_vm12, 1.0, %v9409_v37  ;;  %vm8377_vm10 = vmand %vm2653_vm3, %vm2783_vm8 }
 0x286   : > { %v3225_v4 = vadd.f32 %v3224_v56, %v3033_v39  ;;  %vm2658_vm9 = vcmp.gt.f32.partialorder %v8329_v0, 0.0  ;;  %vm2784_vm5 = vcmp.lt.s32.totalorder %v2720_v61, 1096  ;;  %v2911_v10 = vsub.f32 %v8229_v7, %v3898_v29  ;;  %v3903_v61 = vld [vmem:[%s4448_s29 + $0x318] sm:$0xff] }
 0x287   : > { %v2973_v44 = vsel %vm8337_vm4, %v2909_v23, 0.0  ;;  %v3291_v27 = vadd.f32 %v3956_v2, %v3290_v6  ;;  %v2723_v17 = vadd.s32 %v7776_v62, %v6441_v46  ;;  %v3036_v34 = vmul.f32 %v2972_v50, %v2972_v50  ;;  %vm8397_vm3 = vmand %vm2654_vm2, %vm2784_vm5 }
 0x288   : > { %v3958_v52 = vsel %vm8297_vm13, 1.0, %v9409_v37  ;;  %v3226_v49 = vadd.f32 %v3225_v4, %v3034_v3  ;;  %vm2659_vm12 = vcmp.gt.f32.partialorder %v8349_v60, 0.0  ;;  %vm2785_vm0 = vcmp.lt.s32.totalorder %v2721_v24, 1096  ;;  %v8449_v24 = vld [vmem:[%s4454_s8 + $0x348] sm:$0xff]  ;;  %v9629_v3 = vld [vmem:[#allocation74_spill] sm:$0xff] }
 0x289   : > { %v2912_v28 = vsub.f32 %v8249_v9, %v3899_v58  ;;  %v2974_v46 = vsel %vm8357_vm7, %v2910_v25, 0.0  ;;  %v3292_v7 = vadd.f32 %v3957_v57, %v3291_v27  ;;  %v2724_v26 = vadd.s32 %v7776_v62, %v6444_v15  ;;  %vm8417_vm2 = vmand %vm2655_vm6, %vm2785_vm0  ;;  %v9632_v57 = vld [vmem:[#allocation75_spill] sm:$0xff] }
 0x28a   : > { %v3037_v45 = vmul.f32 %v2973_v44, %v2973_v44  ;;  %v3959_v19 = vsel %vm8317_vm11, 1.0, %v9409_v37  ;;  %v3227_v1 = vadd.f32 %v3226_v49, %v3035_v55  ;;  %vm2660_vm13 = vcmp.gt.f32.partialorder %v8369_v21, 0.0  ;;  %v3905_v55 = vld [vmem:[%s4448_s29 + $0x328] sm:$0xff] }
 0x28b   : > { %vm2786_vm14 = vcmp.lt.s32.totalorder %v2722_v33, 1096  ;;  %v2913_v16 = vsub.f32 %v8269_v38, %v3900_v30  ;;  %v2975_v15 = vsel %vm8377_vm10, %v2911_v10, 0.0  ;;  %v3293_v9 = vadd.f32 %v3958_v52, %v3292_v7  ;;  %v3906_v52 = vld [vmem:[%s4448_s29 + $0x330] sm:$0xff]  ;;  %v9635_v49 = vld [vmem:[#allocation76_spill] sm:$0xff] }
 0x28c   : > { %v2725_v47 = vadd.s32 %v7776_v62, %v6447_v32  ;;  %v3038_v22 = vmul.f32 %v2974_v46, %v2974_v46  ;;  %v3960_v14 = vsel %vm8337_vm4, 1.0, %v9409_v37  ;;  %v3228_v20 = vadd.f32 %v3227_v1, %v3036_v34  ;;  %vm8437_vm6 = vmand %vm2656_vm15, %vm2786_vm14  ;;  %v8489_v34 = vld [vmem:[%s4454_s8 + $0x358] sm:$0xff] }
 0x28d   : > { %vm2661_vm11 = vcmp.gt.f32.partialorder %v8389_v40, 0.0  ;;  %vm2787_vm8 = vcmp.lt.s32.totalorder %v2723_v17, 1096  ;;  %v2914_v18 = vsub.f32 %v8289_v41, %v3901_v59  ;;  %v2976_v32 = vsel %vm8397_vm3, %v2912_v28, 0.0  ;;  %v3907_v1 = vld [vmem:[%s4448_s29 + $0x338] sm:$0xff] }
 0x28e   : > { %v3294_v38 = vadd.f32 %v3959_v19, %v3293_v9  ;;  %v2726_v39 = vadd.s32 %v7776_v62, %v9626_v5  ;;  %v3039_v51 = vmul.f32 %v2975_v15, %v2975_v15  ;;  %v3961_v23 = vsel %vm8357_vm7, 1.0, %v9409_v37  ;;  %vm8457_vm15 = vmand %vm2657_vm1, %vm2787_vm8  ;;  %v8509_v19 = vld [vmem:[%s4454_s8 + $0x360] sm:$0xff] }
 0x28f   : > { %v3229_v35 = vadd.f32 %v3228_v20, %v3037_v45  ;;  %vm2662_vm4 = vcmp.gt.f32.partialorder %v8409_v31, 0.0  ;;  %vm2788_vm5 = vcmp.lt.s32.totalorder %v2724_v26, 1096  ;;  %v2915_v63 = vsub.f32 %v8309_v36, %v3902_v53  ;;  %v8529_v20 = vld [vmem:[%s4454_s8 + $0x368] sm:$0xff] }
 0x290   : > { %v2977_v41 = vsel %vm8417_vm2, %v2913_v16, 0.0  ;;  %v3295_v29 = vadd.f32 %v3960_v14, %v3294_v38  ;;  %v2727_v2 = vadd.s32 %v7776_v62, %v9629_v3  ;;  %v3040_v25 = vmul.f32 %v2976_v32, %v2976_v32  ;;  %vm8477_vm1 = vmand %vm2658_vm9, %vm2788_vm5  ;;  %v9638_v16 = vld [vmem:[#allocation77_spill] sm:$0xff]  ;;  %v9641_v32 = vld [vmem:[#allocation78_spill] sm:$0xff] }
 0x291   : > { %v3962_v50 = vsel %vm8377_vm10, 1.0, %v9409_v37  ;;  %v3230_v6 = vadd.f32 %v3229_v35, %v3038_v22  ;;  %vm2663_vm7 = vcmp.gt.f32.partialorder %v8429_v43, 0.0  ;;  %vm2789_vm0 = vcmp.lt.s32.totalorder %v2725_v47, 1096  ;;  %v8549_v35 = vld [vmem:[%s4454_s8 + $0x370] sm:$0xff] }
 0x292   : > { %v2916_v58 = vsub.f32 %v8329_v0, %v3903_v61  ;;  %v2978_v36 = vsel %vm8437_vm6, %v2914_v18, 0.0  ;;  %v3296_v33 = vadd.f32 %v3961_v23, %v3295_v29  ;;  %v2728_v4 = vadd.s32 %v7776_v62, %v9632_v57  ;;  %vm8497_vm9 = vmand %vm2659_vm12, %vm2789_vm0  ;;  %v3908_v18 = vld [vmem:[%s4448_s29 + $0x340] sm:$0xff] }
 0x293   : > { %v3041_v44 = vmul.f32 %v2977_v41, %v2977_v41  ;;  %v3963_v27 = vsel %vm8397_vm3, 1.0, %v9409_v37  ;;  %v3231_v30 = vadd.f32 %v3230_v6, %v3039_v51  ;;  %vm2664_vm10 = vcmp.gt.f32.partialorder %v8449_v24, 0.0  ;;  %v9644_v41 = vld [vmem:[#allocation79_spill] sm:$0xff]  ;;  %v8569_v6 = vld [vmem:[%s4454_s8 + $0x378] sm:$0xff] }
 0x294   : > { %vm2790_vm14 = vcmp.lt.s32.totalorder %v2726_v39, 1096  ;;  %v2917_v17 = vsub.f32 %v8349_v60, %v3904_v12  ;;  %v2979_v0 = vsel %vm8457_vm15, %v2915_v63, 0.0  ;;  %v3297_v42 = vadd.f32 %v3962_v50, %v3296_v33  ;;  %v3909_v63 = vld [vmem:[%s4448_s29 + $0x348] sm:$0xff] }
 0x295   : > { %v2729_v28 = vadd.s32 %v7776_v62, %v9635_v49  ;;  %v3042_v7 = vmul.f32 %v2978_v36, %v2978_v36  ;;  %v3964_v59 = vsel %vm8417_vm2, 1.0, %v9409_v37  ;;  %v3232_v26 = vadd.f32 %v3231_v30, %v3040_v25  ;;  %vm8517_vm12 = vmand %vm2660_vm13, %vm2790_vm14  ;;  %v9647_v36 = vld [vmem:[#allocation80_spill] sm:$0xff]  ;;  %v8589_v30 = vld [vmem:[%s4454_s8 + $0x380] sm:$0xff] }
 0x296   : > { %vm2665_vm3 = vcmp.gt.f32.partialorder %v8469_v54, 0.0  ;;  %vm2791_vm8 = vcmp.lt.s32.totalorder %v2727_v2, 1096  ;;  %v2918_v8 = vsub.f32 %v8369_v21, %v3905_v55  ;;  %v2980_v60 = vsel %vm8477_vm1, %v2916_v58, 0.0  ;;  %v3910_v58 = vld [vmem:[%s4448_s29 + $0x350] sm:$0xff] }
 0x297   : > { %v3298_v45 = vadd.f32 %v3963_v27, %v3297_v42  ;;  %v2730_v15 = vadd.s32 %v7776_v62, %v9638_v16  ;;  %v3043_v53 = vmul.f32 %v2979_v0, %v2979_v0  ;;  %v3965_v47 = vsel %vm8437_vm6, 1.0, %v9409_v37  ;;  %vm8537_vm13 = vmand %vm2661_vm11, %vm2791_vm8  ;;  %v9650_v0 = vld [vmem:[#allocation81_spill] sm:$0xff] }
 0x298   : > { %v3233_v48 = vadd.f32 %v3232_v26, %v3041_v44  ;;  %vm2666_vm2 = vcmp.gt.f32.partialorder %v8489_v34, 0.0  ;;  %vm2792_vm5 = vcmp.lt.s32.totalorder %v2728_v4, 1096  ;;  %v2919_v22 = vsub.f32 %v8389_v40, %v3906_v52  ;;  %v8609_v26 = vld [vmem:[%s4454_s8 + $0x388] sm:$0xff] }
 0x299   : > { %v2981_v21 = vsel %vm8497_vm9, %v2917_v17, 0.0  ;;  %v3299_v14 = vadd.f32 %v3964_v59, %v3298_v45  ;;  %v2731_v38 = vadd.s32 %v7776_v62, %v9641_v32  ;;  %v3044_v5 = vmul.f32 %v2980_v60, %v2980_v60  ;;  %vm8557_vm11 = vmand %vm2662_vm4, %vm2792_vm5  ;;  %v3911_v17 = vld [vmem:[%s4448_s29 + $0x358] sm:$0xff] }
 0x29a   : > { %v3966_v39 = vsel %vm8457_vm15, 1.0, %v9409_v37  ;;  %v3234_v11 = vadd.f32 %v3233_v48, %v3042_v7  ;;  %vm2667_vm6 = vcmp.gt.f32.partialorder %v8509_v19, 0.0  ;;  %vm2793_vm0 = vcmp.lt.s32.totalorder %v2729_v28, 1096  ;;  %v9653_v60 = vld [vmem:[#allocation82_spill] sm:$0xff]  ;;  %v8629_v48 = vld [vmem:[%s4454_s8 + $0x390] sm:$0xff] }
 0x29b   : > { %v2920_v51 = vsub.f32 %v8409_v31, %v3907_v1  ;;  %v2982_v40 = vsel %vm8517_vm12, %v2918_v8, 0.0  ;;  %v3300_v23 = vadd.f32 %v3965_v47, %v3299_v14  ;;  %v2732_v29 = vadd.s32 %v7776_v62, %v9644_v41  ;;  %vm8577_vm4 = vmand %vm2663_vm7, %vm2793_vm0  ;;  %v3912_v8 = vld [vmem:[%s4448_s29 + $0x360] sm:$0xff] }
 0x29c   : > { %v3045_v3 = vmul.f32 %v2981_v21, %v2981_v21  ;;  %v3967_v2 = vsel %vm8477_vm1, 1.0, %v9409_v37  ;;  %v3235_v56 = vadd.f32 %v3234_v11, %v3043_v53  ;;  %vm2668_vm15 = vcmp.gt.f32.partialorder %v8529_v20, 0.0  ;;  %v9656_v21 = vld [vmem:[#allocation83_spill] sm:$0xff]  ;;  %v8649_v11 = vld [vmem:[%s4454_s8 + $0x398] sm:$0xff] }
 0x29d   : > { %vm2794_vm14 = vcmp.lt.s32.totalorder %v2730_v15, 1096  ;;  %v2921_v25 = vsub.f32 %v8429_v43, %v3908_v18  ;;  %v2983_v31 = vsel %vm8537_vm13, %v2919_v22, 0.0  ;;  %v3301_v50 = vadd.f32 %v3966_v39, %v3300_v23  ;;  %v3913_v22 = vld [vmem:[%s4448_s29 + $0x368] sm:$0xff] }
 0x29e   : > { %v2733_v33 = vadd.s32 %v7776_v62, %v9647_v36  ;;  %v3046_v57 = vmul.f32 %v2982_v40, %v2982_v40  ;;  %v3968_v4 = vsel %vm8497_vm9, 1.0, %v9409_v37  ;;  %v3236_v10 = vadd.f32 %v3235_v56, %v3044_v5  ;;  %vm8597_vm7 = vmand %vm2664_vm10, %vm2794_vm14  ;;  %v9659_v40 = vld [vmem:[#allocation84_spill] sm:$0xff]  ;;  %v8669_v56 = vld [vmem:[%s4454_s8 + $0x3a0] sm:$0xff] }
 0x29f   : > { %vm2669_vm1 = vcmp.gt.f32.partialorder %v8549_v35, 0.0  ;;  %vm2795_vm8 = vcmp.lt.s32.totalorder %v2731_v38, 1096  ;;  %v2922_v44 = vsub.f32 %v8449_v24, %v3909_v63  ;;  %v2984_v43 = vsel %vm8557_vm11, %v2920_v51, 0.0  ;;  %v3914_v51 = vld [vmem:[%s4448_s29 + $0x370] sm:$0xff] }
 0x2a0   : > { %v3302_v27 = vadd.f32 %v3967_v2, %v3301_v50  ;;  %v2734_v42 = vadd.s32 %v7776_v62, %v9650_v0  ;;  %v3047_v49 = vmul.f32 %v2983_v31, %v2983_v31  ;;  %v3969_v28 = vsel %vm8517_vm12, 1.0, %v9409_v37  ;;  %vm8617_vm10 = vmand %vm2665_vm3, %vm2795_vm8  ;;  %v9662_v31 = vld [vmem:[#allocation85_spill] sm:$0xff] }
 0x2a1   : > { %v3237_v46 = vadd.f32 %v3236_v10, %v3045_v3  ;;  %vm2670_vm9 = vcmp.gt.f32.partialorder %v8569_v6, 0.0  ;;  %vm2796_vm5 = vcmp.lt.s32.totalorder %v2732_v29, 1096  ;;  %v2923_v7 = vsub.f32 %v8469_v54, %v3910_v58  ;;  %v8689_v10 = vld [vmem:[%s4454_s8 + $0x3a8] sm:$0xff] }
 0x2a2   : > { %v2985_v24 = vsel %vm8577_vm4, %v2921_v25, 0.0  ;;  %v3303_v59 = vadd.f32 %v3968_v4, %v3302_v27  ;;  %v2735_v45 = vadd.s32 %v7776_v62, %v9653_v60  ;;  %v3048_v16 = vmul.f32 %v2984_v43, %v2984_v43  ;;  %vm8637_vm3 = vmand %vm2666_vm2, %vm2796_vm5  ;;  %v3915_v25 = vld [vmem:[%s4448_s29 + $0x378] sm:$0xff] }
 0x2a3   : > { %v3970_v15 = vsel %vm8537_vm13, 1.0, %v9409_v37  ;;  %v3238_v9 = vadd.f32 %v3237_v46, %v3046_v57  ;;  %vm2671_vm12 = vcmp.gt.f32.partialorder %v8589_v30, 0.0  ;;  %vm2797_vm0 = vcmp.lt.s32.totalorder %v2733_v33, 1096  ;;  %v9665_v43 = vld [vmem:[#allocation86_spill] sm:$0xff]  ;;  %v8709_v46 = vld [vmem:[%s4454_s8 + $0x3b0] sm:$0xff] }
 0x2a4   : > { %v2924_v53 = vsub.f32 %v8489_v34, %v3911_v17  ;;  %v2986_v54 = vsel %vm8597_vm7, %v2922_v44, 0.0  ;;  %v3304_v47 = vadd.f32 %v3969_v28, %v3303_v59  ;;  %v2736_v14 = vadd.s32 %v7776_v62, %v9656_v21  ;;  %vm8657_vm2 = vmand %vm2667_vm6, %vm2797_vm0  ;;  %v3916_v44 = vld [vmem:[%s4448_s29 + $0x380] sm:$0xff] }
 0x2a5   : > { %v3049_v32 = vmul.f32 %v2985_v24, %v2985_v24  ;;  %v3971_v38 = vsel %vm8557_vm11, 1.0, %v9409_v37  ;;  %v3239_v61 = vadd.f32 %v3238_v9, %v3047_v49  ;;  %vm2672_vm13 = vcmp.gt.f32.partialorder %v8609_v26, 0.0  ;;  %v9668_v24 = vld [vmem:[#allocation87_spill] sm:$0xff]  ;;  %v8729_v9 = vld [vmem:[%s4454_s8 + $0x3b8] sm:$0xff] }
 0x2a6   : > { %vm2798_vm14 = vcmp.lt.s32.totalorder %v2734_v42, 1096  ;;  %v2925_v5 = vsub.f32 %v8509_v19, %v3912_v8  ;;  %v2987_v34 = vsel %vm8617_vm10, %v2923_v7, 0.0  ;;  %v3305_v39 = vadd.f32 %v3970_v15, %v3304_v47  ;;  %v3917_v7 = vld [vmem:[%s4448_s29 + $0x388] sm:$0xff] }
 0x2a7   : > { %v2737_v23 = vadd.s32 %v7776_v62, %v9659_v40  ;;  %v3050_v41 = vmul.f32 %v2986_v54, %v2986_v54  ;;  %v3972_v29 = vsel %vm8577_vm4, 1.0, %v9409_v37  ;;  %v3240_v12 = vadd.f32 %v3239_v61, %v3048_v16  ;;  %vm8677_vm6 = vmand %vm2668_vm15, %vm2798_vm14  ;;  %v9671_v54 = vld [vmem:[#allocation88_spill] sm:$0xff]  ;;  %v8749_v61 = vld [vmem:[%s4454_s8 + $0x3c0] sm:$0xff] }
 0x2a8   : > { %vm2673_vm11 = vcmp.gt.f32.partialorder %v8629_v48, 0.0  ;;  %vm2799_vm8 = vcmp.lt.s32.totalorder %v2735_v45, 1096  ;;  %v2926_v3 = vsub.f32 %v8529_v20, %v3913_v22  ;;  %v2988_v19 = vsel %vm8637_vm3, %v2924_v53, 0.0  ;;  %v3918_v53 = vld [vmem:[%s4448_s29 + $0x390] sm:$0xff] }
 0x2a9   : > { %v3306_v2 = vadd.f32 %v3971_v38, %v3305_v39  ;;  %v2738_v50 = vadd.s32 %v7776_v62, %v9662_v31  ;;  %v3051_v36 = vmul.f32 %v2987_v34, %v2987_v34  ;;  %v3973_v33 = vsel %vm8597_vm7, 1.0, %v9409_v37  ;;  %vm8697_vm15 = vmand %vm2669_vm1, %vm2799_vm8  ;;  %v9674_v34 = vld [vmem:[#allocation89_spill] sm:$0xff] }
 0x2aa   : > { %v3241_v55 = vadd.f32 %v3240_v12, %v3049_v32  ;;  %vm2674_vm4 = vcmp.gt.f32.partialorder %v8649_v11, 0.0  ;;  %vm2800_vm5 = vcmp.lt.s32.totalorder %v2736_v14, 1096  ;;  %v2927_v57 = vsub.f32 %v8549_v35, %v3914_v51  ;;  %v8769_v12 = vld [vmem:[%s4454_s8 + $0x3c8] sm:$0xff] }
 0x2ab   : > { %v2989_v20 = vsel %vm8657_vm2, %v2925_v5, 0.0  ;;  %v3307_v4 = vadd.f32 %v3972_v29, %v3306_v2  ;;  %v2739_v27 = vadd.s32 %v7776_v62, %v9665_v43  ;;  %v3052_v0 = vmul.f32 %v2988_v19, %v2988_v19  ;;  %vm8717_vm1 = vmand %vm2670_vm9, %vm2800_vm5  ;;  %v3919_v5 = vld [vmem:[%s4448_s29 + $0x398] sm:$0xff] }
 0x2ac   : > { %v3974_v42 = vsel %vm8617_vm10, 1.0, %v9409_v37  ;;  %v3242_v52 = vadd.f32 %v3241_v55, %v3050_v41  ;;  %vm2675_vm7 = vcmp.gt.f32.partialorder %v8669_v56, 0.0  ;;  %vm2801_vm0 = vcmp.lt.s32.totalorder %v2737_v23, 1096  ;;  %v9677_v19 = vld [vmem:[#allocation90_spill] sm:$0xff]  ;;  %v8789_v55 = vld [vmem:[%s4454_s8 + $0x3d0] sm:$0xff] }
 0x2ad   : > { %v2928_v49 = vsub.f32 %v8569_v6, %v3915_v25  ;;  %v2990_v35 = vsel %vm8677_vm6, %v2926_v3, 0.0  ;;  %v3308_v28 = vadd.f32 %v3973_v33, %v3307_v4  ;;  %v2740_v59 = vadd.s32 %v7776_v62, %v9668_v24  ;;  %vm8737_vm9 = vmand %vm2671_vm12, %vm2801_vm0  ;;  %v3920_v3 = vld [vmem:[%s4448_s29 + $0x3a0] sm:$0xff]  ;;  %v3926_v25 = vld [vmem:[%s4448_s29 + $0x3d0] sm:$0xff] }
 0x2ae   : > { %v3053_v60 = vmul.f32 %v2989_v20, %v2989_v20  ;;  %v3975_v45 = vsel %vm8637_vm3, 1.0, %v9409_v37  ;;  %v3243_v1 = vadd.f32 %v3242_v52, %v3051_v36  ;;  %vm2676_vm10 = vcmp.gt.f32.partialorder %v8689_v10, 0.0  ;;  %v9680_v20 = vld [vmem:[#allocation91_spill] sm:$0xff]  ;;  %v8809_v52 = vld [vmem:[%s4454_s8 + $0x3d8] sm:$0xff] }
 0x2af   : > { %vm2802_vm14 = vcmp.lt.s32.totalorder %v2738_v50, 1096  ;;  %v2929_v16 = vsub.f32 %v8589_v30, %v3916_v44  ;;  %v2991_v6 = vsel %vm8697_vm15, %v2927_v57, 0.0  ;;  %v3309_v15 = vadd.f32 %v3974_v42, %v3308_v28  ;;  %v3921_v57 = vld [vmem:[%s4448_s29 + $0x3a8] sm:$0xff]  ;;  %v3927_v44 = vld [vmem:[%s4448_s29 + $0x3d8] sm:$0xff] }
 0x2b0   : > { %v2741_v47 = vadd.s32 %v7776_v62, %v9671_v54  ;;  %v3054_v21 = vmul.f32 %v2990_v35, %v2990_v35  ;;  %v3976_v14 = vsel %vm8657_vm2, 1.0, %v9409_v37  ;;  %v3244_v18 = vadd.f32 %v3243_v1, %v3052_v0  ;;  %vm8757_vm12 = vmand %vm2672_vm13, %vm2802_vm14  ;;  %v9683_v35 = vld [vmem:[#allocation92_spill] sm:$0xff]  ;;  %v8829_v1 = vld [vmem:[%s4454_s8 + $0x3e0] sm:$0xff] }
 0x2b1   : > { %vm2677_vm3 = vcmp.gt.f32.partialorder %v8709_v46, 0.0  ;;  %vm2803_vm8 = vcmp.lt.s32.totalorder %v2739_v27, 1096  ;;  %v2930_v32 = vsub.f32 %v8609_v26, %v3917_v7  ;;  %v2992_v30 = vsel %vm8717_vm1, %v2928_v49, 0.0  ;;  %v3922_v49 = vld [vmem:[%s4448_s29 + $0x3b0] sm:$0xff] }
 0x2b2   : > { %v3310_v38 = vadd.f32 %v3975_v45, %v3309_v15  ;;  %v2742_v39 = vadd.s32 %v7776_v62, %v9674_v34  ;;  %v3055_v40 = vmul.f32 %v2991_v6, %v2991_v6  ;;  %v3977_v23 = vsel %vm8677_vm6, 1.0, %v9409_v37  ;;  %vm8777_vm13 = vmand %vm2673_vm11, %vm2803_vm8  ;;  %v9686_v6 = vld [vmem:[#allocation93_spill] sm:$0xff] }
 0x2b3   : > { %v3245_v63 = vadd.f32 %v3244_v18, %v3053_v60  ;;  %vm2678_vm2 = vcmp.gt.f32.partialorder %v8729_v9, 0.0  ;;  %vm2804_vm5 = vcmp.lt.s32.totalorder %v2740_v59, 1096  ;;  %v2931_v41 = vsub.f32 %v8629_v48, %v3918_v53  ;;  %v8849_v18 = vld [vmem:[%s4454_s8 + $0x3e8] sm:$0xff] }
 0x2b4   : > { %v2993_v26 = vsel %vm8737_vm9, %v2929_v16, 0.0  ;;  %v3311_v29 = vadd.f32 %v3976_v14, %v3310_v38  ;;  %v2743_v2 = vadd.s32 %v7776_v62, %v9677_v19  ;;  %v3056_v31 = vmul.f32 %v2992_v30, %v2992_v30  ;;  %vm8797_vm11 = vmand %vm2674_vm4, %vm2804_vm5  ;;  %v3923_v16 = vld [vmem:[%s4448_s29 + $0x3b8] sm:$0xff] }
 0x2b5   : > { %v3978_v50 = vsel %vm8697_vm15, 1.0, %v9409_v37  ;;  %v3246_v58 = vadd.f32 %v3245_v63, %v3054_v21  ;;  %vm2679_vm6 = vcmp.gt.f32.partialorder %v8749_v61, 0.0  ;;  %vm2805_vm0 = vcmp.lt.s32.totalorder %v2741_v47, 1096  ;;  %v9689_v30 = vld [vmem:[#allocation94_spill] sm:$0xff]  ;;  %v3925_v63 = vld [vmem:[%s4448_s29 + $0x3c8] sm:$0xff] }
 0x2b6   : > { %v2932_v36 = vsub.f32 %v8649_v11, %v3919_v5  ;;  %v2994_v48 = vsel %vm8757_vm12, %v2930_v32, 0.0  ;;  %v3312_v33 = vadd.f32 %v3977_v23, %v3311_v29  ;;  %v2744_v4 = vadd.s32 %v7776_v62, %v9680_v20  ;;  %vm8817_vm4 = vmand %vm2675_vm7, %vm2805_vm0  ;;  %v3924_v32 = vld [vmem:[%s4448_s29 + $0x3c0] sm:$0xff] }
 0x2b7   : > { %v3057_v43 = vmul.f32 %v2993_v26, %v2993_v26  ;;  %v3979_v27 = vsel %vm8717_vm1, 1.0, %v9409_v37  ;;  %v3247_v17 = vadd.f32 %v3246_v58, %v3055_v40  ;;  %vm2680_vm15 = vcmp.gt.f32.partialorder %v8769_v12, 0.0 }
 0x2b8   : > { %vm2806_vm14 = vcmp.lt.s32.totalorder %v2742_v39, 1096  ;;  %v2933_v0 = vsub.f32 %v8669_v56, %v3920_v3  ;;  %v2995_v11 = vsel %vm8777_vm13, %v2931_v41, 0.0  ;;  %v3313_v42 = vadd.f32 %v3978_v50, %v3312_v33 }
 0x2b9   : > { %v2745_v28 = vadd.s32 %v7776_v62, %v9683_v35  ;;  %v3058_v24 = vmul.f32 %v2994_v48, %v2994_v48  ;;  %v3980_v59 = vsel %vm8737_vm9, 1.0, %v9409_v37  ;;  %v3248_v8 = vadd.f32 %v3247_v17, %v3056_v31  ;;  %vm8837_vm7 = vmand %vm2676_vm10, %vm2806_vm14  ;;  %v9694_v31 = vld [vmem:[#allocation96_spill] sm:$0xff] }
 0x2ba   : > { %vm2681_vm1 = vcmp.gt.f32.partialorder %v8789_v55, 0.0  ;;  %vm2807_vm8 = vcmp.lt.s32.totalorder %v2743_v2, 1096  ;;  %v2934_v60 = vsub.f32 %v8689_v10, %v3921_v57  ;;  %v2996_v56 = vsel %vm8797_vm11, %v2932_v36, 0.0 }
 0x2bb   : > { %v3314_v45 = vadd.f32 %v3979_v27, %v3313_v42  ;;  %v2746_v15 = vadd.s32 %v7776_v62, %v9686_v6  ;;  %v3059_v54 = vmul.f32 %v2995_v11, %v2995_v11  ;;  %v3981_v47 = vsel %vm8757_vm12, 1.0, %v9409_v37  ;;  %vm8857_vm10 = vmand %vm2677_vm3, %vm2807_vm8  ;;  %v3929_v6 = vld [vmem:[%s4448_s29 + $0x3e8] sm:$0xff] }
 0x2bc   : > { %v3249_v22 = vadd.f32 %v3248_v8, %v3057_v43  ;;  %vm2682_vm9 = vcmp.gt.f32.partialorder %v8809_v52, 0.0  ;;  %vm2808_vm5 = vcmp.lt.s32.totalorder %v2744_v4, 1096  ;;  %v2935_v21 = vsub.f32 %v8709_v46, %v3922_v49 }
 0x2bd   : > { %v2997_v14 = vsel %vm8817_vm4, %v2933_v0, 0.0  ;;  %v3315_v10 = vadd.f32 %v3980_v59, %v3314_v45  ;;  %v2747_v38 = vadd.s32 %v7776_v62, %v9689_v30  ;;  %v3060_v34 = vmul.f32 %v2996_v56, %v2996_v56  ;;  %vm8874_vm3 = vmand %vm2678_vm2, %vm2808_vm5  ;;  %v3866_v56 = vld [vmem:[%s4454_s8 + $0x3f0] sm:$0xff] }
 0x2be   : > { %v3982_v39 = vsel %vm8777_vm13, 1.0, %v9409_v37  ;;  %v3250_v51 = vadd.f32 %v3249_v22, %v3058_v24  ;;  %vm2683_vm12 = vcmp.gt.f32.partialorder %v8829_v1, 0.0  ;;  %vm2809_vm0 = vcmp.lt.s32.totalorder %v2745_v28, 1096  ;;  %v3928_v28 = vld [vmem:[%s4448_s29 + $0x3e0] sm:$0xff] }
 0x2bf   : > { %v2936_v40 = vsub.f32 %v8729_v9, %v3923_v16  ;;  %v2998_v23 = vsel %vm8837_vm7, %v2934_v60, 0.0  ;;  %v3316_v46 = vadd.f32 %v3981_v47, %v3315_v10  ;;  %v2748_v41 = vadd.s32 %v7776_v62, %v9525_v13  ;;  %vm8891_vm2 = vmand %vm2679_vm6, %vm2809_vm0  ;;  %v3201_v24 = vld [vmem:[#allocation7] sm:$0xff] }
 0x2c0   : > { %v3061_v29 = vmul.f32 %v2997_v14, %v2997_v14  ;;  %v3983_v3 = vsel %vm8797_vm11, 1.0, %v9409_v37  ;;  %v3251_v19 = vadd.f32 %v3250_v51, %v3059_v54  ;;  %vm2684_vm13 = vcmp.gt.f32.partialorder %v8849_v18, 0.0  ;;  %v3867_v14 = vld [vmem:[%s4454_s8 + $0x3f8] sm:$0xff] }
 0x2c1   : > { %vm2810_vm14 = vcmp.lt.s32.totalorder %v2746_v15, 1096  ;;  %v2937_v2 = vsub.f32 %v8749_v61, %v3924_v32  ;;  %v2999_v13 = vsel %vm8857_vm10, %v2935_v21, 0.0  ;;  %v3317_v9 = vadd.f32 %v3982_v39, %v3316_v46  ;;  %v9697_v61 = vld [vmem:[#allocation97_spill] sm:$0xff]  ;;  %v9703_v15 = vld [vmem:[#allocation99_spill] sm:$0xff] }
 0x2c2   : > { %v2749_v50 = vadd.s32 %v7776_v62, %v9694_v31  ;;  %v3062_v36 = vmul.f32 %v2998_v23, %v2998_v23  ;;  %v3984_v48 = vsel %vm8817_vm4, 1.0, %v9409_v37  ;;  %v3252_v33 = vadd.f32 %v3251_v19, %v3060_v34  ;;  %vm8907_vm6 = vmand %vm2680_vm15, %vm2810_vm14  ;;  %v3931_v23 = vld [vmem:[%s4448_s29 + $0x3f8] sm:$0xff] }
 0x2c3   : > { %vm2811_vm11 = vcmp.lt.s32.totalorder %v2747_v38, 1096  ;;  %v2938_v57 = vsub.f32 %v8769_v12, %v3925_v63  ;;  %v3000_v20 = vsel %vm8874_vm3, %v2936_v40, 0.0  ;;  %v3318_v4 = vadd.f32 %v3983_v3, %v3317_v9  ;;  %v9700_v12 = vld [vmem:[#allocation98_spill] sm:$0xff] }
 0x2c4   : > { %v2750_v43 = vadd.s32 %v7776_v62, %v9697_v61  ;;  %v3063_v17 = vmul.f32 %v2999_v13, %v2999_v13  ;;  %v3985_v0 = vsel %vm8837_vm7, 1.0, %v9409_v37  ;;  %v3253_v11 = vadd.f32 %v3252_v33, %v3061_v29  ;;  %vm8923_vm15 = vmand %vm2681_vm1, %vm2811_vm11 }
 0x2c5   : > { %vm2812_vm4 = vcmp.lt.s32.totalorder %v2748_v41, 1096  ;;  %v2939_v42 = vsub.f32 %v8789_v55, %v3926_v25  ;;  %v3001_v49 = vsel %vm8891_vm2, %v2937_v2, 0.0  ;;  %v3319_v35 = vadd.f32 %v3984_v48, %v3318_v4 }
 0x2c6   : > { %v2751_v7 = vadd.s32 %v7776_v62, %v9700_v12  ;;  %v3064_v59 = vmul.f32 %v3000_v20, %v3000_v20  ;;  %v3986_v8 = vsel %vm8857_vm10, 1.0, %v9409_v37  ;;  %v3254_v60 = vadd.f32 %v3253_v11, %v3062_v36  ;;  %vm8940_vm1 = vmand %vm2682_vm9, %vm2812_vm4 }
 0x2c7   : > { %vm2813_vm8 = vcmp.lt.s32.totalorder %v2749_v50, 1096  ;;  %v2940_v45 = vsub.f32 %v8809_v52, %v3927_v44  ;;  %v3002_v16 = vsel %vm8907_vm6, %v2938_v57, 0.0  ;;  %v3320_v55 = vadd.f32 %v3985_v0, %v3319_v35  ;;  %v3930_v52 = vld [vmem:[%s4448_s29 + $0x3f0] sm:$0xff] }
 0x2c8   : > { %v2752_v53 = vadd.s32 %v7776_v62, %v9703_v15  ;;  %v3065_v47 = vmul.f32 %v3001_v49, %v3001_v49  ;;  %v3987_v22 = vsel %vm8874_vm3, 1.0, %v9409_v37  ;;  %v3255_v21 = vadd.f32 %v3254_v60, %v3063_v17  ;;  %vm8955_vm5 = vmand %vm2683_vm12, %vm2813_vm8  ;;  %v3267_v60 = vld [vmem:[#allocation8] sm:$0xff] }
 0x2c9   : > { %vm2814_vm7 = vcmp.lt.s32.totalorder %v2750_v43, 1096  ;;  %v2941_v10 = vsub.f32 %v8829_v1, %v3928_v28  ;;  %v3003_v62 = vsel %vm8923_vm15, %v2939_v42, 0.0  ;;  %v3321_v32 = vadd.f32 %v3986_v8, %v3320_v55 }
 0x2ca   : > { %vm2685_vm9 = vcmp.gt.f32.partialorder %v3866_v56, 0.0  ;;  %v3066_v38 = vmul.f32 %v3002_v16, %v3002_v16  ;;  %v3988_v5 = vsel %vm8891_vm2, 1.0, %v9409_v37  ;;  %v3256_v34 = vadd.f32 %v3255_v21, %v3064_v59  ;;  %vm8969_vm12 = vmand %vm2684_vm13, %vm2814_vm7 }
 0x2cb   : > { %vm2815_vm10 = vcmp.lt.s32.totalorder %v2751_v7, 1096  ;;  %v2942_v39 = vsub.f32 %v8849_v18, %v3929_v6  ;;  %v3004_v51 = vsel %vm8940_vm1, %v2940_v45, 0.0  ;;  %v3322_v40 = vadd.f32 %v3987_v22, %v3321_v32 }
 0x2cc   : > { %vm2686_vm0 = vcmp.gt.f32.partialorder %v3867_v14, 0.0  ;;  %v3067_v46 = vmul.f32 %v3003_v62, %v3003_v62  ;;  %v3989_v63 = vsel %vm8907_vm6, 1.0, %v9409_v37  ;;  %v3257_v41 = vadd.f32 %v3256_v34, %v3065_v47  ;;  %vm8979_vm14 = vmand %vm2685_vm9, %vm2815_vm10 }
 0x2cd   : > { %vm2816_vm3 = vcmp.lt.s32.totalorder %v2752_v53, 1096  ;;  %v2943_v26 = vsub.f32 %v3866_v56, %v3930_v52  ;;  %v3005_v29 = vsel %vm8955_vm5, %v2941_v10, 0.0  ;;  %v3323_v3 = vadd.f32 %v3988_v5, %v3322_v40 }
 0x2ce   : > { %v3068_v18 = vmul.f32 %v3004_v51, %v3004_v51  ;;  %v3990_v2 = vsel %vm8923_vm15, 1.0, %v9409_v37  ;;  %v3258_v13 = vadd.f32 %v3257_v41, %v3066_v38  ;;  %v2944_v9 = vsub.f32 %v3867_v14, %v3931_v23  ;;  %vm8989_vm13 = vmand %vm2686_vm0, %vm2816_vm3 }
 0x2cf   : > { %v3006_v25 = vsel %vm8969_vm12, %v2942_v39, 0.0  ;;  %v3324_v31 = vadd.f32 %v3989_v63, %v3323_v3  ;;  %v3069_v58 = vmul.f32 %v3005_v29, %v3005_v29  ;;  %v3991_v36 = vsel %vm8940_vm1, 1.0, %v9409_v37 }
 0x2d0   : > { %v3259_v48 = vadd.f32 %v3258_v13, %v3067_v46  ;;  %v3007_v33 = vsel %vm8979_vm14, %v2943_v26, 0.0  ;;  %v3070_v20 = vmul.f32 %v3006_v25, %v3006_v25  ;;  %v3992_v4 = vsel %vm8955_vm5, 1.0, %v9409_v37 }
 0x2d1   : > { %v3325_v57 = vadd.f32 %v3990_v2, %v3324_v31  ;;  %v3008_v61 = vsel %vm8989_vm13, %v2944_v9, 0.0  ;;  %v3071_v27 = vmul.f32 %v3007_v33, %v3007_v33  ;;  %v3993_v17 = vsel %vm8969_vm12, 1.0, %v9409_v37 }
 0x2d2   : > { %v3260_v44 = vadd.f32 %v3259_v48, %v3068_v18  ;;  %v3072_v42 = vmul.f32 %v3008_v61, %v3008_v61  ;;  %v3994_v49 = vsel %vm8979_vm14, 1.0, %v9409_v37  ;;  %v3995_v12 = vsel %vm8989_vm13, 1.0, %v9409_v37 }
 0x2d3   : > { %v3326_v43 = vadd.f32 %v3991_v36, %v3325_v57 }
 0x2d4   : > { %v3261_v0 = vadd.f32 %v3260_v44, %v3069_v58 }
 0x2d5   : > { %v3327_v11 = vadd.f32 %v3992_v4, %v3326_v43 }
 0x2d6   : > { %v3262_v35 = vadd.f32 %v3261_v0, %v3070_v20 }
 0x2d7   : > { %v3328_v28 = vadd.f32 %v3993_v17, %v3327_v11 }
 0x2d8   : > { %v3263_v7 = vadd.f32 %v3262_v35, %v3071_v27 }
 0x2d9   : > { %v3329_v59 = vadd.f32 %v3994_v49, %v3328_v28 }
 0x2da   : > { %v3264_v8 = vadd.f32 %v3263_v7, %v3072_v42 }
 0x2db   : > { %v3330_v56 = vadd.f32 %v3995_v12, %v3329_v59 }
 0x2dc   : > { %v3265_v45 = vadd.f32 %v3264_v8, %v3201_v24 }
 0x2dd   : > { %v3331_v16 = vadd.f32 %v3330_v56, %v3267_v60 }
 0x2de   : > { %3266 = vst [vmem:[#allocation7] sm:$0xff] %v3265_v45 }
 0x2df   : > { %3332 = vst [vmem:[#allocation8] sm:$0xff] %v3331_v16 }
 0x2e0 PF: > { %p9014_p12 = scmp.eq.s32.totalorder %s3460_s18, 1  ;;  %s3343_s4 = sshll.u32 %s9056_s2, 4  ;;  %s3344_s4 = int_to_ptr.hbm [resolvable:$true] %s3343_s4 }
 0x2e1   : > { %s4282_s6 = smov [#allocation7]   ;;  %s4283_s28 = smov [#allocation8]  }
 0x2e2   : > { %s3341_s7 = sshll.u32 %s4282_s6, 4  ;;  %s3355_s5 = sshll.u32 %s4283_s28, 4  ;;  %s3342_s7 = int_to_ptr.vmem [resolvable:$true] %s3341_s7  ;;  %s3356_s5 = int_to_ptr.vmem [resolvable:$true] %s3355_s5 }
 0x2e3   : > { %4007 = dma.vmem_to_hbm [thread:$0]  (%p9014_p12), %s3342_s7, 128, %s3344_s4, [#allocation4]  }
 0x2e4   : > { %s3357_s20 = sshll.u32 %s9057_s3, 4  ;;  %s3358_s20 = int_to_ptr.hbm [resolvable:$true] %s3357_s20 }
 0x2e5   : > { %4009 = dma.vmem_to_hbm [thread:$0]  (%p9014_p12), %s3356_s5, 128, %s3358_s20, [#allocation9]  }
 0x2e6   : > { %4242 = dma.done.wait (%p9014_p12), [#allocation4], 128  }
 0x2e7   : > { %4244 = vsyncadd (%p9014_p12), [#allocation4], 4294967168 }
 0x2e8   : > { %4246 = dma.done.wait (%p9014_p12), [#allocation9], 128  }
 0x2e9   : > { %4248 = vsyncadd (%p9014_p12), [#allocation9], 4294967168 }
 0x2ea PF: > { %s22_s17 = sadd.s32 1, %s4271_s17   ;;  %s9715_s12 = smov %s4255_s13 }
 0x2eb   : > { %p19_p13 = scmp.ge.s32.totalorder %s22_s17, 4   ;;  %s9716_s13 = smov %s4259_s14 }
 0x2ec   : > { %s9717_s14 = smov %s4354_s24  ;;  %s9718_s15 = smov %s4267_s16 }
 0x2ed   : > { %s9719_s16 = smov %s9721_s19  ;;  %21 = sbr.rel (!%p19_p13) target bundleno = 8 (0x8), region = 104 }
 0x2f2   :  { %3376 = vsyncpa [#allocation3], 1 }
 0x2f3   :  { %3378 = vsyncpa [#allocation3 + $0x1], 1 }
 0x2f4   :  { %3379 = vsyncpa [#allocation6], 1 }
 0x2f5   :  { %3381 = vsyncpa [#allocation6 + $0x1], 1 }
 0x2f6   :  { %3382 = vsyncpa [#allocation4], 1 }
 0x2f7   :  { %3384 = vsyncpa [#allocation4 + $0x1], 1 }
 0x2f8   :  { %3385 = vsyncpa [#allocation9], 1 }

</bundles_post_ra>
